<compile_context>
chip_gen: v6e
topology: v6e:2x2x1
jax: 0.10.0
libtpu: 0.0.40
codegen_flags: <defaults>
</compile_context>

<pallas_src>
import jax
import jax.numpy as jnp
from jax import lax
from jax.experimental import pallas as pl
from jax.experimental.pallas import tpu as pltpu

HID = 128  # LSTM hidden size (fixed by the module)


# ----------------------------------------------------------------------------
# Kernel 1: fused conv1(5x5, pad 2) + ReLU + conv2(3x3, pad 1) + ReLU
#   - grid over blocks of nb samples (nb=8 -> 512 GEMM rows per grid step)
#   - conv1 is one im2col GEMM (patches built in cheap XLA glue: single input
#     channel, so the patch matrix is only 25 wide)
#   - conv2 is 9 shifted-tap GEMMs against a zero-padded VMEM scratch copy of
#     the conv1 activations, so the 32-channel intermediate never touches HBM.
# ----------------------------------------------------------------------------
def _fused_conv_kernel(p_ref, w1_ref, b1_ref, w2_ref, b2_ref, feat_ref, c1pad_ref):
    nb, HW, K1 = p_ref.shape
    C1 = w1_ref.shape[1]
    C2 = w2_ref.shape[1]
    H = c1pad_ref.shape[1] - 2
    W = c1pad_ref.shape[2] - 2

    # conv1 + bias + ReLU as one MXU GEMM.
    patches = p_ref[...].reshape(nb * HW, K1)
    c1 = jnp.dot(patches, w1_ref[...], preferred_element_type=jnp.float32)
    c1 = jnp.maximum(c1 + b1_ref[...], 0.0)

    # Zero-padded conv1 activations kept entirely in VMEM.
    c1pad_ref[...] = jnp.zeros_like(c1pad_ref)
    c1pad_ref[:, 1:1 + H, 1:1 + W, :] = c1.reshape(nb, H, W, C1)

    # conv2 as 9 shifted-tap GEMMs accumulated in f32, then bias + ReLU.
    acc = jnp.zeros((nb * HW, C2), jnp.float32)
    for di in range(3):
        for dj in range(3):
            k = di * 3 + dj
            tap = c1pad_ref[:, di:di + H, dj:dj + W, :].reshape(nb * HW, C1)
            acc = acc + jnp.dot(tap, w2_ref[k * C1:(k + 1) * C1, :],
                                preferred_element_type=jnp.float32)
    feat_ref[...] = jnp.maximum(acc + b2_ref[...], 0.0).reshape(nb, HW, C2)


def fused_conv(x_nhwc, w1_hwio, b1, w2_hwio, b2):
    """ReLU(conv2(ReLU(conv1(x)))), 'same' padding, stride 1.
    Returns per-sample NHWC-flattened features as (N, H*W, 64)."""
    N, H, W, _ = x_nhwc.shape
    HW = H * W
    KH1, KW1, _, C1 = w1_hwio.shape          # (5, 5, 1, 32)
    _, _, _, C2 = w2_hwio.shape              # (3, 3, 32, 64)

    # im2col for the single-channel 5x5 conv (cheap XLA glue: 25 shifted slices).
    xp = jnp.pad(x_nhwc, ((0, 0), (2, 2), (2, 2), (0, 0)))
    cols = [xp[:, i:i + H, j:j + W, :] for i in range(KH1) for j in range(KW1)]
    patches = jnp.concatenate(cols, axis=-1).reshape(N, HW, KH1 * KW1)

    w1 = w1_hwio.reshape(KH1 * KW1, C1)
    w2 = w2_hwio.reshape(9 * C1, C2)          # tap (di,dj) occupies rows [(3*di+dj)*C1, +C1)

    nb = 8 if N % 8 == 0 else N               # 8 samples -> 512 GEMM rows per grid step
    return pl.pallas_call(
        _fused_conv_kernel,
        grid=(N // nb,),
        in_specs=[
            pl.BlockSpec((nb, HW, KH1 * KW1), lambda i: (i, 0, 0)),
            pl.BlockSpec((KH1 * KW1, C1), lambda i: (0, 0)),
            pl.BlockSpec((1, C1), lambda i: (0, 0)),
            pl.BlockSpec((9 * C1, C2), lambda i: (0, 0)),
            pl.BlockSpec((1, C2), lambda i: (0, 0)),
        ],
        out_specs=pl.BlockSpec((nb, HW, C2), lambda i: (i, 0, 0)),
        out_shape=jax.ShapeDtypeStruct((N, HW, C2), jnp.float32),
        scratch_shapes=[pltpu.VMEM((nb, H + 2, W + 2, C1), jnp.float32)],
        compiler_params=pltpu.CompilerParams(
            dimension_semantics=("parallel",)),
    )(patches, w1, b1.reshape(1, C1), w2, b2.reshape(1, C2))


# ----------------------------------------------------------------------------
# Kernel 2: gate pre-activations G = feat @ W_ih + (b_ih + b_hh), batched over
# all (b, t) rows at once.  bf16 operands / f32 accumulation; (N, 512) output
# is lane-dense.  This hoists the big input projection out of the recurrence.
# ----------------------------------------------------------------------------
def _gate_proj_kernel(f_ref, w_ref, b_ref, g_ref):
    f = f_ref[...].astype(jnp.bfloat16)
    g_ref[...] = (jnp.dot(f, w_ref[...], preferred_element_type=jnp.float32)
                  + b_ref[...])


def gate_projection(feat2d, w_ih, b_lstm):
    N, F = feat2d.shape
    nb = 256 if N % 256 == 0 else N
    return pl.pallas_call(
        _gate_proj_kernel,
        grid=(N // nb,),
        in_specs=[
            pl.BlockSpec((nb, F), lambda i: (i, 0)),
            pl.BlockSpec((F, 4 * HID), lambda i: (0, 0)),
            pl.BlockSpec((1, 4 * HID), lambda i: (0, 0)),
        ],
        out_specs=pl.BlockSpec((nb, 4 * HID), lambda i: (i, 0)),
        out_shape=jax.ShapeDtypeStruct((N, 4 * HID), jnp.float32),
        compiler_params=pltpu.CompilerParams(
            dimension_semantics=("parallel",),
            vmem_limit_bytes=32 << 20),   # valid on v7x (64 MiB physical), modest on v5e/v6e
    )(feat2d, w_ih.astype(jnp.bfloat16), b_lstm)


# ----------------------------------------------------------------------------
# Kernel 3: LSTM recurrence (grid over time, h/c carried as VMEM-resident
# outputs) with the dueling head fused into the final time step.  Per step the
# only matmul is (B, 128) x (128, 512); W_ih was hoisted into kernel 2, so the
# resident weight set is just the 256 KB W_hh (double-buffering it is cheap,
# so no pipeline_mode override is needed).
# ----------------------------------------------------------------------------
def _lstm_head_kernel(gx_ref, whh_ref, h0_ref, c0_ref, wh_ref, bh_ref,
                      h_ref, c_ref, q_ref):
    t = pl.program_id(0)

    @pl.when(t == 0)
    def _():
        h_ref[...] = h0_ref[...]
        c_ref[...] = c0_ref[...]

    gates = gx_ref[0] + jnp.dot(h_ref[...], whh_ref[...],
                                preferred_element_type=jnp.float32)
    i = jax.nn.sigmoid(gates[:, 0:HID])
    f = jax.nn.sigmoid(gates[:, HID:2 * HID])
    g = jnp.tanh(gates[:, 2 * HID:3 * HID])
    o = jax.nn.sigmoid(gates[:, 3 * HID:4 * HID])
    c_new = f * c_ref[...] + i * g
    h_new = o * jnp.tanh(c_new)
    c_ref[...] = c_new
    h_ref[...] = h_new

    @pl.when(t == pl.num_programs(0) - 1)
    def _():
        # Dueling head: adv and val from one concatenated matmul, then combine.
        A = q_ref.shape[1]
        head = (jnp.dot(h_ref[...], wh_ref[...], preferred_element_type=jnp.float32)
                + bh_ref[...])
        val = head[:, 0:1]
        adv = head[:, 1:1 + A]
        q_ref[...] = val + (adv - jnp.mean(adv, axis=1, keepdims=True))


def lstm_with_head(gates_tbg, w_hh, h0, c0, w_head, b_head, output_dim):
    T, B, _ = gates_tbg.shape
    return pl.pallas_call(
        _lstm_head_kernel,
        grid=(T,),
        in_specs=[
            pl.BlockSpec((1, B, 4 * HID), lambda t: (t, 0, 0)),     # gate pre-acts @ step t
            pl.BlockSpec((HID, 4 * HID), lambda t: (0, 0)),         # W_hh (resident)
            pl.BlockSpec((B, HID), lambda t: (0, 0)),               # h0
            pl.BlockSpec((B, HID), lambda t: (0, 0)),               # c0
            pl.BlockSpec((HID, 1 + output_dim), lambda t: (0, 0)),  # [w_val | w_adv]
            pl.BlockSpec((1, 1 + output_dim), lambda t: (0, 0)),    # [b_val | b_adv]
        ],
        out_specs=[
            pl.BlockSpec((B, HID), lambda t: (0, 0)),               # h carry / h_n
            pl.BlockSpec((B, HID), lambda t: (0, 0)),               # c carry / c_n
            pl.BlockSpec((B, output_dim), lambda t: (0, 0)),        # q (written at t == T-1)
        ],
        out_shape=[
            jax.ShapeDtypeStruct((B, HID), jnp.float32),
            jax.ShapeDtypeStruct((B, HID), jnp.float32),
            jax.ShapeDtypeStruct((B, output_dim), jnp.float32),
        ],
        compiler_params=pltpu.CompilerParams(
            dimension_semantics=("arbitrary",),
            vmem_limit_bytes=32 << 20),
    )(gates_tbg, w_hh, h0, c0, w_head, b_head)


# ----------------------------------------------------------------------------
# Full forward (matches DuelingRCNN.forward)
# ----------------------------------------------------------------------------
def dueling_rcnn_forward(params, state, batch_size, time_step, hidden_state, cell_state):
    D = params["input_dim"]
    A = params["output_dim"]
    N = batch_size * time_step
    HW = D * D

    # torch: state.view(B*T, 1, D, D).  Single channel -> NHWC is a plain reshape.
    x = state.reshape(N, D, D, 1)

    feat = fused_conv(x, params["conv1_w"], params["conv1_b"],
                      params["conv2_w"], params["conv2_b"])           # (N, HW, 64)
    # W_ih rows are stored in NHWC-flatten order (h, w, c), so this contiguous
    # reshape IS the flatten step -- no NCHW transpose of the 4096-wide features.
    feat2d = feat.reshape(N, HW * 64)

    gates = gate_projection(feat2d, params["w_ih"], params["b_lstm"])  # (N, 512), rows (b, t)
    gates_tbg = jnp.transpose(gates.reshape(batch_size, time_step, 4 * HID), (1, 0, 2))

    # Concatenated dueling-head weights: column 0 = val, columns 1..A = adv.
    w_head = jnp.concatenate([params["val_w"], params["adv_w"]], axis=1)   # (HID, 1+A)
    b_head = jnp.concatenate([params["val_b"], params["adv_b"]], axis=1)   # (1, 1+A)

    h_n, c_n, q = lstm_with_head(gates_tbg, params["w_hh"],
                                 hidden_state[0], cell_state[0],
                                 w_head, b_head, A)
    return q, (h_n[None, :, :], c_n[None, :, :])


# ----------------------------------------------------------------------------
# Deterministic synthetic parameters + pure-JAX reference
# ----------------------------------------------------------------------------
def init_params(input_dim, output_dim, key):
    F = 64 * input_dim * input_dim
    ks = jax.random.split(key, 11)
    r = lambda k, shape, scale: scale * jax.random.normal(k, shape, jnp.float32)
    return dict(
        input_dim=input_dim, output_dim=output_dim,
        conv1_w=r(ks[0], (5, 5, 1, 32), 0.10),      # HWIO
        conv1_b=r(ks[1], (32,), 0.10),
        conv2_w=r(ks[2], (3, 3, 32, 64), 0.05),     # HWIO
        conv2_b=r(ks[3], (64,), 0.05),
        # W_ih rows are laid out against the NHWC-flattened feature order (h, w, c):
        # equivalent to the PyTorch weight up to a fixed row permutation folded in
        # offline, which removes the NCHW transposes from the forward pass.
        w_ih=r(ks[4], (F, 4 * HID), 0.02),
        w_hh=r(ks[5], (HID, 4 * HID), 0.05),
        b_lstm=r(ks[6], (1, 4 * HID), 0.05),        # b_ih + b_hh combined
        adv_w=r(ks[7], (HID, output_dim), 0.05),
        adv_b=r(ks[8], (1, output_dim), 0.05),
        val_w=r(ks[9], (HID, 1), 0.05),
        val_b=r(ks[10], (1, 1), 0.05),
    )


def reference_forward(params, state, B, T, hidden_state, cell_state):
    D = params["input_dim"]
    x = state.reshape(B * T, D, D, 1)
    y = lax.conv_general_dilated(x, params["conv1_w"], (1, 1), ((2, 2), (2, 2)),
                                 dimension_numbers=("NHWC", "HWIO", "NHWC"))
    y = jnp.maximum(y + params["conv1_b"], 0.0)
    y = lax.conv_general_dilated(y, params["conv2_w"], (1, 1), ((1, 1), (1, 1)),
                                 dimension_numbers=("NHWC", "HWIO", "NHWC"))
    y = jnp.maximum(y + params["conv2_b"], 0.0)
    feat = y.reshape(B, T, -1)                       # NHWC flatten (matches w_ih layout)
    h, c = hidden_state[0], cell_state[0]
    for t in range(T):
        gates = feat[:, t, :] @ params["w_ih"] + h @ params["w_hh"] + params["b_lstm"]
        i = jax.nn.sigmoid(gates[:, :HID])
        f = jax.nn.sigmoid(gates[:, HID:2 * HID])
        g = jnp.tanh(gates[:, 2 * HID:3 * HID])
        o = jax.nn.sigmoid(gates[:, 3 * HID:])
        c = f * c + i * g
        h = o * jnp.tanh(c)
    adv = h @ params["adv_w"] + params["adv_b"]
    val = h @ params["val_w"] + params["val_b"]
    q = val + (adv - jnp.mean(adv, axis=1, keepdims=True))
    return q, (h[None], c[None])


if __name__ == "__main__":
    B, T, D, A = 2, 4, 8, 6   # batch, time_step, input_dim (spatial), output_dim

    key = jax.random.PRNGKey(0)
    k1, k2, k3 = jax.random.split(key, 3)
    state = jax.random.normal(k1, (B, T, D, D), jnp.float32)
    hidden_state = 0.1 * jax.random.normal(k2, (1, B, HID), jnp.float32)
    cell_state = 0.1 * jax.random.normal(k3, (1, B, HID), jnp.float32)

    params = init_params(D, A, jax.random.PRNGKey(42))

    q, (h_n, c_n) = dueling_rcnn_forward(params, state, B, T, hidden_state, cell_state)
    jax.block_until_ready((q, h_n, c_n))

    q_r, (h_r, c_r) = reference_forward(params, state, B, T, hidden_state, cell_state)
    assert q.shape == (B, A) and h_n.shape == (1, B, HID) and c_n.shape == (1, B, HID)
    # Tolerance covers the bf16-operand gate GEMM (f32 accumulation); everything
    # else is f32 end to end.
    assert jnp.allclose(q, q_r, atol=5e-2, rtol=5e-2), float(jnp.max(jnp.abs(q - q_r)))
    assert jnp.allclose(h_n, h_r, atol=5e-2, rtol=5e-2), float(jnp.max(jnp.abs(h_n - h_r)))
    assert jnp.allclose(c_n, c_r, atol=5e-2, rtol=5e-2), float(jnp.max(jnp.abs(c_n - c_r)))

    print("KERNEL_OK")
</pallas_src>

<mosaic_0001>
module attributes {stable_mosaic.version = 11 : i64} {
  func.func @_fused_conv_kernel(%arg0: i32, %arg1: memref<8x64x25xf32, #tpu.memory_space<vmem>>, %arg2: memref<25x32xf32, #tpu.memory_space<vmem>>, %arg3: memref<1x32xf32, #tpu.memory_space<vmem>>, %arg4: memref<288x64xf32, #tpu.memory_space<vmem>>, %arg5: memref<1x64xf32, #tpu.memory_space<vmem>>, %arg6: memref<8x64x64xf32, #tpu.memory_space<vmem>>, %arg7: memref<8x10x10x32xf32, #tpu.memory_space<vmem>>) attributes {dimension_semantics = [#tpu.dimension_semantics<parallel>], iteration_bounds = array<i64: 1>, scalar_prefetch = 0 : i64, scratch_operands = 1 : i64, tpu.core_type = #tpu.core_type<tc>, window_params = [{transform_indices = @transform_0, window_bounds = array<i64: 8, 64, 25>}, {pipeline_mode = #tpu.pipeline_mode<synchronous>, transform_indices = @transform_1, window_bounds = array<i64: 25, 32>}, {pipeline_mode = #tpu.pipeline_mode<synchronous>, transform_indices = @transform_2, window_bounds = array<i64: 1, 32>}, {pipeline_mode = #tpu.pipeline_mode<synchronous>, transform_indices = @transform_3, window_bounds = array<i64: 288, 64>}, {pipeline_mode = #tpu.pipeline_mode<synchronous>, transform_indices = @transform_4, window_bounds = array<i64: 1, 64>}, {transform_indices = @transform_5, window_bounds = array<i64: 8, 64, 64>}]} {
    %c0 = arith.constant 0 : index
    %c0_0 = arith.constant 0 : index
    %c0_1 = arith.constant 0 : index
    %0 = vector.load %arg1[%c0, %c0_0, %c0_1] : memref<8x64x25xf32, #tpu.memory_space<vmem>>, vector<8x64x25xf32>
    %1 = vector.shape_cast %0 : vector<8x64x25xf32> to vector<512x25xf32>
    %c0_2 = arith.constant 0 : index
    %c0_3 = arith.constant 0 : index
    %2 = vector.load %arg2[%c0_2, %c0_3] : memref<25x32xf32, #tpu.memory_space<vmem>>, vector<25x32xf32>
    %cst = arith.constant dense<0.000000e+00> : vector<512x32xf32>
    %3 = tpu.matmul %1, %2, %cst {dimension_numbers = #tpu.dot_dimension_numbers<[1], [0], [0], [1], [0, 0, 1, 1], [], []>} : vector<512x25xf32>, vector<25x32xf32>, vector<512x32xf32> -> vector<512x32xf32>
    %c0_4 = arith.constant 0 : index
    %c0_5 = arith.constant 0 : index
    %4 = vector.load %arg3[%c0_4, %c0_5] : memref<1x32xf32, #tpu.memory_space<vmem>>, vector<1x32xf32>
    %5 = vector.broadcast %4 : vector<1x32xf32> to vector<512x32xf32>
    %6 = arith.addf %3, %5 : vector<512x32xf32>
    %cst_6 = arith.constant 0.000000e+00 : f32
    %7 = vector.broadcast %cst_6 : f32 to vector<512x32xf32>
    %8 = arith.maximumf %6, %7 : vector<512x32xf32>
    %cst_7 = arith.constant 0.000000e+00 : f32
    %9 = vector.broadcast %cst_7 : f32 to vector<8x10x10x32xf32>
    %c0_8 = arith.constant 0 : index
    %c0_9 = arith.constant 0 : index
    %c0_10 = arith.constant 0 : index
    %c0_11 = arith.constant 0 : index
    %10 = vector.load %arg7[%c0_8, %c0_9, %c0_10, %c0_11] : memref<8x10x10x32xf32, #tpu.memory_space<vmem>>, vector<8x10x10x32xf32>
    tpu.vector_store %arg7[%c0_8, %c0_9, %c0_10, %c0_11], %9 {strides = array<i32>} : memref<8x10x10x32xf32, #tpu.memory_space<vmem>>, vector<8x10x10x32xf32>,
    %11 = vector.shape_cast %8 : vector<512x32xf32> to vector<8x8x8x32xf32>
    %c0_12 = arith.constant 0 : index
    %c1 = arith.constant 1 : index
    %c1_13 = arith.constant 1 : index
    %c0_14 = arith.constant 0 : index
    %12 = vector.load %arg7[%c0_12, %c1, %c1_13, %c0_14] : memref<8x10x10x32xf32, #tpu.memory_space<vmem>>, vector<8x8x8x32xf32>
    tpu.vector_store %arg7[%c0_12, %c1, %c1_13, %c0_14], %11 {strides = array<i32>} : memref<8x10x10x32xf32, #tpu.memory_space<vmem>>, vector<8x8x8x32xf32>,
    %cst_15 = arith.constant 0.000000e+00 : f32
    %13 = vector.broadcast %cst_15 : f32 to vector<512x64xf32>
    %c0_16 = arith.constant 0 : index
    %c0_17 = arith.constant 0 : index
    %c0_18 = arith.constant 0 : index
    %c0_19 = arith.constant 0 : index
    %14 = vector.load %arg7[%c0_16, %c0_17, %c0_18, %c0_19] : memref<8x10x10x32xf32, #tpu.memory_space<vmem>>, vector<8x8x8x32xf32>
    %15 = vector.shape_cast %14 : vector<8x8x8x32xf32> to vector<512x32xf32>
    %c0_20 = arith.constant 0 : index
    %c0_21 = arith.constant 0 : index
    %16 = vector.load %arg4[%c0_20, %c0_21] : memref<288x64xf32, #tpu.memory_space<vmem>>, vector<32x64xf32>
    %cst_22 = arith.constant dense<0.000000e+00> : vector<512x64xf32>
    %17 = tpu.matmul %15, %16, %cst_22 {dimension_numbers = #tpu.dot_dimension_numbers<[1], [0], [0], [1], [0, 0, 1, 1], [], []>} : vector<512x32xf32>, vector<32x64xf32>, vector<512x64xf32> -> vector<512x64xf32>
    %18 = arith.addf %13, %17 : vector<512x64xf32>
    %c0_23 = arith.constant 0 : index
    %c0_24 = arith.constant 0 : index
    %c1_25 = arith.constant 1 : index
    %c0_26 = arith.constant 0 : index
    %19 = vector.load %arg7[%c0_23, %c0_24, %c1_25, %c0_26] : memref<8x10x10x32xf32, #tpu.memory_space<vmem>>, vector<8x8x8x32xf32>
    %20 = vector.shape_cast %19 : vector<8x8x8x32xf32> to vector<512x32xf32>
    %c32 = arith.constant 32 : index
    %c0_27 = arith.constant 0 : index
    %21 = vector.load %arg4[%c32, %c0_27] : memref<288x64xf32, #tpu.memory_space<vmem>>, vector<32x64xf32>
    %cst_28 = arith.constant dense<0.000000e+00> : vector<512x64xf32>
    %22 = tpu.matmul %20, %21, %cst_28 {dimension_numbers = #tpu.dot_dimension_numbers<[1], [0], [0], [1], [0, 0, 1, 1], [], []>} : vector<512x32xf32>, vector<32x64xf32>, vector<512x64xf32> -> vector<512x64xf32>
    %23 = arith.addf %18, %22 : vector<512x64xf32>
    %c0_29 = arith.constant 0 : index
    %c0_30 = arith.constant 0 : index
    %c2 = arith.constant 2 : index
    %c0_31 = arith.constant 0 : index
    %24 = vector.load %arg7[%c0_29, %c0_30, %c2, %c0_31] : memref<8x10x10x32xf32, #tpu.memory_space<vmem>>, vector<8x8x8x32xf32>
    %25 = vector.shape_cast %24 : vector<8x8x8x32xf32> to vector<512x32xf32>
    %c64 = arith.constant 64 : index
    %c0_32 = arith.constant 0 : index
    %26 = vector.load %arg4[%c64, %c0_32] : memref<288x64xf32, #tpu.memory_space<vmem>>, vector<32x64xf32>
    %cst_33 = arith.constant dense<0.000000e+00> : vector<512x64xf32>
    %27 = tpu.matmul %25, %26, %cst_33 {dimension_numbers = #tpu.dot_dimension_numbers<[1], [0], [0], [1], [0, 0, 1, 1], [], []>} : vector<512x32xf32>, vector<32x64xf32>, vector<512x64xf32> -> vector<512x64xf32>
    %28 = arith.addf %23, %27 : vector<512x64xf32>
    %c0_34 = arith.constant 0 : index
    %c1_35 = arith.constant 1 : index
    %c0_36 = arith.constant 0 : index
    %c0_37 = arith.constant 0 : index
    %29 = vector.load %arg7[%c0_34, %c1_35, %c0_36, %c0_37] : memref<8x10x10x32xf32, #tpu.memory_space<vmem>>, vector<8x8x8x32xf32>
    %30 = vector.shape_cast %29 : vector<8x8x8x32xf32> to vector<512x32xf32>
    %c96 = arith.constant 96 : index
    %c0_38 = arith.constant 0 : index
    %31 = vector.load %arg4[%c96, %c0_38] : memref<288x64xf32, #tpu.memory_space<vmem>>, vector<32x64xf32>
    %cst_39 = arith.constant dense<0.000000e+00> : vector<512x64xf32>
    %32 = tpu.matmul %30, %31, %cst_39 {dimension_numbers = #tpu.dot_dimension_numbers<[1], [0], [0], [1], [0, 0, 1, 1], [], []>} : vector<512x32xf32>, vector<32x64xf32>, vector<512x64xf32> -> vector<512x64xf32>
    %33 = arith.addf %28, %32 : vector<512x64xf32>
    %c0_40 = arith.constant 0 : index
    %c1_41 = arith.constant 1 : index
    %c1_42 = arith.constant 1 : index
    %c0_43 = arith.constant 0 : index
    %34 = vector.load %arg7[%c0_40, %c1_41, %c1_42, %c0_43] : memref<8x10x10x32xf32, #tpu.memory_space<vmem>>, vector<8x8x8x32xf32>
    %35 = vector.shape_cast %34 : vector<8x8x8x32xf32> to vector<512x32xf32>
    %c128 = arith.constant 128 : index
    %c0_44 = arith.constant 0 : index
    %36 = vector.load %arg4[%c128, %c0_44] : memref<288x64xf32, #tpu.memory_space<vmem>>, vector<32x64xf32>
    %cst_45 = arith.constant dense<0.000000e+00> : vector<512x64xf32>
    %37 = tpu.matmul %35, %36, %cst_45 {dimension_numbers = #tpu.dot_dimension_numbers<[1], [0], [0], [1], [0, 0, 1, 1], [], []>} : vector<512x32xf32>, vector<32x64xf32>, vector<512x64xf32> -> vector<512x64xf32>
    %38 = arith.addf %33, %37 : vector<512x64xf32>
    %c0_46 = arith.constant 0 : index
    %c1_47 = arith.constant 1 : index
    %c2_48 = arith.constant 2 : index
    %c0_49 = arith.constant 0 : index
    %39 = vector.load %arg7[%c0_46, %c1_47, %c2_48, %c0_49] : memref<8x10x10x32xf32, #tpu.memory_space<vmem>>, vector<8x8x8x32xf32>
    %40 = vector.shape_cast %39 : vector<8x8x8x32xf32> to vector<512x32xf32>
    %c160 = arith.constant 160 : index
    %c0_50 = arith.constant 0 : index
    %41 = vector.load %arg4[%c160, %c0_50] : memref<288x64xf32, #tpu.memory_space<vmem>>, vector<32x64xf32>
    %cst_51 = arith.constant dense<0.000000e+00> : vector<512x64xf32>
    %42 = tpu.matmul %40, %41, %cst_51 {dimension_numbers = #tpu.dot_dimension_numbers<[1], [0], [0], [1], [0, 0, 1, 1], [], []>} : vector<512x32xf32>, vector<32x64xf32>, vector<512x64xf32> -> vector<512x64xf32>
    %43 = arith.addf %38, %42 : vector<512x64xf32>
    %c0_52 = arith.constant 0 : index
    %c2_53 = arith.constant 2 : index
    %c0_54 = arith.constant 0 : index
    %c0_55 = arith.constant 0 : index
    %44 = vector.load %arg7[%c0_52, %c2_53, %c0_54, %c0_55] : memref<8x10x10x32xf32, #tpu.memory_space<vmem>>, vector<8x8x8x32xf32>
    %45 = vector.shape_cast %44 : vector<8x8x8x32xf32> to vector<512x32xf32>
    %c192 = arith.constant 192 : index
    %c0_56 = arith.constant 0 : index
    %46 = vector.load %arg4[%c192, %c0_56] : memref<288x64xf32, #tpu.memory_space<vmem>>, vector<32x64xf32>
    %cst_57 = arith.constant dense<0.000000e+00> : vector<512x64xf32>
    %47 = tpu.matmul %45, %46, %cst_57 {dimension_numbers = #tpu.dot_dimension_numbers<[1], [0], [0], [1], [0, 0, 1, 1], [], []>} : vector<512x32xf32>, vector<32x64xf32>, vector<512x64xf32> -> vector<512x64xf32>
    %48 = arith.addf %43, %47 : vector<512x64xf32>
    %c0_58 = arith.constant 0 : index
    %c2_59 = arith.constant 2 : index
    %c1_60 = arith.constant 1 : index
    %c0_61 = arith.constant 0 : index
    %49 = vector.load %arg7[%c0_58, %c2_59, %c1_60, %c0_61] : memref<8x10x10x32xf32, #tpu.memory_space<vmem>>, vector<8x8x8x32xf32>
    %50 = vector.shape_cast %49 : vector<8x8x8x32xf32> to vector<512x32xf32>
    %c224 = arith.constant 224 : index
    %c0_62 = arith.constant 0 : index
    %51 = vector.load %arg4[%c224, %c0_62] : memref<288x64xf32, #tpu.memory_space<vmem>>, vector<32x64xf32>
    %cst_63 = arith.constant dense<0.000000e+00> : vector<512x64xf32>
    %52 = tpu.matmul %50, %51, %cst_63 {dimension_numbers = #tpu.dot_dimension_numbers<[1], [0], [0], [1], [0, 0, 1, 1], [], []>} : vector<512x32xf32>, vector<32x64xf32>, vector<512x64xf32> -> vector<512x64xf32>
    %53 = arith.addf %48, %52 : vector<512x64xf32>
    %c0_64 = arith.constant 0 : index
    %c2_65 = arith.constant 2 : index
    %c2_66 = arith.constant 2 : index
    %c0_67 = arith.constant 0 : index
    %54 = vector.load %arg7[%c0_64, %c2_65, %c2_66, %c0_67] : memref<8x10x10x32xf32, #tpu.memory_space<vmem>>, vector<8x8x8x32xf32>
    %55 = vector.shape_cast %54 : vector<8x8x8x32xf32> to vector<512x32xf32>
    %c256 = arith.constant 256 : index
    %c0_68 = arith.constant 0 : index
    %56 = vector.load %arg4[%c256, %c0_68] : memref<288x64xf32, #tpu.memory_space<vmem>>, vector<32x64xf32>
    %cst_69 = arith.constant dense<0.000000e+00> : vector<512x64xf32>
    %57 = tpu.matmul %55, %56, %cst_69 {dimension_numbers = #tpu.dot_dimension_numbers<[1], [0], [0], [1], [0, 0, 1, 1], [], []>} : vector<512x32xf32>, vector<32x64xf32>, vector<512x64xf32> -> vector<512x64xf32>
    %58 = arith.addf %53, %57 : vector<512x64xf32>
    %c0_70 = arith.constant 0 : index
    %c0_71 = arith.constant 0 : index
    %59 = vector.load %arg5[%c0_70, %c0_71] : memref<1x64xf32, #tpu.memory_space<vmem>>, vector<1x64xf32>
    %60 = vector.broadcast %59 : vector<1x64xf32> to vector<512x64xf32>
    %61 = arith.addf %58, %60 : vector<512x64xf32>
    %cst_72 = arith.constant 0.000000e+00 : f32
    %62 = vector.broadcast %cst_72 : f32 to vector<512x64xf32>
    %63 = arith.maximumf %61, %62 : vector<512x64xf32>
    %64 = vector.shape_cast %63 : vector<512x64xf32> to vector<8x64x64xf32>
    %c0_73 = arith.constant 0 : index
    %c0_74 = arith.constant 0 : index
    %c0_75 = arith.constant 0 : index
    %65 = vector.load %arg6[%c0_73, %c0_74, %c0_75] : memref<8x64x64xf32, #tpu.memory_space<vmem>>, vector<8x64x64xf32>
    tpu.vector_store %arg6[%c0_73, %c0_74, %c0_75], %64 {strides = array<i32>} : memref<8x64x64xf32, #tpu.memory_space<vmem>>, vector<8x64x64xf32>,
    return
  }
  func.func @transform_0(%arg0: i32) -> (i32, i32, i32) {
    %c0_i32 = arith.constant 0 : i32
    %c0_i32_0 = arith.constant 0 : i32
    %c0_i32_1 = arith.constant 0 : i32
    return %arg0, %c0_i32, %c0_i32_0 : i32, i32, i32
  }
  func.func @transform_1(%arg0: i32) -> (i32, i32) {
    %c0_i32 = arith.constant 0 : i32
    %c0_i32_0 = arith.constant 0 : i32
    %c0_i32_1 = arith.constant 0 : i32
    return %c0_i32, %c0_i32_0 : i32, i32
  }
  func.func @transform_2(%arg0: i32) -> (i32, i32) {
    %c0_i32 = arith.constant 0 : i32
    %c0_i32_0 = arith.constant 0 : i32
    %c0_i32_1 = arith.constant 0 : i32
    return %c0_i32, %c0_i32_0 : i32, i32
  }
  func.func @transform_3(%arg0: i32) -> (i32, i32) {
    %c0_i32 = arith.constant 0 : i32
    %c0_i32_0 = arith.constant 0 : i32
    %c0_i32_1 = arith.constant 0 : i32
    return %c0_i32, %c0_i32_0 : i32, i32
  }
  func.func @transform_4(%arg0: i32) -> (i32, i32) {
    %c0_i32 = arith.constant 0 : i32
    %c0_i32_0 = arith.constant 0 : i32
    %c0_i32_1 = arith.constant 0 : i32
    return %c0_i32, %c0_i32_0 : i32, i32
  }
  func.func @transform_5(%arg0: i32) -> (i32, i32, i32) {
    %c0_i32 = arith.constant 0 : i32
    %c0_i32_0 = arith.constant 0 : i32
    %c0_i32_1 = arith.constant 0 : i32
    return %arg0, %c0_i32, %c0_i32_0 : i32, i32, i32
  }
}

</mosaic_0001>

<bundles_post_ra>
// kernel: tpu_custom_call.1
= control target key start
LH: loop header
LB: loop body
LE: loop exit
PB: predicated region body
PF: predicated region fallthrough
CT: control target
= control target key end

     0   :  { %vm289_vm0 = vcmask 1040384   ;;  %vm96_vm1 = vcmask 203776   ;;  %s12852_s0 = inlined_call_operand.vmem [shape: f32[8,64,25], index: 0, kind: input, shape index: {}]   ;;  %s12853_s1 = inlined_call_operand.vmem [shape: f32[25,32], index: 1, kind: input, shape index: {}]   ;;  %s12854_s2 = inlined_call_operand.vmem [shape: f32[1,32], index: 2, kind: input, shape index: {}]   ;;  %s12855_s3 = inlined_call_operand.vmem [shape: f32[288,64], index: 3, kind: input, shape index: {}]   ;;  %s12856_s4 = inlined_call_operand.vmem [shape: f32[1,64], index: 4, kind: input, shape index: {}]   ;;  %s12857_s5 = inlined_call_operand.hbm [shape: f32[8,64,64], index: 5, kind: output, shape index: {}]  }
   0x1   :  { %v88_v0 = vld [vmem:[%s12853_s1 + $0x18] sm:$0x1]  ;;  %v87_v1 = vld [vmem:[%s12853_s1 + $0x10] sm:$0xff]  ;;  %v21_v2 = vld [vmem:[%s12852_s0] sm:$0xff] }
   0x2   :  { %8762 = vmatprep.subr.msk.mxu0 %vm289_vm0, %v88_v0  ;;  %v86_v3 = vld [vmem:[%s12853_s1 + $0x8] sm:$0xff]  ;;  %8770 = vmatprep.mubr.msk.f32.mxu0 %vm96_vm1, %v21_v2  ;;  %v85_v4 = vld [vmem:[%s12853_s1] sm:$0xff]  ;;  %v23_v6 = vld [vmem:[%s12852_s0 + $0x10] sm:$0xff] }
   0x3   :  { %8763 = vmatpush3.msk.msra.mxu0 %vm289_vm0, %v88_v0  ;;  %v22_v5 = vld [vmem:[%s12852_s0 + $0x8] sm:$0xff]  ;;  %v24_v7 = vld [vmem:[%s12852_s0 + $0x18] sm:$0xff]  ;;  %v25_v8 = vld [vmem:[%s12852_s0 + $0x20] sm:$0xff] }
   0x4   :  { %8764 = vmatprep.subr.mxu0 %v87_v1  ;;  %v26_v9 = vld [vmem:[%s12852_s0 + $0x28] sm:$0xff]  ;;  %v27_v10 = vld [vmem:[%s12852_s0 + $0x30] sm:$0xff]  ;;  %v28_v11 = vld [vmem:[%s12852_s0 + $0x38] sm:$0xff] }
   0x5   :  { %8765 = vmatpush3.msra.mxu0 %v87_v1  ;;  %v29_v12 = vld [vmem:[%s12852_s0 + $0x40] sm:$0xff]  ;;  %v30_v13 = vld [vmem:[%s12852_s0 + $0x48] sm:$0xff] }
   0x6   :  { %8766 = vmatprep.subr.mxu0 %v86_v3 }
   0x7   :  { %8767 = vmatpush3.msra.mxu0 %v86_v3 }
   0x8   :  { %8768 = vmatprep.subr.mxu0 %v85_v4 }
   0x9   :  { %8769 = vmatpush3.msra.mxu0 %v85_v4 }
   0xa   :  { %8771 = vmatmul.mubr.msk.f32.vlgmr.msra.gmra.mxu0 %vm96_vm1, %v22_v5 }
   0xb   :  { %8773 = vmatprep.mubr.msk.f32.mxu0 %vm96_vm1, %v23_v6 }
   0xe   :  { %8774 = vmatmul.mubr.msk.f32.gmra.mxu0 %vm96_vm1, %v24_v7 }
   0xf   :  { %8776 = vmatprep.mubr.msk.f32.mxu0 %vm96_vm1, %v25_v8 }
  0x12   :  { %8777 = vmatmul.mubr.msk.f32.gmra.mxu0 %vm96_vm1, %v26_v9 }
  0x13   :  { %8779 = vmatprep.mubr.msk.f32.mxu0 %vm96_vm1, %v27_v10 }
  0x16   :  { %8780 = vmatmul.mubr.msk.f32.gmra.mxu0 %vm96_vm1, %v28_v11 }
  0x17   :  { %8782 = vmatprep.mubr.msk.f32.mxu0 %vm96_vm1, %v29_v12 }
  0x18   :  { %10 = vsyncpa [#allocation4], 0  ;;  %v31_v14 = vld [vmem:[%s12852_s0 + $0x50] sm:$0xff]  ;;  %v32_v15 = vld [vmem:[%s12852_s0 + $0x58] sm:$0xff]  ;;  %vm742_vm2 = vcmask 261120   ;;  %vm744_vm3 = vcmask 254976  }
  0x19   :  { %v33_v16 = vld [vmem:[%s12852_s0 + $0x60] sm:$0xff]  ;;  %v34_v17 = vld [vmem:[%s12852_s0 + $0x68] sm:$0xff]  ;;  %v35_v18 = vld [vmem:[%s12852_s0 + $0x70] sm:$0xff]  ;;  %v9828_v41 = vmov 0.0   ;;  %vm7358_vm4 = vcmask 523264  }
  0x1a   :  { %8783 = vmatmul.mubr.msk.f32.gmra.mxu0 %vm96_vm1, %v30_v13  ;;  %v36_v19 = vld [vmem:[%s12852_s0 + $0x78] sm:$0xff]  ;;  %v37_v20 = vld [vmem:[%s12852_s0 + $0x80] sm:$0xff]  ;;  %v38_v21 = vld [vmem:[%s12852_s0 + $0x88] sm:$0xff]  ;;  %748 = vst.msk [vmem:[#allocation2 + $0x20] sm:$0xff] %vm742_vm2, %v9828_v41 }
  0x1b   :  { %8785 = vmatprep.mubr.msk.f32.mxu0 %vm96_vm1, %v31_v14  ;;  %v39_v22 = vld [vmem:[%s12852_s0 + $0x90] sm:$0xff]  ;;  %v40_v23 = vld [vmem:[%s12852_s0 + $0x98] sm:$0xff]  ;;  %v41_v24 = vld [vmem:[%s12852_s0 + $0xa0] sm:$0xff]  ;;  %749 = vst.msk [vmem:[#allocation2 + $0x28] sm:$0x3] %vm744_vm3, %v9828_v41 }
  0x1c   :  { %v42_v25 = vld [vmem:[%s12852_s0 + $0xa8] sm:$0xff]  ;;  %v43_v26 = vld [vmem:[%s12852_s0 + $0xb0] sm:$0xff]  ;;  %v44_v27 = vld [vmem:[%s12852_s0 + $0xb8] sm:$0xff]  ;;  %743 = vst.msk [vmem:[#allocation2] sm:$0xff] %vm742_vm2, %v9828_v41 }
  0x1d   :  { %v45_v28 = vld [vmem:[%s12852_s0 + $0xc0] sm:$0xff]  ;;  %v46_v29 = vld [vmem:[%s12852_s0 + $0xc8] sm:$0xff]  ;;  %v47_v30 = vld [vmem:[%s12852_s0 + $0xd0] sm:$0xff]  ;;  %745 = vst.msk [vmem:[#allocation2 + $0x8] sm:$0x3] %vm744_vm3, %v9828_v41 }
  0x1e   :  { %8786 = vmatmul.mubr.msk.f32.gmra.mxu0 %vm96_vm1, %v32_v15  ;;  %v48_v31 = vld [vmem:[%s12852_s0 + $0xd8] sm:$0xff]  ;;  %v49_v32 = vld [vmem:[%s12852_s0 + $0xe0] sm:$0xff]  ;;  %v50_v33 = vld [vmem:[%s12852_s0 + $0xe8] sm:$0xff]  ;;  %746 = vst.msk [vmem:[#allocation2 + $0x10] sm:$0xff] %vm742_vm2, %v9828_v41 }
  0x1f   :  { %8788 = vmatprep.mubr.msk.f32.mxu0 %vm96_vm1, %v33_v16  ;;  %v51_v34 = vld [vmem:[%s12852_s0 + $0xf0] sm:$0xff]  ;;  %v52_v35 = vld [vmem:[%s12852_s0 + $0xf8] sm:$0xff]  ;;  %v53_v36 = vld [vmem:[%s12852_s0 + $0x100] sm:$0xff]  ;;  %747 = vst.msk [vmem:[#allocation2 + $0x18] sm:$0x3] %vm744_vm3, %v9828_v41 }
  0x20   :  { %v54_v37 = vld [vmem:[%s12852_s0 + $0x108] sm:$0xff]  ;;  %v55_v38 = vld [vmem:[%s12852_s0 + $0x110] sm:$0xff]  ;;  %v56_v39 = vld [vmem:[%s12852_s0 + $0x118] sm:$0xff]  ;;  %750 = vst.msk [vmem:[#allocation2 + $0x30] sm:$0xff] %vm742_vm2, %v9828_v41 }
  0x21   :  { %v10020_v40 = vld [vmem:[%s12852_s0 + $0x120] sm:$0xff]  ;;  %751 = vst.msk [vmem:[#allocation2 + $0x38] sm:$0x3] %vm744_vm3, %v9828_v41  ;;  %753 = vst.msk [vmem:[#allocation2 + $0x48] sm:$0x3] %vm744_vm3, %v9828_v41  ;;  %v58_v42 = vld [vmem:[%s12852_s0 + $0x128] sm:$0xff] }
  0x22   :  { %8789 = vmatmul.mubr.msk.f32.gmra.mxu0 %vm96_vm1, %v34_v17  ;;  %752 = vst.msk [vmem:[#allocation2 + $0x40] sm:$0xff] %vm742_vm2, %v9828_v41  ;;  %754 = vst.msk [vmem:[#allocation2 + $0x50] sm:$0xff] %vm742_vm2, %v9828_v41  ;;  %v59_v43 = vld [vmem:[%s12852_s0 + $0x130] sm:$0xff]  ;;  %v1104_v44 = vld [vmem:[%s12855_s3 + $0x38] sm:$0xff] }
  0x23   :  { %8791 = vmatprep.mubr.msk.f32.mxu0 %vm96_vm1, %v35_v18  ;;  %755 = vst.msk [vmem:[#allocation2 + $0x58] sm:$0x3] %vm744_vm3, %v9828_v41  ;;  %757 = vst.msk [vmem:[#allocation2 + $0x68] sm:$0x3] %vm744_vm3, %v9828_v41  ;;  %v1036_v45 = vld [vmem:[%s12855_s3 + $0x18] sm:$0xff]  ;;  %8866 = vmatprep.subr.mxu1 %v1104_v44  ;;  %v1103_v46 = vld [vmem:[%s12855_s3 + $0x30] sm:$0xff] }
  0x24   :  { %756 = vst.msk [vmem:[#allocation2 + $0x60] sm:$0xff] %vm742_vm2, %v9828_v41  ;;  %758 = vst.msk [vmem:[#allocation2 + $0x70] sm:$0xff] %vm742_vm2, %v9828_v41  ;;  %8970 = vmatprep.subr.mxu0 %v1036_v45  ;;  %8867 = vmatpush3.msra.mxu1 %v1104_v44  ;;  %v1035_v47 = vld [vmem:[%s12855_s3 + $0x10] sm:$0xff]  ;;  %v60_v48 = vld [vmem:[%s12852_s0 + $0x138] sm:$0xff] }
  0x25   :  { %759 = vst.msk [vmem:[#allocation2 + $0x78] sm:$0x3] %vm744_vm3, %v9828_v41  ;;  %761 = vst.msk [vmem:[#allocation2 + $0x88] sm:$0x3] %vm744_vm3, %v9828_v41  ;;  %8868 = vmatprep.subr.mxu1 %v1103_v46  ;;  %v61_v49 = vld [vmem:[%s12852_s0 + $0x140] sm:$0xff]  ;;  %8971 = vmatpush3.msra.mxu0 %v1036_v45  ;;  %v1102_v50 = vld [vmem:[%s12855_s3 + $0x28] sm:$0xff] }
  0x26   :  { %8792 = vmatmul.mubr.msk.f32.gmra.mxu0 %vm96_vm1, %v36_v19  ;;  %760 = vst.msk [vmem:[#allocation2 + $0x80] sm:$0xff] %vm742_vm2, %v9828_v41  ;;  %762 = vst.msk [vmem:[#allocation2 + $0x90] sm:$0xff] %vm742_vm2, %v9828_v41  ;;  %8869 = vmatpush3.msra.mxu1 %v1103_v46  ;;  %v1034_v51 = vld [vmem:[%s12855_s3 + $0x8] sm:$0xff]  ;;  %v1101_v52 = vld [vmem:[%s12855_s3 + $0x20] sm:$0xff] }
  0x27   :  { %8794 = vmatprep.mubr.msk.f32.mxu0 %vm96_vm1, %v37_v20  ;;  %763 = vst.msk [vmem:[#allocation2 + $0x98] sm:$0x3] %vm744_vm3, %v9828_v41  ;;  %765 = vst.msk [vmem:[#allocation2 + $0xa8] sm:$0x3] %vm744_vm3, %v9828_v41  ;;  %8972 = vmatprep.subr.mxu0 %v1035_v47  ;;  %v62_v53 = vld [vmem:[%s12852_s0 + $0x148] sm:$0xff]  ;;  %v1033_v54 = vld [vmem:[%s12855_s3] sm:$0xff] }
  0x28   :  { %764 = vst.msk [vmem:[#allocation2 + $0xa0] sm:$0xff] %vm742_vm2, %v9828_v41  ;;  %766 = vst.msk [vmem:[#allocation2 + $0xb0] sm:$0xff] %vm742_vm2, %v9828_v41  ;;  %8870 = vmatprep.subr.mxu1 %v1102_v50  ;;  %8973 = vmatpush3.msra.mxu0 %v1035_v47  ;;  %v63_v55 = vld [vmem:[%s12852_s0 + $0x150] sm:$0xff]  ;;  %v1037_v56 = vld [vmem:[#allocation2 + $0x1] sm:$0xff] }
  0x29   :  { %767 = vst.msk [vmem:[#allocation2 + $0xb8] sm:$0x3] %vm744_vm3, %v9828_v41  ;;  %769 = vst.msk [vmem:[#allocation2 + $0xc8] sm:$0x3] %vm744_vm3, %v9828_v41  ;;  %8871 = vmatpush3.msra.mxu1 %v1102_v50  ;;  %8974 = vmatprep.subr.mxu0 %v1034_v51  ;;  %v64_v57 = vld [vmem:[%s12852_s0 + $0x158] sm:$0xff]  ;;  %v65_v58 = vld [vmem:[%s12852_s0 + $0x160] sm:$0xff] }
  0x2a   :  { %8795 = vmatmul.mubr.msk.f32.gmra.mxu0 %vm96_vm1, %v38_v21  ;;  %768 = vst.msk [vmem:[#allocation2 + $0xc0] sm:$0xff] %vm742_vm2, %v9828_v41  ;;  %770 = vst.msk [vmem:[#allocation2 + $0xd0] sm:$0xff] %vm742_vm2, %v9828_v41  ;;  %8872 = vmatprep.subr.mxu1 %v1101_v52  ;;  %v10403_v59 = vld [vmem:[%s12855_s3 + $0x58] sm:$0xff]  ;;  %v66_v60 = vld [vmem:[%s12852_s0 + $0x168] sm:$0xff] }
  0x2b   :  { %8797 = vmatprep.mubr.msk.f32.mxu0 %vm96_vm1, %v39_v22  ;;  %771 = vst.msk [vmem:[#allocation2 + $0xd8] sm:$0x3] %vm744_vm3, %v9828_v41  ;;  %773 = vst.msk [vmem:[#allocation2 + $0xe8] sm:$0x3] %vm744_vm3, %v9828_v41  ;;  %8975 = vmatpush3.msra.mxu0 %v1034_v51  ;;  %v67_v61 = vld [vmem:[%s12852_s0 + $0x170] sm:$0xff]  ;;  %v68_v62 = vld [vmem:[%s12852_s0 + $0x178] sm:$0xff] }
  0x2c   :  { %772 = vst.msk [vmem:[#allocation2 + $0xe0] sm:$0xff] %vm742_vm2, %v9828_v41  ;;  %774 = vst.msk [vmem:[#allocation2 + $0xf0] sm:$0xff] %vm742_vm2, %v9828_v41  ;;  %8873 = vmatpush3.msra.mxu1 %v1101_v52  ;;  %8976 = vmatprep.subr.mxu0 %v1033_v54  ;;  %v69_v63 = vld [vmem:[%s12852_s0 + $0x180] sm:$0xff]  ;;  %v70_v0 = vld [vmem:[%s12852_s0 + $0x188] sm:$0xff] }
  0x2d   :  { %775 = vst.msk [vmem:[#allocation2 + $0xf8] sm:$0x3] %vm744_vm3, %v9828_v41  ;;  %777 = vst.msk [vmem:[#allocation2 + $0x108] sm:$0x3] %vm744_vm3, %v9828_v41  ;;  %8874 = vmatprep.mubr.msk.f32.mxu1 %vm742_vm2, %v1037_v56  ;;  %8977 = vmatpush3.msra.mxu0 %v1033_v54  ;;  %v71_v1 = vld [vmem:[%s12852_s0 + $0x190] sm:$0xff]  ;;  %v72_v2 = vld [vmem:[%s12852_s0 + $0x198] sm:$0xff] }
  0x2e   :  { %8798 = vmatmul.mubr.msk.f32.gmra.mxu0 %vm96_vm1, %v40_v23  ;;  %776 = vst.msk [vmem:[#allocation2 + $0x100] sm:$0xff] %vm742_vm2, %v9828_v41  ;;  %778 = vst.msk [vmem:[#allocation2 + $0x110] sm:$0xff] %vm742_vm2, %v9828_v41  ;;  %9074 = vmatprep.subr.mxu1 %v10403_v59  ;;  %v73_v3 = vld [vmem:[%s12852_s0 + $0x1a0] sm:$0xff]  ;;  %v74_v4 = vld [vmem:[%s12852_s0 + $0x1a8] sm:$0xff] }
  0x2f   :  { %8800 = vmatprep.mubr.msk.f32.mxu0 %vm96_vm1, %v41_v24  ;;  %779 = vst.msk [vmem:[#allocation2 + $0x118] sm:$0x3] %vm744_vm3, %v9828_v41  ;;  %781 = vst.msk [vmem:[#allocation2 + $0x128] sm:$0x3] %vm744_vm3, %v9828_v41  ;;  %v75_v5 = vld [vmem:[%s12852_s0 + $0x1b0] sm:$0xff]  ;;  %v76_v6 = vld [vmem:[%s12852_s0 + $0x1b8] sm:$0xff] }
  0x30   :  { %780 = vst.msk [vmem:[#allocation2 + $0x120] sm:$0xff] %vm742_vm2, %v9828_v41  ;;  %782 = vst.msk [vmem:[#allocation2 + $0x130] sm:$0xff] %vm742_vm2, %v9828_v41  ;;  %v77_v7 = vld [vmem:[%s12852_s0 + $0x1c0] sm:$0xff]  ;;  %v78_v8 = vld [vmem:[%s12852_s0 + $0x1c8] sm:$0xff] }
  0x31   :  { %783 = vst.msk [vmem:[#allocation2 + $0x138] sm:$0x3] %vm744_vm3, %v9828_v41  ;;  %785 = vst.msk [vmem:[#allocation2 + $0x148] sm:$0x3] %vm744_vm3, %v9828_v41  ;;  %v79_v9 = vld [vmem:[%s12852_s0 + $0x1d0] sm:$0xff]  ;;  %v80_v10 = vld [vmem:[%s12852_s0 + $0x1d8] sm:$0xff] }
  0x32   :  { %8801 = vmatmul.mubr.msk.f32.gmra.mxu0 %vm96_vm1, %v42_v25  ;;  %784 = vst.msk [vmem:[#allocation2 + $0x140] sm:$0xff] %vm742_vm2, %v9828_v41  ;;  %786 = vst.msk [vmem:[#allocation2 + $0x150] sm:$0xff] %vm742_vm2, %v9828_v41  ;;  %v81_v11 = vld [vmem:[%s12852_s0 + $0x1e0] sm:$0xff]  ;;  %v82_v12 = vld [vmem:[%s12852_s0 + $0x1e8] sm:$0xff] }
  0x33   :  { %8803 = vmatprep.mubr.msk.f32.mxu0 %vm96_vm1, %v43_v26  ;;  %787 = vst.msk [vmem:[#allocation2 + $0x158] sm:$0x3] %vm744_vm3, %v9828_v41  ;;  %789 = vst.msk [vmem:[#allocation2 + $0x168] sm:$0x3] %vm744_vm3, %v9828_v41  ;;  %v83_v13 = vld [vmem:[%s12852_s0 + $0x1f0] sm:$0xff]  ;;  %v84_v14 = vld [vmem:[%s12852_s0 + $0x1f8] sm:$0xff] }
  0x34   :  { %788 = vst.msk [vmem:[#allocation2 + $0x160] sm:$0xff] %vm742_vm2, %v9828_v41  ;;  %790 = vst.msk [vmem:[#allocation2 + $0x170] sm:$0xff] %vm742_vm2, %v9828_v41  ;;  %v969_v15 = vld [vmem:[#allocation2] sm:$0xff] }
  0x35   :  { %791 = vst.msk [vmem:[#allocation2 + $0x178] sm:$0x3] %vm744_vm3, %v9828_v41  ;;  %793 = vst.msk [vmem:[#allocation2 + $0x188] sm:$0x3] %vm744_vm3, %v9828_v41  ;;  %v10488_v16 = vld [vmem:[%s12854_s2] ss:$0 sm:$0xff] }
  0x36   :  { %8804 = vmatmul.mubr.msk.f32.gmra.mxu0 %vm96_vm1, %v44_v27  ;;  %792 = vst.msk [vmem:[#allocation2 + $0x180] sm:$0xff] %vm742_vm2, %v9828_v41  ;;  %794 = vst.msk [vmem:[#allocation2 + $0x190] sm:$0xff] %vm742_vm2, %v9828_v41 }
  0x37   :  { %8806 = vmatprep.mubr.msk.f32.mxu0 %vm96_vm1, %v45_v28  ;;  %795 = vst.msk [vmem:[#allocation2 + $0x198] sm:$0x3] %vm744_vm3, %v9828_v41  ;;  %797 = vst.msk [vmem:[#allocation2 + $0x1a8] sm:$0x3] %vm744_vm3, %v9828_v41  ;;  %v3035_v28 = vld [vmem:[%s12855_s3 + $0x78] sm:$0xff] }
  0x38   :  { %796 = vst.msk [vmem:[#allocation2 + $0x1a0] sm:$0xff] %vm742_vm2, %v9828_v41  ;;  %798 = vst.msk [vmem:[#allocation2 + $0x1b0] sm:$0xff] %vm742_vm2, %v9828_v41  ;;  %9178 = vmatprep.subr.mxu0 %v3035_v28 }
  0x39   :  { %799 = vst.msk [vmem:[#allocation2 + $0x1b8] sm:$0x3] %vm744_vm3, %v9828_v41  ;;  %801 = vst.msk [vmem:[#allocation2 + $0x1c8] sm:$0x3] %vm744_vm3, %v9828_v41 }
  0x3a   :  { %8807 = vmatmul.mubr.msk.f32.gmra.mxu0 %vm96_vm1, %v46_v29  ;;  %800 = vst.msk [vmem:[#allocation2 + $0x1c0] sm:$0xff] %vm742_vm2, %v9828_v41  ;;  %802 = vst.msk [vmem:[#allocation2 + $0x1d0] sm:$0xff] %vm742_vm2, %v9828_v41 }
  0x3b   :  { %8809 = vmatprep.mubr.msk.f32.mxu0 %vm96_vm1, %v47_v30  ;;  %803 = vst.msk [vmem:[#allocation2 + $0x1d8] sm:$0x3] %vm744_vm3, %v9828_v41  ;;  %805 = vst.msk [vmem:[#allocation2 + $0x1e8] sm:$0x3] %vm744_vm3, %v9828_v41 }
  0x3c   :  { %804 = vst.msk [vmem:[#allocation2 + $0x1e0] sm:$0xff] %vm742_vm2, %v9828_v41  ;;  %806 = vst.msk [vmem:[#allocation2 + $0x1f0] sm:$0xff] %vm742_vm2, %v9828_v41 }
  0x3d   :  { %807 = vst.msk [vmem:[#allocation2 + $0x1f8] sm:$0x3] %vm744_vm3, %v9828_v41  ;;  %809 = vst.msk [vmem:[#allocation2 + $0x208] sm:$0x3] %vm744_vm3, %v9828_v41 }
  0x3e   :  { %8810 = vmatmul.mubr.msk.f32.gmra.mxu0 %vm96_vm1, %v48_v31  ;;  %808 = vst.msk [vmem:[#allocation2 + $0x200] sm:$0xff] %vm742_vm2, %v9828_v41  ;;  %810 = vst.msk [vmem:[#allocation2 + $0x210] sm:$0xff] %vm742_vm2, %v9828_v41 }
  0x3f   :  { %8812 = vmatprep.mubr.msk.f32.mxu0 %vm96_vm1, %v49_v32  ;;  %811 = vst.msk [vmem:[#allocation2 + $0x218] sm:$0x3] %vm744_vm3, %v9828_v41  ;;  %813 = vst.msk [vmem:[#allocation2 + $0x228] sm:$0x3] %vm744_vm3, %v9828_v41 }
  0x40   :  { %812 = vst.msk [vmem:[#allocation2 + $0x220] sm:$0xff] %vm742_vm2, %v9828_v41  ;;  %814 = vst.msk [vmem:[#allocation2 + $0x230] sm:$0xff] %vm742_vm2, %v9828_v41 }
  0x41   :  { %815 = vst.msk [vmem:[#allocation2 + $0x238] sm:$0x3] %vm744_vm3, %v9828_v41  ;;  %817 = vst.msk [vmem:[#allocation2 + $0x248] sm:$0x3] %vm744_vm3, %v9828_v41 }
  0x42   :  { %8813 = vmatmul.mubr.msk.f32.gmra.mxu0 %vm96_vm1, %v50_v33  ;;  %816 = vst.msk [vmem:[#allocation2 + $0x240] sm:$0xff] %vm742_vm2, %v9828_v41  ;;  %818 = vst.msk [vmem:[#allocation2 + $0x250] sm:$0xff] %vm742_vm2, %v9828_v41 }
  0x43   :  { %8815 = vmatprep.mubr.msk.f32.mxu0 %vm96_vm1, %v51_v34  ;;  %819 = vst.msk [vmem:[#allocation2 + $0x258] sm:$0x3] %vm744_vm3, %v9828_v41  ;;  %821 = vst.msk [vmem:[#allocation2 + $0x268] sm:$0x3] %vm744_vm3, %v9828_v41 }
  0x44   :  { %820 = vst.msk [vmem:[#allocation2 + $0x260] sm:$0xff] %vm742_vm2, %v9828_v41  ;;  %822 = vst.msk [vmem:[#allocation2 + $0x270] sm:$0xff] %vm742_vm2, %v9828_v41 }
  0x45   :  { %823 = vst.msk [vmem:[#allocation2 + $0x278] sm:$0x3] %vm744_vm3, %v9828_v41  ;;  %825 = vst.msk [vmem:[#allocation2 + $0x288] sm:$0x3] %vm744_vm3, %v9828_v41 }
  0x46   :  { %8816 = vmatmul.mubr.msk.f32.gmra.mxu0 %vm96_vm1, %v52_v35  ;;  %824 = vst.msk [vmem:[#allocation2 + $0x280] sm:$0xff] %vm742_vm2, %v9828_v41  ;;  %826 = vst.msk [vmem:[#allocation2 + $0x290] sm:$0xff] %vm742_vm2, %v9828_v41 }
  0x47   :  { %8818 = vmatprep.mubr.msk.f32.mxu0 %vm96_vm1, %v53_v36  ;;  %827 = vst.msk [vmem:[#allocation2 + $0x298] sm:$0x3] %vm744_vm3, %v9828_v41  ;;  %829 = vst.msk [vmem:[#allocation2 + $0x2a8] sm:$0x3] %vm744_vm3, %v9828_v41 }
  0x48   :  { %828 = vst.msk [vmem:[#allocation2 + $0x2a0] sm:$0xff] %vm742_vm2, %v9828_v41  ;;  %830 = vst.msk [vmem:[#allocation2 + $0x2b0] sm:$0xff] %vm742_vm2, %v9828_v41 }
  0x49   :  { %831 = vst.msk [vmem:[#allocation2 + $0x2b8] sm:$0x3] %vm744_vm3, %v9828_v41  ;;  %833 = vst.msk [vmem:[#allocation2 + $0x2c8] sm:$0x3] %vm744_vm3, %v9828_v41 }
  0x4a   :  { %8819 = vmatmul.mubr.msk.f32.gmra.mxu0 %vm96_vm1, %v54_v37  ;;  %832 = vst.msk [vmem:[#allocation2 + $0x2c0] sm:$0xff] %vm742_vm2, %v9828_v41  ;;  %834 = vst.msk [vmem:[#allocation2 + $0x2d0] sm:$0xff] %vm742_vm2, %v9828_v41 }
  0x4b   :  { %8821 = vmatprep.mubr.msk.f32.mxu0 %vm96_vm1, %v55_v38  ;;  %835 = vst.msk [vmem:[#allocation2 + $0x2d8] sm:$0x3] %vm744_vm3, %v9828_v41  ;;  %837 = vst.msk [vmem:[#allocation2 + $0x2e8] sm:$0x3] %vm744_vm3, %v9828_v41 }
  0x4c   :  { %836 = vst.msk [vmem:[#allocation2 + $0x2e0] sm:$0xff] %vm742_vm2, %v9828_v41  ;;  %838 = vst.msk [vmem:[#allocation2 + $0x2f0] sm:$0xff] %vm742_vm2, %v9828_v41 }
  0x4d   :  { %839 = vst.msk [vmem:[#allocation2 + $0x2f8] sm:$0x3] %vm744_vm3, %v9828_v41  ;;  %841 = vst.msk [vmem:[#allocation2 + $0x308] sm:$0x3] %vm744_vm3, %v9828_v41 }
  0x4e   :  { %8822 = vmatmul.mubr.msk.f32.gmra.mxu0 %vm96_vm1, %v56_v39  ;;  %840 = vst.msk [vmem:[#allocation2 + $0x300] sm:$0xff] %vm742_vm2, %v9828_v41  ;;  %842 = vst.msk [vmem:[#allocation2 + $0x310] sm:$0xff] %vm742_vm2, %v9828_v41 }
  0x4f   :  { %843 = vst.msk [vmem:[#allocation2 + $0x318] sm:$0x3] %vm744_vm3, %v9828_v41  ;;  %845 = vst.msk [vmem:[#allocation2 + $0x328] sm:$0x3] %vm744_vm3, %v9828_v41  ;;  %8824 = vmatprep.mubr.msk.f32.mxu0 %vm96_vm1, %v10020_v40 }
  0x50   :  { %844 = vst.msk [vmem:[#allocation2 + $0x320] sm:$0xff] %vm742_vm2, %v9828_v41  ;;  %846 = vst.msk [vmem:[#allocation2 + $0x330] sm:$0xff] %vm742_vm2, %v9828_v41 }
  0x51   :  { %847 = vst.msk [vmem:[#allocation2 + $0x338] sm:$0x3] %vm744_vm3, %v9828_v41  ;;  %849 = vst.msk [vmem:[#allocation2 + $0x348] sm:$0x3] %vm744_vm3, %v9828_v41 }
  0x52   :  { %848 = vst.msk [vmem:[#allocation2 + $0x340] sm:$0xff] %vm742_vm2, %v9828_v41  ;;  %850 = vst.msk [vmem:[#allocation2 + $0x350] sm:$0xff] %vm742_vm2, %v9828_v41  ;;  %8825 = vmatmul.mubr.msk.f32.gmra.mxu0 %vm96_vm1, %v58_v42 }
  0x53   :  { %851 = vst.msk [vmem:[#allocation2 + $0x358] sm:$0x3] %vm744_vm3, %v9828_v41  ;;  %853 = vst.msk [vmem:[#allocation2 + $0x368] sm:$0x3] %vm744_vm3, %v9828_v41  ;;  %8827 = vmatprep.mubr.msk.f32.mxu0 %vm96_vm1, %v59_v43 }
  0x54   :  { %852 = vst.msk [vmem:[#allocation2 + $0x360] sm:$0xff] %vm742_vm2, %v9828_v41  ;;  %854 = vst.msk [vmem:[#allocation2 + $0x370] sm:$0xff] %vm742_vm2, %v9828_v41 }
  0x55   :  { %855 = vst.msk [vmem:[#allocation2 + $0x378] sm:$0x3] %vm744_vm3, %v9828_v41  ;;  %857 = vst.msk [vmem:[#allocation2 + $0x388] sm:$0x3] %vm744_vm3, %v9828_v41 }
  0x56   :  { %856 = vst.msk [vmem:[#allocation2 + $0x380] sm:$0xff] %vm742_vm2, %v9828_v41  ;;  %858 = vst.msk [vmem:[#allocation2 + $0x390] sm:$0xff] %vm742_vm2, %v9828_v41  ;;  %8828 = vmatmul.mubr.msk.f32.gmra.mxu0 %vm96_vm1, %v60_v48 }
  0x57   :  { %859 = vst.msk [vmem:[#allocation2 + $0x398] sm:$0x3] %vm744_vm3, %v9828_v41  ;;  %861 = vst.msk [vmem:[#allocation2 + $0x3a8] sm:$0x3] %vm744_vm3, %v9828_v41  ;;  %8830 = vmatprep.mubr.msk.f32.mxu0 %vm96_vm1, %v61_v49  ;;  %v2324_v49 = vld [vmem:[%s12855_s3 + $0x48] sm:$0xff] }
  0x58   :  { %860 = vst.msk [vmem:[#allocation2 + $0x3a0] sm:$0xff] %vm742_vm2, %v9828_v41  ;;  %862 = vst.msk [vmem:[#allocation2 + $0x3b0] sm:$0xff] %vm742_vm2, %v9828_v41 }
  0x59   :  { %863 = vst.msk [vmem:[#allocation2 + $0x3b8] sm:$0x3] %vm744_vm3, %v9828_v41  ;;  %865 = vst.msk [vmem:[#allocation2 + $0x3c8] sm:$0x3] %vm744_vm3, %v9828_v41 }
  0x5a   :  { %864 = vst.msk [vmem:[#allocation2 + $0x3c0] sm:$0xff] %vm742_vm2, %v9828_v41  ;;  %866 = vst.msk [vmem:[#allocation2 + $0x3d0] sm:$0xff] %vm742_vm2, %v9828_v41  ;;  %8831 = vmatmul.mubr.msk.f32.gmra.mxu0 %vm96_vm1, %v62_v53  ;;  %v3034_v53 = vld [vmem:[%s12855_s3 + $0x70] sm:$0xff] }
  0x5b   :  { %867 = vst.msk [vmem:[#allocation2 + $0x3d8] sm:$0x3] %vm744_vm3, %v9828_v41  ;;  %869 = vst.msk [vmem:[#allocation2 + $0x3e8] sm:$0x3] %vm744_vm3, %v9828_v41  ;;  %8833 = vmatprep.mubr.msk.f32.mxu0 %vm96_vm1, %v63_v55 }
  0x5c   :  { %868 = vst.msk [vmem:[#allocation2 + $0x3e0] sm:$0xff] %vm742_vm2, %v9828_v41  ;;  %870 = vst.msk [vmem:[#allocation2 + $0x3f0] sm:$0xff] %vm742_vm2, %v9828_v41 }
  0x5d   :  { %871 = vst.msk [vmem:[#allocation2 + $0x3f8] sm:$0x3] %vm744_vm3, %v9828_v41  ;;  %873 = vst.msk [vmem:[#allocation2 + $0x408] sm:$0x3] %vm744_vm3, %v9828_v41 }
  0x5e   :  { %872 = vst.msk [vmem:[#allocation2 + $0x400] sm:$0xff] %vm742_vm2, %v9828_v41  ;;  %874 = vst.msk [vmem:[#allocation2 + $0x410] sm:$0xff] %vm742_vm2, %v9828_v41  ;;  %8834 = vmatmul.mubr.msk.f32.gmra.mxu0 %vm96_vm1, %v64_v57 }
  0x5f   :  { %875 = vst.msk [vmem:[#allocation2 + $0x418] sm:$0x3] %vm744_vm3, %v9828_v41  ;;  %877 = vst.msk [vmem:[#allocation2 + $0x428] sm:$0x3] %vm744_vm3, %v9828_v41  ;;  %8836 = vmatprep.mubr.msk.f32.mxu0 %vm96_vm1, %v65_v58 }
  0x60   :  { %876 = vst.msk [vmem:[#allocation2 + $0x420] sm:$0xff] %vm742_vm2, %v9828_v41  ;;  %878 = vst.msk [vmem:[#allocation2 + $0x430] sm:$0xff] %vm742_vm2, %v9828_v41 }
  0x61   :  { %879 = vst.msk [vmem:[#allocation2 + $0x438] sm:$0x3] %vm744_vm3, %v9828_v41  ;;  %881 = vst.msk [vmem:[#allocation2 + $0x448] sm:$0x3] %vm744_vm3, %v9828_v41 }
  0x62   :  { %880 = vst.msk [vmem:[#allocation2 + $0x440] sm:$0xff] %vm742_vm2, %v9828_v41  ;;  %882 = vst.msk [vmem:[#allocation2 + $0x450] sm:$0xff] %vm742_vm2, %v9828_v41  ;;  %8837 = vmatmul.mubr.msk.f32.gmra.mxu0 %vm96_vm1, %v66_v60 }
  0x63   :  { %883 = vst.msk [vmem:[#allocation2 + $0x458] sm:$0x3] %vm744_vm3, %v9828_v41  ;;  %885 = vst.msk [vmem:[#allocation2 + $0x468] sm:$0x3] %vm744_vm3, %v9828_v41  ;;  %8839 = vmatprep.mubr.msk.f32.mxu0 %vm96_vm1, %v67_v61  ;;  %v2323_v61 = vld [vmem:[%s12855_s3 + $0x40] sm:$0xff] }
  0x64   :  { %884 = vst.msk [vmem:[#allocation2 + $0x460] sm:$0xff] %vm742_vm2, %v9828_v41  ;;  %886 = vst.msk [vmem:[#allocation2 + $0x470] sm:$0xff] %vm742_vm2, %v9828_v41 }
  0x65   :  { %887 = vst.msk [vmem:[#allocation2 + $0x478] sm:$0x3] %vm744_vm3, %v9828_v41  ;;  %889 = vst.msk [vmem:[#allocation2 + $0x488] sm:$0x3] %vm744_vm3, %v9828_v41 }
  0x66   :  { %888 = vst.msk [vmem:[#allocation2 + $0x480] sm:$0xff] %vm742_vm2, %v9828_v41  ;;  %890 = vst.msk [vmem:[#allocation2 + $0x490] sm:$0xff] %vm742_vm2, %v9828_v41  ;;  %8840 = vmatmul.mubr.msk.f32.gmra.mxu0 %vm96_vm1, %v68_v62 }
  0x67   :  { %891 = vst.msk [vmem:[#allocation2 + $0x498] sm:$0x3] %vm744_vm3, %v9828_v41  ;;  %893 = vst.msk [vmem:[#allocation2 + $0x4a8] sm:$0x3] %vm744_vm3, %v9828_v41  ;;  %8842 = vmatprep.mubr.msk.f32.mxu0 %vm96_vm1, %v69_v63 }
  0x68   :  { %892 = vst.msk [vmem:[#allocation2 + $0x4a0] sm:$0xff] %vm742_vm2, %v9828_v41  ;;  %894 = vst.msk [vmem:[#allocation2 + $0x4b0] sm:$0xff] %vm742_vm2, %v9828_v41 }
  0x69   :  { %895 = vst.msk [vmem:[#allocation2 + $0x4b8] sm:$0x3] %vm744_vm3, %v9828_v41  ;;  %897 = vst.msk [vmem:[#allocation2 + $0x4c8] sm:$0x3] %vm744_vm3, %v9828_v41 }
  0x6a   :  { %896 = vst.msk [vmem:[#allocation2 + $0x4c0] sm:$0xff] %vm742_vm2, %v9828_v41  ;;  %898 = vst.msk [vmem:[#allocation2 + $0x4d0] sm:$0xff] %vm742_vm2, %v9828_v41  ;;  %8843 = vmatmul.mubr.msk.f32.gmra.mxu0 %vm96_vm1, %v70_v0 }
  0x6b   :  { %899 = vst.msk [vmem:[#allocation2 + $0x4d8] sm:$0x3] %vm744_vm3, %v9828_v41  ;;  %901 = vst.msk [vmem:[#allocation2 + $0x4e8] sm:$0x3] %vm744_vm3, %v9828_v41  ;;  %8845 = vmatprep.mubr.msk.f32.mxu0 %vm96_vm1, %v71_v1  ;;  %v3033_v1 = vld [vmem:[%s12855_s3 + $0x68] sm:$0xff] }
  0x6c   :  { %900 = vst.msk [vmem:[#allocation2 + $0x4e0] sm:$0xff] %vm742_vm2, %v9828_v41  ;;  %902 = vst.msk [vmem:[#allocation2 + $0x4f0] sm:$0xff] %vm742_vm2, %v9828_v41 }
  0x6d   :  { %903 = vst.msk [vmem:[#allocation2 + $0x4f8] sm:$0x3] %vm744_vm3, %v9828_v41  ;;  %v2325_v41 = vld [vmem:[%s12855_s3 + $0x50] sm:$0xff] }
  0x6e   :  { %8846 = vmatmul.mubr.msk.f32.gmra.mxu0 %vm96_vm1, %v72_v2 }
  0x6f   :  { %8848 = vmatprep.mubr.msk.f32.mxu0 %vm96_vm1, %v73_v3 }
  0x72   :  { %8849 = vmatmul.mubr.msk.f32.gmra.mxu0 %vm96_vm1, %v74_v4 }
  0x73   :  { %8851 = vmatprep.mubr.msk.f32.mxu0 %vm96_vm1, %v75_v5 }
  0x76   :  { %8852 = vmatmul.mubr.msk.f32.gmra.mxu0 %vm96_vm1, %v76_v6 }
  0x77   :  { %8854 = vmatprep.mubr.msk.f32.mxu0 %vm96_vm1, %v77_v7 }
  0x7a   :  { %8855 = vmatmul.mubr.msk.f32.gmra.mxu0 %vm96_vm1, %v78_v8 }
  0x7b   :  { %8857 = vmatprep.mubr.msk.f32.mxu0 %vm96_vm1, %v79_v9  ;;  %v1045_v9 = vld [vmem:[#allocation2 + $0xa1] sm:$0xff] }
  0x7e   :  { %8858 = vmatmul.mubr.msk.f32.gmra.mxu0 %vm96_vm1, %v80_v10  ;;  %v977_v10 = vld [vmem:[#allocation2 + $0xa0] sm:$0xff] }
  0x7f   :  { %8860 = vmatprep.mubr.msk.f32.mxu0 %vm96_vm1, %v81_v11  ;;  %v3032_v11 = vld [vmem:[%s12855_s3 + $0x60] sm:$0xff] }
  0x82   :  { %8861 = vmatmul.mubr.msk.f32.gmra.mxu0 %vm96_vm1, %v82_v12 }
  0x83   :  { %8863 = vmatprep.mubr.msk.f32.mxu0 %vm96_vm1, %v83_v13 }
  0x86   :  { %8864 = vmatmul.mubr.msk.f32.gmra.mxu0 %vm96_vm1, %v84_v14 }
  0x87   :  { %8978 = vmatprep.mubr.msk.f32.mxu0 %vm742_vm2, %v969_v15  ;;  %v10571_v15 = vld [vmem:[%s12855_s3 + $0x98] sm:$0xff] }
  0xca   :  { %v8772_v17 = vpop.f32.mrf.mxu0 }
  0xcb   :  { %v365_v18 = vadd.f32 %v8772_v17, %v10488_v16 }
  0xcc   :  { %v359_v19 = vpop.f32.mrf.mxu0 }
  0xcd   :  { %v679_v20 = vmax.f32 %v365_v18, 0.0  ;;  %v360_v21 = vadd.f32 %v10488_v16, %v359_v19 }
  0xce   :  { %v8775_v22 = vpop.f32.mrf.mxu0 }
  0xcf   :  { %906 = vst.msk [vmem:[#allocation2 + $0x21] sm:$0xff] %vm742_vm2, %v679_v20  ;;  %v678_v23 = vmax.f32 %v360_v21, 0.0  ;;  %v375_v24 = vadd.f32 %v8775_v22, %v10488_v16 }
  0xd0   :  { %v369_v25 = vpop.f32.mrf.mxu0 }
  0xd1   :  { %905 = vst.msk [vmem:[#allocation2 + $0x11] sm:$0xff] %vm742_vm2, %v678_v23  ;;  %v681_v26 = vmax.f32 %v375_v24, 0.0  ;;  %v370_v27 = vadd.f32 %v10488_v16, %v369_v25 }
  0xd2   :  { %v8778_v29 = vpop.f32.mrf.mxu0 }
  0xd3   :  { %908 = vst.msk [vmem:[#allocation2 + $0x41] sm:$0xff] %vm742_vm2, %v681_v26  ;;  %v680_v30 = vmax.f32 %v370_v27, 0.0  ;;  %v385_v31 = vadd.f32 %v8778_v29, %v10488_v16 }
  0xd4   :  { %v379_v32 = vpop.f32.mrf.mxu0 }
  0xd5   :  { %907 = vst.msk [vmem:[#allocation2 + $0x31] sm:$0xff] %vm742_vm2, %v680_v30  ;;  %v683_v33 = vmax.f32 %v385_v31, 0.0  ;;  %v380_v34 = vadd.f32 %v10488_v16, %v379_v32 }
  0xd6   :  { %v8781_v35 = vpop.f32.mrf.mxu0  ;;  %v1039_v44 = vld [vmem:[#allocation2 + $0x21] sm:$0xff] }
  0xd7   :  { %910 = vst.msk [vmem:[#allocation2 + $0x61] sm:$0xff] %vm742_vm2, %v683_v33  ;;  %v682_v36 = vmax.f32 %v380_v34, 0.0  ;;  %v395_v37 = vadd.f32 %v8781_v35, %v10488_v16  ;;  %v10517_v46 = vld [vmem:[#allocation2 + $0x20] sm:$0xff] }
  0xd8   :  { %v389_v38 = vpop.f32.mrf.mxu0  ;;  %v1038_v39 = vld [vmem:[#allocation2 + $0x11] sm:$0xff] }
  0xd9   :  { %v10505_v40 = vld [vmem:[#allocation2 + $0x10] sm:$0xff]  ;;  %909 = vst.msk [vmem:[#allocation2 + $0x51] sm:$0xff] %vm742_vm2, %v682_v36  ;;  %v685_v42 = vmax.f32 %v395_v37, 0.0  ;;  %v390_v43 = vadd.f32 %v10488_v16, %v389_v38  ;;  %8875 = vmatmul.mubr.msk.f32.vlgmr.msra.gmra.mxu1 %vm742_vm2, %v1038_v39 }
  0xda   :  { %8979 = vmatmul.mubr.msk.f32.vlgmr.msra.gmra.mxu0 %vm742_vm2, %v10505_v40  ;;  %9075 = vmatpush3.msra.mxu1 %v10403_v59  ;;  %v8784_v45 = vpop.f32.mrf.mxu0  ;;  %v1041_v56 = vld [vmem:[#allocation2 + $0x41] sm:$0xff] }
  0xdb   :  { %8877 = vmatprep.mubr.msk.f32.mxu1 %vm742_vm2, %v1039_v44  ;;  %912 = vst.msk [vmem:[#allocation2 + $0x81] sm:$0xff] %vm742_vm2, %v685_v42  ;;  %v684_v47 = vmax.f32 %v390_v43, 0.0  ;;  %v405_v48 = vadd.f32 %v8784_v45, %v10488_v16  ;;  %8981 = vmatprep.mubr.msk.f32.mxu0 %vm742_vm2, %v10517_v46  ;;  %v10536_v57 = vld [vmem:[#allocation2 + $0x40] sm:$0xff] }
  0xdc   :  { %9076 = vmatprep.subr.mxu1 %v2325_v41  ;;  %v399_v50 = vpop.f32.mrf.mxu0  ;;  %v1040_v51 = vld [vmem:[#allocation2 + $0x31] sm:$0xff]  ;;  %9179 = vmatpush3.msra.mxu0 %v3035_v28 }
  0xdd   :  { %v10526_v52 = vld [vmem:[#allocation2 + $0x30] sm:$0xff]  ;;  %9077 = vmatpush3.msra.mxu1 %v2325_v41  ;;  %911 = vst.msk [vmem:[#allocation2 + $0x71] sm:$0xff] %vm742_vm2, %v684_v47  ;;  %v687_v54 = vmax.f32 %v405_v48, 0.0  ;;  %v400_v55 = vadd.f32 %v10488_v16, %v399_v50  ;;  %9180 = vmatprep.subr.mxu0 %v3034_v53 }
  0xde   :  { %8878 = vmatmul.mubr.msk.f32.gmra.mxu1 %vm742_vm2, %v1040_v51  ;;  %8982 = vmatmul.mubr.msk.f32.gmra.mxu0 %vm742_vm2, %v10526_v52  ;;  %v8787_v58 = vpop.f32.mrf.mxu0  ;;  %v1043_v4 = vld [vmem:[#allocation2 + $0x61] sm:$0xff] }
  0xdf   :  { %8880 = vmatprep.mubr.msk.f32.mxu1 %vm742_vm2, %v1041_v56  ;;  %8984 = vmatprep.mubr.msk.f32.mxu0 %vm742_vm2, %v10536_v57  ;;  %914 = vst.msk [vmem:[#allocation2 + $0xc1] sm:$0xff] %vm742_vm2, %v687_v54  ;;  %v686_v59 = vmax.f32 %v400_v55, 0.0  ;;  %v415_v60 = vadd.f32 %v8787_v58, %v10488_v16  ;;  %v10556_v5 = vld [vmem:[#allocation2 + $0x60] sm:$0xff] }
  0xe0   :  { %9078 = vmatprep.subr.mxu1 %v2324_v49  ;;  %v409_v62 = vpop.f32.mrf.mxu0  ;;  %v1042_v63 = vld [vmem:[#allocation2 + $0x51] sm:$0xff]  ;;  %9181 = vmatpush3.msra.mxu0 %v3034_v53  ;;  %v1053_v55 = vld [vmem:[#allocation2 + $0x141] sm:$0xff] }
  0xe1   :  { %v10546_v0 = vld [vmem:[#allocation2 + $0x50] sm:$0xff]  ;;  %9079 = vmatpush3.msra.mxu1 %v2324_v49  ;;  %913 = vst.msk [vmem:[#allocation2 + $0xb1] sm:$0xff] %vm742_vm2, %v686_v59  ;;  %v689_v2 = vmax.f32 %v415_v60, 0.0  ;;  %v410_v3 = vadd.f32 %v10488_v16, %v409_v62  ;;  %9182 = vmatprep.subr.mxu0 %v3033_v1  ;;  %v985_v56 = vld [vmem:[#allocation2 + $0x140] sm:$0xff] }
  0xe2   :  { %8881 = vmatmul.mubr.msk.f32.gmra.mxu1 %vm742_vm2, %v1042_v63  ;;  %8985 = vmatmul.mubr.msk.f32.gmra.mxu0 %vm742_vm2, %v10546_v0  ;;  %v8790_v6 = vpop.f32.mrf.mxu0 }
  0xe3   :  { %8883 = vmatprep.mubr.msk.f32.mxu1 %vm742_vm2, %v1043_v4  ;;  %8987 = vmatprep.mubr.msk.f32.mxu0 %vm742_vm2, %v10556_v5  ;;  %916 = vst.msk [vmem:[#allocation2 + $0xe1] sm:$0xff] %vm742_vm2, %v689_v2  ;;  %v688_v7 = vmax.f32 %v410_v3, 0.0  ;;  %v425_v8 = vadd.f32 %v8790_v6, %v10488_v16 }
  0xe4   :  { %9080 = vmatprep.subr.mxu1 %v2323_v61  ;;  %v419_v12 = vpop.f32.mrf.mxu0  ;;  %v1044_v13 = vld [vmem:[#allocation2 + $0x71] sm:$0xff]  ;;  %9183 = vmatpush3.msra.mxu0 %v3033_v1 }
  0xe5   :  { %v10566_v14 = vld [vmem:[#allocation2 + $0x70] sm:$0xff]  ;;  %9081 = vmatpush3.msra.mxu1 %v2323_v61  ;;  %915 = vst.msk [vmem:[#allocation2 + $0xd1] sm:$0xff] %vm742_vm2, %v688_v7  ;;  %v691_v17 = vmax.f32 %v425_v8, 0.0  ;;  %v420_v18 = vadd.f32 %v10488_v16, %v419_v12  ;;  %9184 = vmatprep.subr.mxu0 %v3032_v11 }
  0xe6   :  { %8884 = vmatmul.mubr.msk.f32.gmra.mxu1 %vm742_vm2, %v1044_v13  ;;  %8988 = vmatmul.mubr.msk.f32.gmra.mxu0 %vm742_vm2, %v10566_v14  ;;  %v8793_v19 = vpop.f32.mrf.mxu0  ;;  %v1047_v27 = vld [vmem:[#allocation2 + $0xc1] sm:$0xff] }
  0xe7   :  { %8886 = vmatprep.mubr.msk.f32.mxu1 %vm742_vm2, %v1045_v9  ;;  %8990 = vmatprep.mubr.msk.f32.mxu0 %vm742_vm2, %v977_v10  ;;  %918 = vst.msk [vmem:[#allocation2 + $0x101] sm:$0xff] %vm742_vm2, %v691_v17  ;;  %v690_v20 = vmax.f32 %v420_v18, 0.0  ;;  %v435_v21 = vadd.f32 %v8793_v19, %v10488_v16  ;;  %v10590_v28 = vld [vmem:[#allocation2 + $0xc0] sm:$0xff] }
  0xe8   :  { %9282 = vmatprep.subr.mxu1 %v10571_v15  ;;  %v429_v22 = vpop.f32.mrf.mxu0  ;;  %v1046_v23 = vld [vmem:[#allocation2 + $0xb1] sm:$0xff]  ;;  %9185 = vmatpush3.msra.mxu0 %v3032_v11 }
  0xe9   :  { %v10583_v24 = vld [vmem:[#allocation2 + $0xb0] sm:$0xff]  ;;  %917 = vst.msk [vmem:[#allocation2 + $0xf1] sm:$0xff] %vm742_vm2, %v690_v20  ;;  %v693_v25 = vmax.f32 %v435_v21, 0.0  ;;  %v430_v26 = vadd.f32 %v10488_v16, %v429_v22 }
  0xea   :  { %8887 = vmatmul.mubr.msk.f32.gmra.mxu1 %vm742_vm2, %v1046_v23  ;;  %8991 = vmatmul.mubr.msk.f32.gmra.mxu0 %vm742_vm2, %v10583_v24  ;;  %v8796_v29 = vpop.f32.mrf.mxu0  ;;  %v1049_v37 = vld [vmem:[#allocation2 + $0xe1] sm:$0xff] }
  0xeb   :  { %8889 = vmatprep.mubr.msk.f32.mxu1 %vm742_vm2, %v1047_v27  ;;  %8993 = vmatprep.mubr.msk.f32.mxu0 %vm742_vm2, %v10590_v28  ;;  %920 = vst.msk [vmem:[#allocation2 + $0x121] sm:$0xff] %vm742_vm2, %v693_v25  ;;  %v692_v30 = vmax.f32 %v430_v26, 0.0  ;;  %v445_v31 = vadd.f32 %v8796_v29, %v10488_v16  ;;  %v10604_v38 = vld [vmem:[#allocation2 + $0xe0] sm:$0xff] }
  0xec   :  { %v439_v32 = vpop.f32.mrf.mxu0  ;;  %v1048_v33 = vld [vmem:[#allocation2 + $0xd1] sm:$0xff] }
  0xed   :  { %v10597_v34 = vld [vmem:[#allocation2 + $0xd0] sm:$0xff]  ;;  %919 = vst.msk [vmem:[#allocation2 + $0x111] sm:$0xff] %vm742_vm2, %v692_v30  ;;  %v695_v35 = vmax.f32 %v445_v31, 0.0  ;;  %v440_v36 = vadd.f32 %v10488_v16, %v439_v32 }
  0xee   :  { %8890 = vmatmul.mubr.msk.f32.gmra.mxu1 %vm742_vm2, %v1048_v33  ;;  %8994 = vmatmul.mubr.msk.f32.gmra.mxu0 %vm742_vm2, %v10597_v34  ;;  %v8799_v39 = vpop.f32.mrf.mxu0  ;;  %v1051_v49 = vld [vmem:[#allocation2 + $0x101] sm:$0xff] }
  0xef   :  { %8892 = vmatprep.mubr.msk.f32.mxu1 %vm742_vm2, %v1049_v37  ;;  %8996 = vmatprep.mubr.msk.f32.mxu0 %vm742_vm2, %v10604_v38  ;;  %922 = vst.msk [vmem:[#allocation2 + $0x161] sm:$0xff] %vm742_vm2, %v695_v35  ;;  %v694_v41 = vmax.f32 %v440_v36, 0.0  ;;  %v455_v42 = vadd.f32 %v8799_v39, %v10488_v16  ;;  %v10618_v50 = vld [vmem:[#allocation2 + $0x100] sm:$0xff] }
  0xf0   :  { %v449_v43 = vpop.f32.mrf.mxu0  ;;  %v1050_v44 = vld [vmem:[#allocation2 + $0xf1] sm:$0xff] }
  0xf1   :  { %v10611_v45 = vld [vmem:[#allocation2 + $0xf0] sm:$0xff]  ;;  %921 = vst.msk [vmem:[#allocation2 + $0x151] sm:$0xff] %vm742_vm2, %v694_v41  ;;  %v697_v47 = vmax.f32 %v455_v42, 0.0  ;;  %v450_v48 = vadd.f32 %v10488_v16, %v449_v43  ;;  %v1061_v42 = vld [vmem:[#allocation2 + $0x1e1] sm:$0xff] }
  0xf2   :  { %8893 = vmatmul.mubr.msk.f32.gmra.mxu1 %vm742_vm2, %v1050_v44  ;;  %8997 = vmatmul.mubr.msk.f32.gmra.mxu0 %vm742_vm2, %v10611_v45  ;;  %v8802_v51 = vpop.f32.mrf.mxu0  ;;  %v993_v43 = vld [vmem:[#allocation2 + $0x1e0] sm:$0xff] }
  0xf3   :  { %8895 = vmatprep.mubr.msk.f32.mxu1 %vm742_vm2, %v1051_v49  ;;  %8999 = vmatprep.mubr.msk.f32.mxu0 %vm742_vm2, %v10618_v50  ;;  %924 = vst.msk [vmem:[#allocation2 + $0x181] sm:$0xff] %vm742_vm2, %v697_v47  ;;  %v696_v53 = vmax.f32 %v450_v48, 0.0  ;;  %v465_v54 = vadd.f32 %v8802_v51, %v10488_v16 }
  0xf4   :  { %v459_v58 = vpop.f32.mrf.mxu0  ;;  %v1052_v59 = vld [vmem:[#allocation2 + $0x111] sm:$0xff] }
  0xf5   :  { %v10625_v60 = vld [vmem:[#allocation2 + $0x110] sm:$0xff]  ;;  %923 = vst.msk [vmem:[#allocation2 + $0x171] sm:$0xff] %vm742_vm2, %v696_v53  ;;  %v699_v61 = vmax.f32 %v465_v54, 0.0  ;;  %v460_v62 = vadd.f32 %v10488_v16, %v459_v58 }
  0xf6   :  { %8896 = vmatmul.mubr.msk.f32.gmra.mxu1 %vm742_vm2, %v1052_v59  ;;  %9000 = vmatmul.mubr.msk.f32.gmra.mxu0 %vm742_vm2, %v10625_v60  ;;  %v8805_v63 = vpop.f32.mrf.mxu0  ;;  %v1055_v9 = vld [vmem:[#allocation2 + $0x161] sm:$0xff] }
  0xf7   :  { %8898 = vmatprep.mubr.msk.f32.mxu1 %vm742_vm2, %v1053_v55  ;;  %9002 = vmatprep.mubr.msk.f32.mxu0 %vm742_vm2, %v985_v56  ;;  %926 = vst.msk [vmem:[#allocation2 + $0x1a1] sm:$0xff] %vm742_vm2, %v699_v61  ;;  %v698_v1 = vmax.f32 %v460_v62, 0.0  ;;  %v475_v2 = vadd.f32 %v8805_v63, %v10488_v16  ;;  %v10643_v10 = vld [vmem:[#allocation2 + $0x160] sm:$0xff] }
  0xf8   :  { %v469_v3 = vpop.f32.mrf.mxu0  ;;  %v1054_v4 = vld [vmem:[#allocation2 + $0x151] sm:$0xff] }
  0xf9   :  { %v10636_v6 = vld [vmem:[#allocation2 + $0x150] sm:$0xff]  ;;  %925 = vst.msk [vmem:[#allocation2 + $0x191] sm:$0xff] %vm742_vm2, %v698_v1  ;;  %v701_v7 = vmax.f32 %v475_v2, 0.0  ;;  %v470_v8 = vadd.f32 %v10488_v16, %v469_v3 }
  0xfa   :  { %8899 = vmatmul.mubr.msk.f32.gmra.mxu1 %vm742_vm2, %v1054_v4  ;;  %9003 = vmatmul.mubr.msk.f32.gmra.mxu0 %vm742_vm2, %v10636_v6  ;;  %v8808_v11 = vpop.f32.mrf.mxu0  ;;  %v1057_v22 = vld [vmem:[#allocation2 + $0x181] sm:$0xff] }
  0xfb   :  { %8901 = vmatprep.mubr.msk.f32.mxu1 %vm742_vm2, %v1055_v9  ;;  %9005 = vmatprep.mubr.msk.f32.mxu0 %vm742_vm2, %v10643_v10  ;;  %928 = vst.msk [vmem:[#allocation2 + $0x1c1] sm:$0xff] %vm742_vm2, %v701_v7  ;;  %v700_v12 = vmax.f32 %v470_v8, 0.0  ;;  %v485_v13 = vadd.f32 %v8808_v11, %v10488_v16  ;;  %v10657_v23 = vld [vmem:[#allocation2 + $0x180] sm:$0xff] }
  0xfc   :  { %v479_v17 = vpop.f32.mrf.mxu0  ;;  %v1056_v18 = vld [vmem:[#allocation2 + $0x171] sm:$0xff] }
  0xfd   :  { %v10650_v19 = vld [vmem:[#allocation2 + $0x170] sm:$0xff]  ;;  %927 = vst.msk [vmem:[#allocation2 + $0x1b1] sm:$0xff] %vm742_vm2, %v700_v12  ;;  %v703_v20 = vmax.f32 %v485_v13, 0.0  ;;  %v480_v21 = vadd.f32 %v10488_v16, %v479_v17 }
  0xfe   :  { %8902 = vmatmul.mubr.msk.f32.gmra.mxu1 %vm742_vm2, %v1056_v18  ;;  %9006 = vmatmul.mubr.msk.f32.gmra.mxu0 %vm742_vm2, %v10650_v19  ;;  %v8811_v25 = vpop.f32.mrf.mxu0  ;;  %v1059_v35 = vld [vmem:[#allocation2 + $0x1a1] sm:$0xff] }
  0xff   :  { %8904 = vmatprep.mubr.msk.f32.mxu1 %vm742_vm2, %v1057_v22  ;;  %9008 = vmatprep.mubr.msk.f32.mxu0 %vm742_vm2, %v10657_v23  ;;  %930 = vst.msk [vmem:[#allocation2 + $0x201] sm:$0xff] %vm742_vm2, %v703_v20  ;;  %v702_v26 = vmax.f32 %v480_v21, 0.0  ;;  %v495_v27 = vadd.f32 %v8811_v25, %v10488_v16  ;;  %v10671_v36 = vld [vmem:[#allocation2 + $0x1a0] sm:$0xff] }
 0x100   :  { %v489_v29 = vpop.f32.mrf.mxu0  ;;  %v1058_v30 = vld [vmem:[#allocation2 + $0x191] sm:$0xff] }
 0x101   :  { %v10664_v31 = vld [vmem:[#allocation2 + $0x190] sm:$0xff]  ;;  %929 = vst.msk [vmem:[#allocation2 + $0x1f1] sm:$0xff] %vm742_vm2, %v702_v26  ;;  %v705_v32 = vmax.f32 %v495_v27, 0.0  ;;  %v490_v33 = vadd.f32 %v10488_v16, %v489_v29 }
 0x102   :  { %8905 = vmatmul.mubr.msk.f32.gmra.mxu1 %vm742_vm2, %v1058_v30  ;;  %9009 = vmatmul.mubr.msk.f32.gmra.mxu0 %vm742_vm2, %v10664_v31  ;;  %v8814_v37 = vpop.f32.mrf.mxu0 }
 0x103   :  { %8907 = vmatprep.mubr.msk.f32.mxu1 %vm742_vm2, %v1059_v35  ;;  %9011 = vmatprep.mubr.msk.f32.mxu0 %vm742_vm2, %v10671_v36  ;;  %932 = vst.msk [vmem:[#allocation2 + $0x221] sm:$0xff] %vm742_vm2, %v705_v32  ;;  %v704_v39 = vmax.f32 %v490_v33, 0.0  ;;  %v505_v41 = vadd.f32 %v8814_v37, %v10488_v16 }
 0x104   :  { %v499_v44 = vpop.f32.mrf.mxu0  ;;  %v1060_v47 = vld [vmem:[#allocation2 + $0x1b1] sm:$0xff] }
 0x105   :  { %v10678_v48 = vld [vmem:[#allocation2 + $0x1b0] sm:$0xff]  ;;  %931 = vst.msk [vmem:[#allocation2 + $0x211] sm:$0xff] %vm742_vm2, %v704_v39  ;;  %v707_v49 = vmax.f32 %v505_v41, 0.0  ;;  %v500_v51 = vadd.f32 %v10488_v16, %v499_v44  ;;  %v1069_v39 = vld [vmem:[#allocation2 + $0x281] sm:$0xff] }
 0x106   :  { %8908 = vmatmul.mubr.msk.f32.gmra.mxu1 %vm742_vm2, %v1060_v47  ;;  %9012 = vmatmul.mubr.msk.f32.gmra.mxu0 %vm742_vm2, %v10678_v48  ;;  %v8817_v53 = vpop.f32.mrf.mxu0  ;;  %v1063_v63 = vld [vmem:[#allocation2 + $0x201] sm:$0xff] }
 0x107   :  { %8910 = vmatprep.mubr.msk.f32.mxu1 %vm742_vm2, %v1061_v42  ;;  %9014 = vmatprep.mubr.msk.f32.mxu0 %vm742_vm2, %v993_v43  ;;  %934 = vst.msk [vmem:[#allocation2 + $0x241] sm:$0xff] %vm742_vm2, %v707_v49  ;;  %v706_v54 = vmax.f32 %v500_v51, 0.0  ;;  %v515_v55 = vadd.f32 %v8817_v53, %v10488_v16  ;;  %v10696_v1 = vld [vmem:[#allocation2 + $0x200] sm:$0xff] }
 0x108   :  { %v509_v56 = vpop.f32.mrf.mxu0  ;;  %v1062_v58 = vld [vmem:[#allocation2 + $0x1f1] sm:$0xff]  ;;  %v1001_v41 = vld [vmem:[#allocation2 + $0x280] sm:$0xff] }
 0x109   :  { %v10689_v59 = vld [vmem:[#allocation2 + $0x1f0] sm:$0xff]  ;;  %933 = vst.msk [vmem:[#allocation2 + $0x231] sm:$0xff] %vm742_vm2, %v706_v54  ;;  %v709_v61 = vmax.f32 %v515_v55, 0.0  ;;  %v510_v62 = vadd.f32 %v10488_v16, %v509_v56 }
 0x10a   :  { %8911 = vmatmul.mubr.msk.f32.gmra.mxu1 %vm742_vm2, %v1062_v58  ;;  %9015 = vmatmul.mubr.msk.f32.gmra.mxu0 %vm742_vm2, %v10689_v59  ;;  %v8820_v2 = vpop.f32.mrf.mxu0  ;;  %v1065_v13 = vld [vmem:[#allocation2 + $0x221] sm:$0xff] }
 0x10b   :  { %8913 = vmatprep.mubr.msk.f32.mxu1 %vm742_vm2, %v1063_v63  ;;  %9017 = vmatprep.mubr.msk.f32.mxu0 %vm742_vm2, %v10696_v1  ;;  %936 = vst.msk [vmem:[#allocation2 + $0x261] sm:$0xff] %vm742_vm2, %v709_v61  ;;  %v708_v3 = vmax.f32 %v510_v62, 0.0  ;;  %v525_v4 = vadd.f32 %v8820_v2, %v10488_v16  ;;  %v10710_v17 = vld [vmem:[#allocation2 + $0x220] sm:$0xff] }
 0x10c   :  { %v519_v7 = vpop.f32.mrf.mxu0  ;;  %v1064_v8 = vld [vmem:[#allocation2 + $0x211] sm:$0xff] }
 0x10d   :  { %v10703_v9 = vld [vmem:[#allocation2 + $0x210] sm:$0xff]  ;;  %935 = vst.msk [vmem:[#allocation2 + $0x251] sm:$0xff] %vm742_vm2, %v708_v3  ;;  %v711_v11 = vmax.f32 %v525_v4, 0.0  ;;  %v520_v12 = vadd.f32 %v10488_v16, %v519_v7 }
 0x10e   :  { %8914 = vmatmul.mubr.msk.f32.gmra.mxu1 %vm742_vm2, %v1064_v8  ;;  %9018 = vmatmul.mubr.msk.f32.gmra.mxu0 %vm742_vm2, %v10703_v9  ;;  %v8823_v18 = vpop.f32.mrf.mxu0  ;;  %v1067_v30 = vld [vmem:[#allocation2 + $0x241] sm:$0xff] }
 0x10f   :  { %8916 = vmatprep.mubr.msk.f32.mxu1 %vm742_vm2, %v1065_v13  ;;  %9020 = vmatprep.mubr.msk.f32.mxu0 %vm742_vm2, %v10710_v17  ;;  %938 = vst.msk [vmem:[#allocation2 + $0x2a1] sm:$0xff] %vm742_vm2, %v711_v11  ;;  %v710_v20 = vmax.f32 %v520_v12, 0.0  ;;  %v535_v21 = vadd.f32 %v8823_v18, %v10488_v16  ;;  %v10724_v32 = vld [vmem:[#allocation2 + $0x240] sm:$0xff] }
 0x110   :  { %v529_v22 = vpop.f32.mrf.mxu0  ;;  %v1066_v25 = vld [vmem:[#allocation2 + $0x231] sm:$0xff] }
 0x111   :  { %v10717_v26 = vld [vmem:[#allocation2 + $0x230] sm:$0xff]  ;;  %937 = vst.msk [vmem:[#allocation2 + $0x291] sm:$0xff] %vm742_vm2, %v710_v20  ;;  %v713_v27 = vmax.f32 %v535_v21, 0.0  ;;  %v530_v29 = vadd.f32 %v10488_v16, %v529_v22 }
 0x112   :  { %8917 = vmatmul.mubr.msk.f32.gmra.mxu1 %vm742_vm2, %v1066_v25  ;;  %9021 = vmatmul.mubr.msk.f32.gmra.mxu0 %vm742_vm2, %v10717_v26  ;;  %v8826_v33 = vpop.f32.mrf.mxu0 }
 0x113   :  { %8919 = vmatprep.mubr.msk.f32.mxu1 %vm742_vm2, %v1067_v30  ;;  %9023 = vmatprep.mubr.msk.f32.mxu0 %vm742_vm2, %v10724_v32  ;;  %940 = vst.msk [vmem:[#allocation2 + $0x2c1] sm:$0xff] %vm742_vm2, %v713_v27  ;;  %v712_v35 = vmax.f32 %v530_v29, 0.0  ;;  %v545_v37 = vadd.f32 %v8826_v33, %v10488_v16 }
 0x114   :  { %v539_v42 = vpop.f32.mrf.mxu0  ;;  %v1068_v43 = vld [vmem:[#allocation2 + $0x251] sm:$0xff] }
 0x115   :  { %v10731_v44 = vld [vmem:[#allocation2 + $0x250] sm:$0xff]  ;;  %939 = vst.msk [vmem:[#allocation2 + $0x2b1] sm:$0xff] %vm742_vm2, %v712_v35  ;;  %v715_v47 = vmax.f32 %v545_v37, 0.0  ;;  %v540_v49 = vadd.f32 %v10488_v16, %v539_v42 }
 0x116   :  { %8920 = vmatmul.mubr.msk.f32.gmra.mxu1 %vm742_vm2, %v1068_v43  ;;  %9024 = vmatmul.mubr.msk.f32.gmra.mxu0 %vm742_vm2, %v10731_v44  ;;  %v8829_v51 = vpop.f32.mrf.mxu0  ;;  %v1071_v63 = vld [vmem:[#allocation2 + $0x2a1] sm:$0xff] }
 0x117   :  { %8922 = vmatprep.mubr.msk.f32.mxu1 %vm742_vm2, %v1069_v39  ;;  %9026 = vmatprep.mubr.msk.f32.mxu0 %vm742_vm2, %v1001_v41  ;;  %942 = vst.msk [vmem:[#allocation2 + $0x2e1] sm:$0xff] %vm742_vm2, %v715_v47  ;;  %v714_v53 = vmax.f32 %v540_v49, 0.0  ;;  %v555_v54 = vadd.f32 %v8829_v51, %v10488_v16  ;;  %v10749_v2 = vld [vmem:[#allocation2 + $0x2a0] sm:$0xff] }
 0x118   :  { %v549_v55 = vpop.f32.mrf.mxu0  ;;  %v1070_v56 = vld [vmem:[#allocation2 + $0x291] sm:$0xff]  ;;  %v1077_v49 = vld [vmem:[#allocation2 + $0x321] sm:$0xff] }
 0x119   :  { %v10742_v58 = vld [vmem:[#allocation2 + $0x290] sm:$0xff]  ;;  %941 = vst.msk [vmem:[#allocation2 + $0x2d1] sm:$0xff] %vm742_vm2, %v714_v53  ;;  %v717_v61 = vmax.f32 %v555_v54, 0.0  ;;  %v550_v62 = vadd.f32 %v10488_v16, %v549_v55  ;;  %v1009_v51 = vld [vmem:[#allocation2 + $0x320] sm:$0xff] }
 0x11a   :  { %8923 = vmatmul.mubr.msk.f32.gmra.mxu1 %vm742_vm2, %v1070_v56  ;;  %9027 = vmatmul.mubr.msk.f32.gmra.mxu0 %vm742_vm2, %v10742_v58  ;;  %v8832_v3 = vpop.f32.mrf.mxu0  ;;  %v1073_v20 = vld [vmem:[#allocation2 + $0x2c1] sm:$0xff] }
 0x11b   :  { %8925 = vmatprep.mubr.msk.f32.mxu1 %vm742_vm2, %v1071_v63  ;;  %9029 = vmatprep.mubr.msk.f32.mxu0 %vm742_vm2, %v10749_v2  ;;  %944 = vst.msk [vmem:[#allocation2 + $0x301] sm:$0xff] %vm742_vm2, %v717_v61  ;;  %v716_v4 = vmax.f32 %v550_v62, 0.0  ;;  %v565_v7 = vadd.f32 %v8832_v3, %v10488_v16  ;;  %v10763_v21 = vld [vmem:[#allocation2 + $0x2c0] sm:$0xff] }
 0x11c   :  { %v559_v8 = vpop.f32.mrf.mxu0  ;;  %v1072_v11 = vld [vmem:[#allocation2 + $0x2b1] sm:$0xff] }
 0x11d   :  { %v10756_v12 = vld [vmem:[#allocation2 + $0x2b0] sm:$0xff]  ;;  %943 = vst.msk [vmem:[#allocation2 + $0x2f1] sm:$0xff] %vm742_vm2, %v716_v4  ;;  %v719_v13 = vmax.f32 %v565_v7, 0.0  ;;  %v560_v18 = vadd.f32 %v10488_v16, %v559_v8 }
 0x11e   :  { %8926 = vmatmul.mubr.msk.f32.gmra.mxu1 %vm742_vm2, %v1072_v11  ;;  %9030 = vmatmul.mubr.msk.f32.gmra.mxu0 %vm742_vm2, %v10756_v12  ;;  %v8835_v22 = vpop.f32.mrf.mxu0  ;;  %v1075_v39 = vld [vmem:[#allocation2 + $0x2e1] sm:$0xff] }
 0x11f   :  { %8928 = vmatprep.mubr.msk.f32.mxu1 %vm742_vm2, %v1073_v20  ;;  %9032 = vmatprep.mubr.msk.f32.mxu0 %vm742_vm2, %v10763_v21  ;;  %946 = vst.msk [vmem:[#allocation2 + $0x341] sm:$0xff] %vm742_vm2, %v719_v13  ;;  %v718_v25 = vmax.f32 %v560_v18, 0.0  ;;  %v575_v27 = vadd.f32 %v8835_v22, %v10488_v16  ;;  %v10777_v41 = vld [vmem:[#allocation2 + $0x2e0] sm:$0xff] }
 0x120   :  { %v569_v29 = vpop.f32.mrf.mxu0  ;;  %v1074_v30 = vld [vmem:[#allocation2 + $0x2d1] sm:$0xff] }
 0x121   :  { %v10770_v33 = vld [vmem:[#allocation2 + $0x2d0] sm:$0xff]  ;;  %945 = vst.msk [vmem:[#allocation2 + $0x331] sm:$0xff] %vm742_vm2, %v718_v25  ;;  %v721_v35 = vmax.f32 %v575_v27, 0.0  ;;  %v570_v37 = vadd.f32 %v10488_v16, %v569_v29 }
 0x122   :  { %8929 = vmatmul.mubr.msk.f32.gmra.mxu1 %vm742_vm2, %v1074_v30  ;;  %9033 = vmatmul.mubr.msk.f32.gmra.mxu0 %vm742_vm2, %v10770_v33  ;;  %v8838_v42 = vpop.f32.mrf.mxu0 }
 0x123   :  { %8931 = vmatprep.mubr.msk.f32.mxu1 %vm742_vm2, %v1075_v39  ;;  %9035 = vmatprep.mubr.msk.f32.mxu0 %vm742_vm2, %v10777_v41  ;;  %948 = vst.msk [vmem:[#allocation2 + $0x361] sm:$0xff] %vm742_vm2, %v721_v35  ;;  %v720_v43 = vmax.f32 %v570_v37, 0.0  ;;  %v585_v47 = vadd.f32 %v8838_v42, %v10488_v16 }
 0x124   :  { %v579_v53 = vpop.f32.mrf.mxu0  ;;  %v1076_v54 = vld [vmem:[#allocation2 + $0x2f1] sm:$0xff] }
 0x125   :  { %v10784_v55 = vld [vmem:[#allocation2 + $0x2f0] sm:$0xff]  ;;  %947 = vst.msk [vmem:[#allocation2 + $0x351] sm:$0xff] %vm742_vm2, %v720_v43  ;;  %v723_v56 = vmax.f32 %v585_v47, 0.0  ;;  %v580_v61 = vadd.f32 %v10488_v16, %v579_v53 }
 0x126   :  { %8932 = vmatmul.mubr.msk.f32.gmra.mxu1 %vm742_vm2, %v1076_v54  ;;  %9036 = vmatmul.mubr.msk.f32.gmra.mxu0 %vm742_vm2, %v10784_v55  ;;  %v8841_v62 = vpop.f32.mrf.mxu0  ;;  %v1079_v18 = vld [vmem:[#allocation2 + $0x341] sm:$0xff] }
 0x127   :  { %8934 = vmatprep.mubr.msk.f32.mxu1 %vm742_vm2, %v1077_v49  ;;  %9038 = vmatprep.mubr.msk.f32.mxu0 %vm742_vm2, %v1009_v51  ;;  %950 = vst.msk [vmem:[#allocation2 + $0x381] sm:$0xff] %vm742_vm2, %v723_v56  ;;  %v722_v63 = vmax.f32 %v580_v61, 0.0  ;;  %v595_v3 = vadd.f32 %v8841_v62, %v10488_v16  ;;  %v10802_v20 = vld [vmem:[#allocation2 + $0x340] sm:$0xff] }
 0x128   :  { %v589_v4 = vpop.f32.mrf.mxu0  ;;  %v1078_v7 = vld [vmem:[#allocation2 + $0x331] sm:$0xff] }
 0x129   :  { %v10795_v8 = vld [vmem:[#allocation2 + $0x330] sm:$0xff]  ;;  %949 = vst.msk [vmem:[#allocation2 + $0x371] sm:$0xff] %vm742_vm2, %v722_v63  ;;  %v725_v11 = vmax.f32 %v595_v3, 0.0  ;;  %v590_v13 = vadd.f32 %v10488_v16, %v589_v4 }
 0x12a   :  { %8935 = vmatmul.mubr.msk.f32.gmra.mxu1 %vm742_vm2, %v1078_v7  ;;  %9039 = vmatmul.mubr.msk.f32.gmra.mxu0 %vm742_vm2, %v10795_v8  ;;  %v8844_v22 = vpop.f32.mrf.mxu0  ;;  %v1081_v42 = vld [vmem:[#allocation2 + $0x361] sm:$0xff] }
 0x12b   :  { %8937 = vmatprep.mubr.msk.f32.mxu1 %vm742_vm2, %v1079_v18  ;;  %9041 = vmatprep.mubr.msk.f32.mxu0 %vm742_vm2, %v10802_v20  ;;  %952 = vst.msk [vmem:[#allocation2 + $0x3a1] sm:$0xff] %vm742_vm2, %v725_v11  ;;  %v724_v25 = vmax.f32 %v590_v13, 0.0  ;;  %v605_v27 = vadd.f32 %v8844_v22, %v10488_v16  ;;  %v10816_v43 = vld [vmem:[#allocation2 + $0x360] sm:$0xff] }
 0x12c   :  { %v599_v29 = vpop.f32.mrf.mxu0  ;;  %v1080_v30 = vld [vmem:[#allocation2 + $0x351] sm:$0xff]  ;;  %v1085_v13 = vld [vmem:[#allocation2 + $0x3c1] sm:$0xff] }
 0x12d   :  { %v10809_v35 = vld [vmem:[#allocation2 + $0x350] sm:$0xff]  ;;  %951 = vst.msk [vmem:[#allocation2 + $0x391] sm:$0xff] %vm742_vm2, %v724_v25  ;;  %v727_v37 = vmax.f32 %v605_v27, 0.0  ;;  %v600_v39 = vadd.f32 %v10488_v16, %v599_v29  ;;  %v1017_v18 = vld [vmem:[#allocation2 + $0x3c0] sm:$0xff] }
 0x12e   :  { %8938 = vmatmul.mubr.msk.f32.gmra.mxu1 %vm742_vm2, %v1080_v30  ;;  %9042 = vmatmul.mubr.msk.f32.gmra.mxu0 %vm742_vm2, %v10809_v35  ;;  %v8847_v47 = vpop.f32.mrf.mxu0  ;;  %v1083_v63 = vld [vmem:[#allocation2 + $0x381] sm:$0xff] }
 0x12f   :  { %8940 = vmatprep.mubr.msk.f32.mxu1 %vm742_vm2, %v1081_v42  ;;  %9044 = vmatprep.mubr.msk.f32.mxu0 %vm742_vm2, %v10816_v43  ;;  %954 = vst.msk [vmem:[#allocation2 + $0x3e1] sm:$0xff] %vm742_vm2, %v727_v37  ;;  %v726_v49 = vmax.f32 %v600_v39, 0.0  ;;  %v615_v51 = vadd.f32 %v8847_v47, %v10488_v16  ;;  %v10830_v3 = vld [vmem:[#allocation2 + $0x380] sm:$0xff] }
 0x130   :  { %v609_v53 = vpop.f32.mrf.mxu0  ;;  %v1082_v54 = vld [vmem:[#allocation2 + $0x371] sm:$0xff] }
 0x131   :  { %v10823_v56 = vld [vmem:[#allocation2 + $0x370] sm:$0xff]  ;;  %953 = vst.msk [vmem:[#allocation2 + $0x3d1] sm:$0xff] %vm742_vm2, %v726_v49  ;;  %v729_v61 = vmax.f32 %v615_v51, 0.0  ;;  %v610_v62 = vadd.f32 %v10488_v16, %v609_v53 }
 0x132   :  { %8941 = vmatmul.mubr.msk.f32.gmra.mxu1 %vm742_vm2, %v1082_v54  ;;  %9045 = vmatmul.mubr.msk.f32.gmra.mxu0 %vm742_vm2, %v10823_v56  ;;  %v8850_v4 = vpop.f32.mrf.mxu0 }
 0x133   :  { %8943 = vmatprep.mubr.msk.f32.mxu1 %vm742_vm2, %v1083_v63  ;;  %9047 = vmatprep.mubr.msk.f32.mxu0 %vm742_vm2, %v10830_v3  ;;  %956 = vst.msk [vmem:[#allocation2 + $0x401] sm:$0xff] %vm742_vm2, %v729_v61  ;;  %v728_v7 = vmax.f32 %v610_v62, 0.0  ;;  %v625_v11 = vadd.f32 %v8850_v4, %v10488_v16 }
 0x134   :  { %v619_v22 = vpop.f32.mrf.mxu0  ;;  %v1084_v25 = vld [vmem:[#allocation2 + $0x391] sm:$0xff] }
 0x135   :  { %v10837_v27 = vld [vmem:[#allocation2 + $0x390] sm:$0xff]  ;;  %955 = vst.msk [vmem:[#allocation2 + $0x3f1] sm:$0xff] %vm742_vm2, %v728_v7  ;;  %v731_v29 = vmax.f32 %v625_v11, 0.0  ;;  %v620_v30 = vadd.f32 %v10488_v16, %v619_v22 }
 0x136   :  { %8944 = vmatmul.mubr.msk.f32.gmra.mxu1 %vm742_vm2, %v1084_v25  ;;  %9048 = vmatmul.mubr.msk.f32.gmra.mxu0 %vm742_vm2, %v10837_v27  ;;  %v8853_v37 = vpop.f32.mrf.mxu0  ;;  %v1087_v61 = vld [vmem:[#allocation2 + $0x3e1] sm:$0xff] }
 0x137   :  { %8946 = vmatprep.mubr.msk.f32.mxu1 %vm742_vm2, %v1085_v13  ;;  %9050 = vmatprep.mubr.msk.f32.mxu0 %vm742_vm2, %v1017_v18  ;;  %958 = vst.msk [vmem:[#allocation2 + $0x421] sm:$0xff] %vm742_vm2, %v731_v29  ;;  %v730_v39 = vmax.f32 %v620_v30, 0.0  ;;  %v635_v42 = vadd.f32 %v8853_v37, %v10488_v16  ;;  %v10855_v62 = vld [vmem:[#allocation2 + $0x3e0] sm:$0xff] }
 0x138   :  { %v629_v47 = vpop.f32.mrf.mxu0  ;;  %v1086_v49 = vld [vmem:[#allocation2 + $0x3d1] sm:$0xff] }
 0x139   :  { %v10848_v51 = vld [vmem:[#allocation2 + $0x3d0] sm:$0xff]  ;;  %957 = vst.msk [vmem:[#allocation2 + $0x411] sm:$0xff] %vm742_vm2, %v730_v39  ;;  %v733_v53 = vmax.f32 %v635_v42, 0.0  ;;  %v630_v54 = vadd.f32 %v10488_v16, %v629_v47 }
 0x13a   :  { %8947 = vmatmul.mubr.msk.f32.gmra.mxu1 %vm742_vm2, %v1086_v49  ;;  %9051 = vmatmul.mubr.msk.f32.gmra.mxu0 %vm742_vm2, %v10848_v51  ;;  %v8856_v63 = vpop.f32.mrf.mxu0  ;;  %v1089_v29 = vld [vmem:[#allocation2 + $0x401] sm:$0xff] }
 0x13b   :  { %8949 = vmatprep.mubr.msk.f32.mxu1 %vm742_vm2, %v1087_v61  ;;  %9053 = vmatprep.mubr.msk.f32.mxu0 %vm742_vm2, %v10855_v62  ;;  %960 = vst.msk [vmem:[#allocation2 + $0x441] sm:$0xff] %vm742_vm2, %v733_v53  ;;  %v732_v4 = vmax.f32 %v630_v54, 0.0  ;;  %v645_v7 = vadd.f32 %v8856_v63, %v10488_v16  ;;  %v10869_v30 = vld [vmem:[#allocation2 + $0x400] sm:$0xff] }
 0x13c   :  { %v639_v11 = vpop.f32.mrf.mxu0  ;;  %v1088_v13 = vld [vmem:[#allocation2 + $0x3f1] sm:$0xff] }
 0x13d   :  { %v10862_v18 = vld [vmem:[#allocation2 + $0x3f0] sm:$0xff]  ;;  %959 = vst.msk [vmem:[#allocation2 + $0x431] sm:$0xff] %vm742_vm2, %v732_v4  ;;  %v735_v22 = vmax.f32 %v645_v7, 0.0  ;;  %v640_v25 = vadd.f32 %v10488_v16, %v639_v11 }
 0x13e   :  { %8950 = vmatmul.mubr.msk.f32.gmra.mxu1 %vm742_vm2, %v1088_v13  ;;  %9054 = vmatmul.mubr.msk.f32.gmra.mxu0 %vm742_vm2, %v10862_v18  ;;  %v8859_v37 = vpop.f32.mrf.mxu0  ;;  %v1091_v63 = vld [vmem:[#allocation2 + $0x421] sm:$0xff] }
 0x13f   :  { %8952 = vmatprep.mubr.msk.f32.mxu1 %vm742_vm2, %v1089_v29  ;;  %9056 = vmatprep.mubr.msk.f32.mxu0 %vm742_vm2, %v10869_v30  ;;  %962 = vst.msk [vmem:[#allocation2 + $0x481] sm:$0xff] %vm742_vm2, %v735_v22  ;;  %v734_v39 = vmax.f32 %v640_v25, 0.0  ;;  %v655_v42 = vadd.f32 %v8859_v37, %v10488_v16  ;;  %v10883_v4 = vld [vmem:[#allocation2 + $0x420] sm:$0xff] }
 0x140   :  { %v649_v47 = vpop.f32.mrf.mxu0  ;;  %v1090_v49 = vld [vmem:[#allocation2 + $0x411] sm:$0xff]  ;;  %v1093_v22 = vld [vmem:[#allocation2 + $0x461] sm:$0xff] }
 0x141   :  { %v10876_v53 = vld [vmem:[#allocation2 + $0x410] sm:$0xff]  ;;  %961 = vst.msk [vmem:[#allocation2 + $0x471] sm:$0xff] %vm742_vm2, %v734_v39  ;;  %v737_v54 = vmax.f32 %v655_v42, 0.0  ;;  %v650_v61 = vadd.f32 %v10488_v16, %v649_v47  ;;  %v1025_v25 = vld [vmem:[#allocation2 + $0x460] sm:$0xff] }
 0x142   :  { %8953 = vmatmul.mubr.msk.f32.gmra.mxu1 %vm742_vm2, %v1090_v49  ;;  %9057 = vmatmul.mubr.msk.f32.gmra.mxu0 %vm742_vm2, %v10876_v53  ;;  %v8862_v7 = vpop.f32.mrf.mxu0 }
 0x143   :  { %8955 = vmatprep.mubr.msk.f32.mxu1 %vm742_vm2, %v1091_v63  ;;  %9059 = vmatprep.mubr.msk.f32.mxu0 %vm742_vm2, %v10883_v4  ;;  %964 = vst.msk [vmem:[#allocation2 + $0x4a1] sm:$0xff] %vm742_vm2, %v737_v54  ;;  %v736_v11 = vmax.f32 %v650_v61, 0.0  ;;  %v665_v13 = vadd.f32 %v8862_v7, %v10488_v16 }
 0x144   :  { %v659_v29 = vpop.f32.mrf.mxu0  ;;  %v1092_v37 = vld [vmem:[#allocation2 + $0x431] sm:$0xff] }
 0x145   :  { %v10890_v39 = vld [vmem:[#allocation2 + $0x430] sm:$0xff]  ;;  %963 = vst.msk [vmem:[#allocation2 + $0x491] sm:$0xff] %vm742_vm2, %v736_v11  ;;  %v739_v42 = vmax.f32 %v665_v13, 0.0  ;;  %v660_v47 = vadd.f32 %v10488_v16, %v659_v29 }
 0x146   :  { %8956 = vmatmul.mubr.msk.f32.gmra.mxu1 %vm742_vm2, %v1092_v37  ;;  %9060 = vmatmul.mubr.msk.f32.gmra.mxu0 %vm742_vm2, %v10890_v39  ;;  %v8865_v49 = vpop.f32.mrf.mxu0 }
 0x147   :  { %8958 = vmatprep.mubr.msk.f32.mxu1 %vm742_vm2, %v1093_v22  ;;  %9062 = vmatprep.mubr.msk.f32.mxu0 %vm742_vm2, %v1025_v25  ;;  %966 = vst.msk [vmem:[#allocation2 + $0x4c1] sm:$0xff] %vm742_vm2, %v739_v42  ;;  %v738_v54 = vmax.f32 %v660_v47, 0.0  ;;  %v675_v61 = vadd.f32 %v8865_v49, %v10488_v16  ;;  %v1095_v22 = vld [vmem:[#allocation2 + $0x481] sm:$0xff] }
 0x148   :  { %v669_v63 = vpop.f32.mrf.mxu0  ;;  %v1094_v7 = vld [vmem:[#allocation2 + $0x471] sm:$0xff]  ;;  %v10908_v25 = vld [vmem:[#allocation2 + $0x480] sm:$0xff] }
 0x149   :  { %v10901_v11 = vld [vmem:[#allocation2 + $0x470] sm:$0xff]  ;;  %965 = vst.msk [vmem:[#allocation2 + $0x4b1] sm:$0xff] %vm742_vm2, %v738_v54  ;;  %v741_v13 = vmax.f32 %v675_v61, 0.0  ;;  %v670_v29 = vadd.f32 %v10488_v16, %v669_v63 }
 0x14a   :  { %8959 = vmatmul.mubr.msk.f32.gmra.mxu1 %vm742_vm2, %v1094_v7  ;;  %9063 = vmatmul.mubr.msk.f32.gmra.mxu0 %vm742_vm2, %v10901_v11  ;;  %v1097_v16 = vld [vmem:[#allocation2 + $0x4a1] sm:$0xff] }
 0x14b   :  { %8961 = vmatprep.mubr.msk.f32.mxu1 %vm742_vm2, %v1095_v22  ;;  %9065 = vmatprep.mubr.msk.f32.mxu0 %vm742_vm2, %v10908_v25  ;;  %968 = vst.msk [vmem:[#allocation2 + $0x4e1] sm:$0xff] %vm742_vm2, %v741_v13  ;;  %v740_v37 = vmax.f32 %v670_v29, 0.0  ;;  %v10920_v49 = vld [vmem:[#allocation2 + $0x4a0] sm:$0xff]  ;;  %v4453_v13 = vld [vmem:[%s12855_s3 + $0xb8] sm:$0xff] }
 0x14c   :  { %v1096_v42 = vld [vmem:[#allocation2 + $0x491] sm:$0xff]  ;;  %v2259_v29 = vld [vmem:[#allocation2 + $0x2] sm:$0xff]  ;;  %9386 = vmatprep.subr.mxu0 %v4453_v13 }
 0x14d   :  { %v10914_v47 = vld [vmem:[#allocation2 + $0x490] sm:$0xff]  ;;  %967 = vst.msk [vmem:[#allocation2 + $0x4d1] sm:$0xff] %vm742_vm2, %v740_v37 }
 0x14e   :  { %8962 = vmatmul.mubr.msk.f32.gmra.mxu1 %vm742_vm2, %v1096_v42  ;;  %9066 = vmatmul.mubr.msk.f32.gmra.mxu0 %vm742_vm2, %v10914_v47  ;;  %v1099_v63 = vld [vmem:[#allocation2 + $0x4c1] sm:$0xff]  ;;  %v10946_v42 = vld [vmem:[#allocation2 + $0x12] sm:$0xff] }
 0x14f   :  { %8964 = vmatprep.mubr.msk.f32.mxu1 %vm742_vm2, %v1097_v16  ;;  %9068 = vmatprep.mubr.msk.f32.mxu0 %vm742_vm2, %v10920_v49  ;;  %v10930_v7 = vld [vmem:[#allocation2 + $0x4c0] sm:$0xff]  ;;  %v3743_v16 = vld [vmem:[%s12855_s3 + $0x90] sm:$0xff] }
 0x150   :  { %v1098_v54 = vld [vmem:[#allocation2 + $0x4b1] sm:$0xff] }
 0x151   :  { %v10925_v61 = vld [vmem:[#allocation2 + $0x4b0] sm:$0xff] }
 0x152   :  { %8965 = vmatmul.mubr.msk.f32.gmra.mxu1 %vm742_vm2, %v1098_v54  ;;  %9069 = vmatmul.mubr.msk.f32.gmra.mxu0 %vm742_vm2, %v10925_v61  ;;  %v10955_v54 = vld [vmem:[#allocation2 + $0x22] sm:$0xff] }
 0x153   :  { %8967 = vmatprep.mubr.msk.f32.mxu1 %vm742_vm2, %v1099_v63  ;;  %9071 = vmatprep.mubr.msk.f32.mxu0 %vm742_vm2, %v10930_v7  ;;  %v3742_v63 = vld [vmem:[%s12855_s3 + $0x88] sm:$0xff] }
 0x154   :  { %v1100_v22 = vld [vmem:[#allocation2 + $0x4d1] sm:$0xff] }
 0x155   :  { %v10938_v37 = vld [vmem:[#allocation2 + $0x4d0] sm:$0xff] }
 0x156   :  { %8968 = vmatmul.mubr.msk.f32.gmra.mxu1 %vm742_vm2, %v1100_v22  ;;  %9072 = vmatmul.mubr.msk.f32.gmra.mxu0 %vm742_vm2, %v10938_v37  ;;  %v2267_v22 = vld [vmem:[#allocation2 + $0xa2] sm:$0xff] }
 0x157   :  { %9186 = vmatprep.mubr.msk.f32.mxu0 %vm742_vm2, %v10505_v40  ;;  %9082 = vmatprep.mubr.msk.f32.mxu1 %vm742_vm2, %v2259_v29  ;;  %v10962_v40 = vld [vmem:[#allocation2 + $0x32] sm:$0xff]  ;;  %v2975_v29 = vld [vmem:[#allocation2 + $0x80] sm:$0xff] }
 0x15a   :  { %9083 = vmatmul.mubr.msk.f32.vlgmr.msra.gmra.mxu1 %vm742_vm2, %v10946_v42  ;;  %9187 = vmatmul.mubr.msk.f32.vlgmr.msra.gmra.mxu0 %vm742_vm2, %v10517_v46  ;;  %v4452_v46 = vld [vmem:[%s12855_s3 + $0xb0] sm:$0xff] }
 0x15b   :  { %9283 = vmatpush3.msra.mxu1 %v10571_v15  ;;  %9085 = vmatprep.mubr.msk.f32.mxu1 %vm742_vm2, %v10955_v54  ;;  %v10980_v15 = vld [vmem:[#allocation2 + $0x52] sm:$0xff] }
 0x15c   :  { %9189 = vmatprep.mubr.msk.f32.mxu0 %vm742_vm2, %v10526_v52  ;;  %9284 = vmatprep.subr.mxu1 %v3743_v16  ;;  %v10974_v52 = vld [vmem:[#allocation2 + $0x42] sm:$0xff] }
 0x15d   :  { %9285 = vmatpush3.msra.mxu1 %v3743_v16  ;;  %9387 = vmatpush3.msra.mxu0 %v4453_v13  ;;  %v3741_v13 = vld [vmem:[%s12855_s3 + $0x80] sm:$0xff]  ;;  %v10998_v16 = vld [vmem:[#allocation2 + $0x72] sm:$0xff] }
 0x15e   :  { %9086 = vmatmul.mubr.msk.f32.gmra.mxu1 %vm742_vm2, %v10962_v40  ;;  %9190 = vmatmul.mubr.msk.f32.gmra.mxu0 %vm742_vm2, %v10536_v57  ;;  %v4451_v57 = vld [vmem:[%s12855_s3 + $0xa8] sm:$0xff] }
 0x15f   :  { %9088 = vmatprep.mubr.msk.f32.mxu1 %vm742_vm2, %v10974_v52  ;;  %9192 = vmatprep.mubr.msk.f32.mxu0 %vm742_vm2, %v10546_v0  ;;  %v10992_v0 = vld [vmem:[#allocation2 + $0x62] sm:$0xff] }
 0x160   :  { %9286 = vmatprep.subr.mxu1 %v3742_v63  ;;  %9388 = vmatprep.subr.mxu0 %v4452_v46 }
 0x161   :  { %9287 = vmatpush3.msra.mxu1 %v3742_v63  ;;  %9389 = vmatpush3.msra.mxu0 %v4452_v46  ;;  %v11006_v63 = vld [vmem:[%s12855_s3 + $0xd8] sm:$0xff]  ;;  %v11021_v46 = vld [vmem:[#allocation2 + $0xc2] sm:$0xff] }
 0x162   :  { %9089 = vmatmul.mubr.msk.f32.gmra.mxu1 %vm742_vm2, %v10980_v15  ;;  %9193 = vmatmul.mubr.msk.f32.gmra.mxu0 %vm742_vm2, %v10556_v5  ;;  %v4450_v5 = vld [vmem:[%s12855_s3 + $0xa0] sm:$0xff] }
 0x163   :  { %9091 = vmatprep.mubr.msk.f32.mxu1 %vm742_vm2, %v10992_v0  ;;  %9195 = vmatprep.mubr.msk.f32.mxu0 %vm742_vm2, %v10566_v14  ;;  %v11015_v14 = vld [vmem:[#allocation2 + $0xb2] sm:$0xff] }
 0x164   :  { %9288 = vmatprep.subr.mxu1 %v3741_v13  ;;  %9390 = vmatprep.subr.mxu0 %v4451_v57 }
 0x165   :  { %9289 = vmatpush3.msra.mxu1 %v3741_v13  ;;  %9391 = vmatpush3.msra.mxu0 %v4451_v57  ;;  %v11033_v13 = vld [vmem:[#allocation2 + $0xe2] sm:$0xff]  ;;  %v11051_v57 = vld [vmem:[#allocation2 + $0x112] sm:$0xff] }
 0x166   :  { %9092 = vmatmul.mubr.msk.f32.gmra.mxu1 %vm742_vm2, %v10998_v16  ;;  %9196 = vmatmul.mubr.msk.f32.gmra.mxu0 %vm742_vm2, %v2975_v29  ;;  %v11071_v29 = vld [vmem:[#allocation2 + $0x172] sm:$0xff] }
 0x167   :  { %9198 = vmatprep.mubr.msk.f32.mxu0 %vm742_vm2, %v10583_v24  ;;  %9094 = vmatprep.mubr.msk.f32.mxu1 %vm742_vm2, %v2267_v22  ;;  %v11027_v24 = vld [vmem:[#allocation2 + $0xd2] sm:$0xff] }
 0x168   :  { %9392 = vmatprep.subr.mxu0 %v4450_v5  ;;  %9490 = vmatprep.subr.mxu1 %v11006_v63  ;;  %v11095_v22 = vld [vmem:[#allocation2 + $0x1b2] sm:$0xff] }
 0x169   :  { %9393 = vmatpush3.msra.mxu0 %v4450_v5  ;;  %v11115_v5 = vld [vmem:[#allocation2 + $0x212] sm:$0xff] }
 0x16a   :  { %9095 = vmatmul.mubr.msk.f32.gmra.mxu1 %vm742_vm2, %v11015_v14  ;;  %9199 = vmatmul.mubr.msk.f32.gmra.mxu0 %vm742_vm2, %v10590_v28  ;;  %v11039_v28 = vld [vmem:[#allocation2 + $0xf2] sm:$0xff] }
 0x16b   :  { %9097 = vmatprep.mubr.msk.f32.mxu1 %vm742_vm2, %v11021_v46  ;;  %9201 = vmatprep.mubr.msk.f32.mxu0 %vm742_vm2, %v10597_v34  ;;  %v11045_v34 = vld [vmem:[#allocation2 + $0x102] sm:$0xff] }
 0x16e   :  { %9098 = vmatmul.mubr.msk.f32.gmra.mxu1 %vm742_vm2, %v11027_v24  ;;  %9202 = vmatmul.mubr.msk.f32.gmra.mxu0 %vm742_vm2, %v10604_v38  ;;  %v2275_v38 = vld [vmem:[#allocation2 + $0x142] sm:$0xff] }
 0x16f   :  { %9100 = vmatprep.mubr.msk.f32.mxu1 %vm742_vm2, %v11033_v13  ;;  %9204 = vmatprep.mubr.msk.f32.mxu0 %vm742_vm2, %v10611_v45  ;;  %v2983_v45 = vld [vmem:[#allocation2 + $0x120] sm:$0xff] }
 0x172   :  { %9101 = vmatmul.mubr.msk.f32.gmra.mxu1 %vm742_vm2, %v11039_v28  ;;  %9205 = vmatmul.mubr.msk.f32.gmra.mxu0 %vm742_vm2, %v10618_v50  ;;  %v11059_v50 = vld [vmem:[#allocation2 + $0x152] sm:$0xff] }
 0x173   :  { %9103 = vmatprep.mubr.msk.f32.mxu1 %vm742_vm2, %v11045_v34  ;;  %9207 = vmatprep.mubr.msk.f32.mxu0 %vm742_vm2, %v10625_v60  ;;  %v11065_v60 = vld [vmem:[#allocation2 + $0x162] sm:$0xff] }
 0x176   :  { %9104 = vmatmul.mubr.msk.f32.gmra.mxu1 %vm742_vm2, %v11051_v57  ;;  %9208 = vmatmul.mubr.msk.f32.gmra.mxu0 %vm742_vm2, %v2983_v45 }
 0x177   :  { %9210 = vmatprep.mubr.msk.f32.mxu0 %vm742_vm2, %v10636_v6  ;;  %9106 = vmatprep.mubr.msk.f32.mxu1 %vm742_vm2, %v2275_v38  ;;  %v11077_v6 = vld [vmem:[#allocation2 + $0x182] sm:$0xff]  ;;  %v11139_v38 = vld [vmem:[#allocation2 + $0x252] sm:$0xff] }
 0x178   :  { %12875 = vst [vmem:[#allocation7_spill] sm:$0xff] %v11139_v38 }
 0x17a   :  { %9107 = vmatmul.mubr.msk.f32.gmra.mxu1 %vm742_vm2, %v11059_v50  ;;  %9211 = vmatmul.mubr.msk.f32.gmra.mxu0 %vm742_vm2, %v10643_v10  ;;  %v11083_v10 = vld [vmem:[#allocation2 + $0x192] sm:$0xff] }
 0x17b   :  { %9109 = vmatprep.mubr.msk.f32.mxu1 %vm742_vm2, %v11065_v60  ;;  %9213 = vmatprep.mubr.msk.f32.mxu0 %vm742_vm2, %v10650_v19  ;;  %v11089_v19 = vld [vmem:[#allocation2 + $0x1a2] sm:$0xff] }
 0x17e   :  { %9110 = vmatmul.mubr.msk.f32.gmra.mxu1 %vm742_vm2, %v11071_v29  ;;  %9214 = vmatmul.mubr.msk.f32.gmra.mxu0 %vm742_vm2, %v10657_v23  ;;  %v2283_v23 = vld [vmem:[#allocation2 + $0x1e2] sm:$0xff] }
 0x17f   :  { %9112 = vmatprep.mubr.msk.f32.mxu1 %vm742_vm2, %v11077_v6  ;;  %9216 = vmatprep.mubr.msk.f32.mxu0 %vm742_vm2, %v10664_v31  ;;  %v2991_v31 = vld [vmem:[#allocation2 + $0x1c0] sm:$0xff] }
 0x182   :  { %9113 = vmatmul.mubr.msk.f32.gmra.mxu1 %vm742_vm2, %v11083_v10  ;;  %9217 = vmatmul.mubr.msk.f32.gmra.mxu0 %vm742_vm2, %v10671_v36  ;;  %v11103_v36 = vld [vmem:[#allocation2 + $0x1f2] sm:$0xff] }
 0x183   :  { %9115 = vmatprep.mubr.msk.f32.mxu1 %vm742_vm2, %v11089_v19  ;;  %9219 = vmatprep.mubr.msk.f32.mxu0 %vm742_vm2, %v10678_v48  ;;  %v11109_v48 = vld [vmem:[#allocation2 + $0x202] sm:$0xff] }
 0x186   :  { %9116 = vmatmul.mubr.msk.f32.gmra.mxu1 %vm742_vm2, %v11095_v22  ;;  %9220 = vmatmul.mubr.msk.f32.gmra.mxu0 %vm742_vm2, %v2991_v31 }
 0x187   :  { %9222 = vmatprep.mubr.msk.f32.mxu0 %vm742_vm2, %v10689_v59  ;;  %9118 = vmatprep.mubr.msk.f32.mxu1 %vm742_vm2, %v2283_v23  ;;  %v11121_v59 = vld [vmem:[#allocation2 + $0x222] sm:$0xff] }
 0x18a   :  { %9119 = vmatmul.mubr.msk.f32.gmra.mxu1 %vm742_vm2, %v11103_v36  ;;  %9223 = vmatmul.mubr.msk.f32.gmra.mxu0 %vm742_vm2, %v10696_v1  ;;  %v11127_v1 = vld [vmem:[#allocation2 + $0x232] sm:$0xff] }
 0x18b   :  { %9121 = vmatprep.mubr.msk.f32.mxu1 %vm742_vm2, %v11109_v48  ;;  %9225 = vmatprep.mubr.msk.f32.mxu0 %vm742_vm2, %v10703_v9  ;;  %v11133_v9 = vld [vmem:[#allocation2 + $0x242] sm:$0xff] }
 0x18c   :  { %12874 = vst [vmem:[#allocation6_spill] sm:$0xff] %v11133_v9 }
 0x18e   :  { %9122 = vmatmul.mubr.msk.f32.gmra.mxu1 %vm742_vm2, %v11115_v5  ;;  %9226 = vmatmul.mubr.msk.f32.gmra.mxu0 %vm742_vm2, %v10710_v17  ;;  %v2291_v17 = vld [vmem:[#allocation2 + $0x282] sm:$0xff] }
 0x18f   :  { %9124 = vmatprep.mubr.msk.f32.mxu1 %vm742_vm2, %v11121_v59  ;;  %9228 = vmatprep.mubr.msk.f32.mxu0 %vm742_vm2, %v10717_v26  ;;  %v2999_v26 = vld [vmem:[#allocation2 + $0x260] sm:$0xff] }
 0x192   :  { %9125 = vmatmul.mubr.msk.f32.gmra.mxu1 %vm742_vm2, %v11127_v1  ;;  %9229 = vmatmul.mubr.msk.f32.gmra.mxu0 %vm742_vm2, %v10724_v32  ;;  %v11147_v32 = vld [vmem:[#allocation2 + $0x292] sm:$0xff] }
 0x193   :  { %9127 = vmatprep.mubr.msk.f32.mxu1 %vm742_vm2, %v11133_v9  ;;  %9231 = vmatprep.mubr.msk.f32.mxu0 %vm742_vm2, %v10731_v44  ;;  %12876 = vst [vmem:[#allocation8_spill] sm:$0xff] %v11147_v32  ;;  %v11153_v44 = vld [vmem:[#allocation2 + $0x2a2] sm:$0xff] }
 0x196   :  { %9128 = vmatmul.mubr.msk.f32.gmra.mxu1 %vm742_vm2, %v11139_v38  ;;  %9232 = vmatmul.mubr.msk.f32.gmra.mxu0 %vm742_vm2, %v2999_v26  ;;  %v11163_v38 = vld [vmem:[#allocation2 + $0x2b2] sm:$0xff] }
 0x197   :  { %9234 = vmatprep.mubr.msk.f32.mxu0 %vm742_vm2, %v10742_v58  ;;  %9130 = vmatprep.mubr.msk.f32.mxu1 %vm742_vm2, %v2291_v17  ;;  %12878 = vst [vmem:[#allocation10_spill] sm:$0xff] %v11163_v38 }
 0x199   :  { %v8876_v45 = vpop.f32.mrf.mxu1 }
 0x19a   :  { %v8980_v23 = vpop.f32.mrf.mxu0  ;;  %9131 = vmatmul.mubr.msk.f32.gmra.mxu1 %vm742_vm2, %v11147_v32  ;;  %9235 = vmatmul.mubr.msk.f32.gmra.mxu0 %vm742_vm2, %v10749_v2  ;;  %v11169_v2 = vld [vmem:[#allocation2 + $0x2c2] sm:$0xff] }
 0x19b   :  { %v11155_v31 = vadd.f32 %v8980_v23, %v8876_v45  ;;  %9133 = vmatprep.mubr.msk.f32.mxu1 %vm742_vm2, %v11153_v44  ;;  %9237 = vmatprep.mubr.msk.f32.mxu0 %vm742_vm2, %v10756_v12  ;;  %v1363_v58 = vpop.f32.mrf.mxu1 }
 0x19c   :  { %v1940_v17 = vpop.f32.mrf.mxu0 }
 0x19d   :  { %v11161_v26 = vadd.f32 %v1940_v17, %v1363_v58  ;;  %v11179_v17 = vld [vmem:[#allocation2 + $0x2d2] sm:$0xff] }
 0x19e   :  { %v8879_v32 = vpop.f32.mrf.mxu1  ;;  %v8983_v9 = vpop.f32.mrf.mxu0  ;;  %9134 = vmatmul.mubr.msk.f32.gmra.mxu1 %vm742_vm2, %v11163_v38  ;;  %9238 = vmatmul.mubr.msk.f32.gmra.mxu0 %vm742_vm2, %v10763_v21  ;;  %12881 = vst [vmem:[#allocation13_spill] sm:$0xff] %v11179_v17  ;;  %v11185_v21 = vld [vmem:[#allocation2 + $0x2e2] sm:$0xff] }
 0x19f   :  { %12877 = vst [vmem:[#allocation9_spill] sm:$0xff] %v11161_v26  ;;  %v11171_v45 = vadd.f32 %v8983_v9, %v8879_v32  ;;  %9136 = vmatprep.mubr.msk.f32.mxu1 %vm742_vm2, %v11169_v2  ;;  %9240 = vmatprep.mubr.msk.f32.mxu0 %vm742_vm2, %v10770_v33 }
 0x1a0   :  { %v1373_v12 = vpop.f32.mrf.mxu1  ;;  %v1950_v23 = vpop.f32.mrf.mxu0 }
 0x1a1   :  { %12879 = vst [vmem:[#allocation11_spill] sm:$0xff] %v11171_v45  ;;  %v11177_v58 = vadd.f32 %v1950_v23, %v1373_v12  ;;  %v2299_v12 = vld [vmem:[#allocation2 + $0x322] sm:$0xff] }
 0x1a2   :  { %v8882_v26 = vpop.f32.mrf.mxu1  ;;  %v8986_v38 = vpop.f32.mrf.mxu0  ;;  %9137 = vmatmul.mubr.msk.f32.gmra.mxu1 %vm742_vm2, %v11179_v17  ;;  %9241 = vmatmul.mubr.msk.f32.gmra.mxu0 %vm742_vm2, %v10777_v41  ;;  %v3007_v17 = vld [vmem:[#allocation2 + $0x300] sm:$0xff] }
 0x1a3   :  { %12880 = vst [vmem:[#allocation12_spill] sm:$0xff] %v11177_v58  ;;  %v11187_v9 = vadd.f32 %v8986_v38, %v8882_v26  ;;  %9139 = vmatprep.mubr.msk.f32.mxu1 %vm742_vm2, %v11185_v21  ;;  %9243 = vmatprep.mubr.msk.f32.mxu0 %vm742_vm2, %v10784_v55  ;;  %v11195_v58 = vld [vmem:[#allocation2 + $0x2f2] sm:$0xff] }
 0x1a4   :  { %v1383_v33 = vpop.f32.mrf.mxu1  ;;  %v1960_v32 = vpop.f32.mrf.mxu0 }
 0x1a5   :  { %12882 = vst [vmem:[#allocation14_spill] sm:$0xff] %v11187_v9  ;;  %v11193_v23 = vadd.f32 %v1960_v32, %v1383_v33  ;;  %v11207_v32 = vld [vmem:[#allocation2 + $0x332] sm:$0xff] }
 0x1a6   :  { %v8885_v45 = vpop.f32.mrf.mxu1  ;;  %v8989_v41 = vpop.f32.mrf.mxu0  ;;  %9140 = vmatmul.mubr.msk.f32.gmra.mxu1 %vm742_vm2, %v11195_v58  ;;  %9244 = vmatmul.mubr.msk.f32.gmra.mxu0 %vm742_vm2, %v3007_v17 }
 0x1a7   :  { %12883 = vst [vmem:[#allocation15_spill] sm:$0xff] %v11193_v23  ;;  %v11200_v38 = vadd.f32 %v8989_v41, %v8885_v45  ;;  %9246 = vmatprep.mubr.msk.f32.mxu0 %vm742_vm2, %v10795_v8  ;;  %9142 = vmatprep.mubr.msk.f32.mxu1 %vm742_vm2, %v2299_v12  ;;  %v11213_v45 = vld [vmem:[#allocation2 + $0x342] sm:$0xff] }
 0x1a8   :  { %v1393_v55 = vpop.f32.mrf.mxu1  ;;  %v1970_v26 = vpop.f32.mrf.mxu0 }
 0x1a9   :  { %v11205_v33 = vadd.f32 %v1970_v26, %v1393_v55  ;;  %v11223_v55 = vld [vmem:[#allocation2 + $0x352] sm:$0xff] }
 0x1aa   :  { %v8888_v23 = vpop.f32.mrf.mxu1  ;;  %v8992_v9 = vpop.f32.mrf.mxu0  ;;  %9143 = vmatmul.mubr.msk.f32.gmra.mxu1 %vm742_vm2, %v11207_v32  ;;  %9247 = vmatmul.mubr.msk.f32.gmra.mxu0 %vm742_vm2, %v10802_v20  ;;  %12886 = vst [vmem:[#allocation18_spill] sm:$0xff] %v11223_v55  ;;  %v11229_v20 = vld [vmem:[#allocation2 + $0x362] sm:$0xff] }
 0x1ab   :  { %12884 = vst [vmem:[#allocation16_spill] sm:$0xff] %v11205_v33  ;;  %v11215_v17 = vadd.f32 %v8992_v9, %v8888_v23  ;;  %9145 = vmatprep.mubr.msk.f32.mxu1 %vm742_vm2, %v11213_v45  ;;  %9249 = vmatprep.mubr.msk.f32.mxu0 %vm742_vm2, %v10809_v35 }
 0x1ac   :  { %v1403_v8 = vpop.f32.mrf.mxu1  ;;  %v1980_v12 = vpop.f32.mrf.mxu0 }
 0x1ad   :  { %v11221_v41 = vadd.f32 %v1980_v12, %v1403_v8  ;;  %v11239_v12 = vld [vmem:[#allocation2 + $0x372] sm:$0xff] }
 0x1ae   :  { %v8891_v26 = vpop.f32.mrf.mxu1  ;;  %v8995_v33 = vpop.f32.mrf.mxu0  ;;  %9146 = vmatmul.mubr.msk.f32.gmra.mxu1 %vm742_vm2, %v11223_v55  ;;  %9250 = vmatmul.mubr.msk.f32.gmra.mxu0 %vm742_vm2, %v10816_v43  ;;  %12889 = vst [vmem:[#allocation21_spill] sm:$0xff] %v11239_v12  ;;  %v11245_v43 = vld [vmem:[#allocation2 + $0x382] sm:$0xff] }
 0x1af   :  { %12885 = vst [vmem:[#allocation17_spill] sm:$0xff] %v11221_v41  ;;  %v11231_v9 = vadd.f32 %v8995_v33, %v8891_v26  ;;  %9148 = vmatprep.mubr.msk.f32.mxu1 %vm742_vm2, %v11229_v20  ;;  %9252 = vmatprep.mubr.msk.f32.mxu0 %vm742_vm2, %v10823_v56 }
 0x1b0   :  { %v1413_v35 = vpop.f32.mrf.mxu1  ;;  %v1990_v23 = vpop.f32.mrf.mxu0 }
 0x1b1   :  { %12887 = vst [vmem:[#allocation19_spill] sm:$0xff] %v11231_v9  ;;  %v11237_v8 = vadd.f32 %v1990_v23, %v1413_v35  ;;  %v2307_v35 = vld [vmem:[#allocation2 + $0x3c2] sm:$0xff] }
 0x1b2   :  { %v8894_v41 = vpop.f32.mrf.mxu1  ;;  %v8998_v55 = vpop.f32.mrf.mxu0  ;;  %9149 = vmatmul.mubr.msk.f32.gmra.mxu1 %vm742_vm2, %v11239_v12  ;;  %9253 = vmatmul.mubr.msk.f32.gmra.mxu0 %vm742_vm2, %v10830_v3  ;;  %v3015_v12 = vld [vmem:[#allocation2 + $0x3a0] sm:$0xff] }
 0x1b3   :  { %12888 = vst [vmem:[#allocation20_spill] sm:$0xff] %v11237_v8  ;;  %v11247_v33 = vadd.f32 %v8998_v55, %v8894_v41  ;;  %9151 = vmatprep.mubr.msk.f32.mxu1 %vm742_vm2, %v11245_v43  ;;  %9255 = vmatprep.mubr.msk.f32.mxu0 %vm742_vm2, %v10837_v27  ;;  %v11255_v8 = vld [vmem:[#allocation2 + $0x392] sm:$0xff] }
 0x1b4   :  { %v1423_v56 = vpop.f32.mrf.mxu1  ;;  %v2000_v26 = vpop.f32.mrf.mxu0 }
 0x1b5   :  { %12890 = vst [vmem:[#allocation22_spill] sm:$0xff] %v11247_v33  ;;  %v11253_v23 = vadd.f32 %v2000_v26, %v1423_v56  ;;  %v11267_v26 = vld [vmem:[#allocation2 + $0x3d2] sm:$0xff] }
 0x1b6   :  { %v8897_v9 = vpop.f32.mrf.mxu1  ;;  %v9001_v3 = vpop.f32.mrf.mxu0  ;;  %9152 = vmatmul.mubr.msk.f32.gmra.mxu1 %vm742_vm2, %v11255_v8  ;;  %9256 = vmatmul.mubr.msk.f32.gmra.mxu0 %vm742_vm2, %v3015_v12 }
 0x1b7   :  { %12891 = vst [vmem:[#allocation23_spill] sm:$0xff] %v11253_v23  ;;  %v11260_v41 = vadd.f32 %v9001_v3, %v8897_v9  ;;  %9258 = vmatprep.mubr.msk.f32.mxu0 %vm742_vm2, %v10848_v51  ;;  %9154 = vmatprep.mubr.msk.f32.mxu1 %vm742_vm2, %v2307_v35  ;;  %v11273_v9 = vld [vmem:[#allocation2 + $0x3e2] sm:$0xff] }
 0x1b8   :  { %v1433_v27 = vpop.f32.mrf.mxu1  ;;  %v2010_v55 = vpop.f32.mrf.mxu0 }
 0x1b9   :  { %v11265_v56 = vadd.f32 %v2010_v55, %v1433_v27  ;;  %v11283_v27 = vld [vmem:[#allocation2 + $0x3f2] sm:$0xff] }
 0x1ba   :  { %v8900_v23 = vpop.f32.mrf.mxu1  ;;  %v9004_v33 = vpop.f32.mrf.mxu0  ;;  %9155 = vmatmul.mubr.msk.f32.gmra.mxu1 %vm742_vm2, %v11267_v26  ;;  %9259 = vmatmul.mubr.msk.f32.gmra.mxu0 %vm742_vm2, %v10855_v62  ;;  %12894 = vst [vmem:[#allocation26_spill] sm:$0xff] %v11283_v27  ;;  %v11289_v62 = vld [vmem:[#allocation2 + $0x402] sm:$0xff] }
 0x1bb   :  { %12892 = vst [vmem:[#allocation24_spill] sm:$0xff] %v11265_v56  ;;  %v11275_v12 = vadd.f32 %v9004_v33, %v8900_v23  ;;  %9157 = vmatprep.mubr.msk.f32.mxu1 %vm742_vm2, %v11273_v9  ;;  %9261 = vmatprep.mubr.msk.f32.mxu0 %vm742_vm2, %v10862_v18 }
 0x1bc   :  { %v1443_v51 = vpop.f32.mrf.mxu1  ;;  %v2020_v35 = vpop.f32.mrf.mxu0 }
 0x1bd   :  { %v11281_v3 = vadd.f32 %v2020_v35, %v1443_v51  ;;  %v11299_v35 = vld [vmem:[#allocation2 + $0x412] sm:$0xff] }
 0x1be   :  { %v8903_v55 = vpop.f32.mrf.mxu1  ;;  %v9007_v56 = vpop.f32.mrf.mxu0  ;;  %9158 = vmatmul.mubr.msk.f32.gmra.mxu1 %vm742_vm2, %v11283_v27  ;;  %9262 = vmatmul.mubr.msk.f32.gmra.mxu0 %vm742_vm2, %v10869_v30  ;;  %12897 = vst [vmem:[#allocation29_spill] sm:$0xff] %v11299_v35  ;;  %v11305_v30 = vld [vmem:[#allocation2 + $0x422] sm:$0xff] }
 0x1bf   :  { %12893 = vst [vmem:[#allocation25_spill] sm:$0xff] %v11281_v3  ;;  %v11291_v33 = vadd.f32 %v9007_v56, %v8903_v55  ;;  %9160 = vmatprep.mubr.msk.f32.mxu1 %vm742_vm2, %v11289_v62  ;;  %9264 = vmatprep.mubr.msk.f32.mxu0 %vm742_vm2, %v10876_v53 }
 0x1c0   :  { %v1453_v18 = vpop.f32.mrf.mxu1  ;;  %v2030_v23 = vpop.f32.mrf.mxu0 }
 0x1c1   :  { %12895 = vst [vmem:[#allocation27_spill] sm:$0xff] %v11291_v33  ;;  %v11297_v51 = vadd.f32 %v2030_v23, %v1453_v18  ;;  %v2315_v18 = vld [vmem:[#allocation2 + $0x462] sm:$0xff] }
 0x1c2   :  { %v8906_v3 = vpop.f32.mrf.mxu1  ;;  %v9010_v27 = vpop.f32.mrf.mxu0  ;;  %9161 = vmatmul.mubr.msk.f32.gmra.mxu1 %vm742_vm2, %v11299_v35  ;;  %9265 = vmatmul.mubr.msk.f32.gmra.mxu0 %vm742_vm2, %v10883_v4  ;;  %v3023_v35 = vld [vmem:[#allocation2 + $0x440] sm:$0xff] }
 0x1c3   :  { %12896 = vst [vmem:[#allocation28_spill] sm:$0xff] %v11297_v51  ;;  %v11307_v56 = vadd.f32 %v9010_v27, %v8906_v3  ;;  %9163 = vmatprep.mubr.msk.f32.mxu1 %vm742_vm2, %v11305_v30  ;;  %9267 = vmatprep.mubr.msk.f32.mxu0 %vm742_vm2, %v10890_v39  ;;  %v11315_v51 = vld [vmem:[#allocation2 + $0x432] sm:$0xff] }
 0x1c4   :  { %v1463_v53 = vpop.f32.mrf.mxu1  ;;  %v2040_v55 = vpop.f32.mrf.mxu0 }
 0x1c5   :  { %12898 = vst [vmem:[#allocation30_spill] sm:$0xff] %v11307_v56  ;;  %v11313_v23 = vadd.f32 %v2040_v55, %v1463_v53  ;;  %v11327_v55 = vld [vmem:[#allocation2 + $0x472] sm:$0xff] }
 0x1c6   :  { %v8909_v33 = vpop.f32.mrf.mxu1  ;;  %v9013_v4 = vpop.f32.mrf.mxu0  ;;  %9164 = vmatmul.mubr.msk.f32.gmra.mxu1 %vm742_vm2, %v11315_v51  ;;  %9268 = vmatmul.mubr.msk.f32.gmra.mxu0 %vm742_vm2, %v3023_v35 }
 0x1c7   :  { %12899 = vst [vmem:[#allocation31_spill] sm:$0xff] %v11313_v23  ;;  %v11320_v3 = vadd.f32 %v9013_v4, %v8909_v33  ;;  %9270 = vmatprep.mubr.msk.f32.mxu0 %vm742_vm2, %v10901_v11  ;;  %9166 = vmatprep.mubr.msk.f32.mxu1 %vm742_vm2, %v2315_v18  ;;  %v11333_v33 = vld [vmem:[#allocation2 + $0x482] sm:$0xff] }
 0x1c8   :  { %v1473_v39 = vpop.f32.mrf.mxu1  ;;  %v2050_v27 = vpop.f32.mrf.mxu0 }
 0x1c9   :  { %v11325_v53 = vadd.f32 %v2050_v27, %v1473_v39  ;;  %v11343_v39 = vld [vmem:[#allocation2 + $0x492] sm:$0xff] }
 0x1ca   :  { %v8912_v23 = vpop.f32.mrf.mxu1  ;;  %v9016_v56 = vpop.f32.mrf.mxu0  ;;  %9167 = vmatmul.mubr.msk.f32.gmra.mxu1 %vm742_vm2, %v11327_v55  ;;  %9271 = vmatmul.mubr.msk.f32.gmra.mxu0 %vm742_vm2, %v10908_v25  ;;  %12902 = vst [vmem:[#allocation34_spill] sm:$0xff] %v11343_v39  ;;  %v11349_v25 = vld [vmem:[#allocation2 + $0x4a2] sm:$0xff] }
 0x1cb   :  { %12900 = vst [vmem:[#allocation32_spill] sm:$0xff] %v11325_v53  ;;  %v11335_v35 = vadd.f32 %v9016_v56, %v8912_v23  ;;  %9169 = vmatprep.mubr.msk.f32.mxu1 %vm742_vm2, %v11333_v33  ;;  %9273 = vmatprep.mubr.msk.f32.mxu0 %vm742_vm2, %v10914_v47 }
 0x1cc   :  { %v1483_v11 = vpop.f32.mrf.mxu1  ;;  %v2060_v18 = vpop.f32.mrf.mxu0 }
 0x1cd   :  { %v11341_v4 = vadd.f32 %v2060_v18, %v1483_v11  ;;  %v11359_v18 = vld [vmem:[#allocation2 + $0x4b2] sm:$0xff] }
 0x1ce   :  { %v8915_v27 = vpop.f32.mrf.mxu1  ;;  %v9019_v53 = vpop.f32.mrf.mxu0  ;;  %9170 = vmatmul.mubr.msk.f32.gmra.mxu1 %vm742_vm2, %v11343_v39  ;;  %9274 = vmatmul.mubr.msk.f32.gmra.mxu0 %vm742_vm2, %v10920_v49  ;;  %12904 = vst [vmem:[#allocation36_spill] sm:$0xff] %v11359_v18  ;;  %v11365_v49 = vld [vmem:[#allocation2 + $0x4c2] sm:$0xff] }
 0x1cf   :  { %12901 = vst [vmem:[#allocation33_spill] sm:$0xff] %v11341_v4  ;;  %v11351_v56 = vadd.f32 %v9019_v53, %v8915_v27  ;;  %9172 = vmatprep.mubr.msk.f32.mxu1 %vm742_vm2, %v11349_v25  ;;  %9276 = vmatprep.mubr.msk.f32.mxu0 %vm742_vm2, %v10925_v61  ;;  %12905 = vst [vmem:[#allocation37_spill] sm:$0xff] %v11365_v49 }
 0x1d0   :  { %v1493_v47 = vpop.f32.mrf.mxu1  ;;  %v2070_v23 = vpop.f32.mrf.mxu0 }
 0x1d1   :  { %v11357_v11 = vadd.f32 %v2070_v23, %v1493_v47  ;;  %v5872_v47 = vld [vmem:[%s12855_s3 + $0xf8] sm:$0xff] }
 0x1d2   :  { %v8918_v4 = vpop.f32.mrf.mxu1  ;;  %v9022_v39 = vpop.f32.mrf.mxu0  ;;  %9173 = vmatmul.mubr.msk.f32.gmra.mxu1 %vm742_vm2, %v11359_v18  ;;  %9277 = vmatmul.mubr.msk.f32.gmra.mxu0 %vm742_vm2, %v10930_v7  ;;  %v3031_v7 = vld [vmem:[#allocation2 + $0x4e0] sm:$0xff] }
 0x1d3   :  { %12903 = vst [vmem:[#allocation35_spill] sm:$0xff] %v11357_v11  ;;  %v11367_v53 = vadd.f32 %v9022_v39, %v8918_v4  ;;  %9175 = vmatprep.mubr.msk.f32.mxu1 %vm742_vm2, %v11365_v49  ;;  %9279 = vmatprep.mubr.msk.f32.mxu0 %vm742_vm2, %v10938_v37  ;;  %v11378_v11 = vld [vmem:[#allocation2 + $0x4d2] sm:$0xff]  ;;  %v11390_v49 = vld [vmem:[#allocation2 + $0x21] sm:$0xff] }
 0x1d4   :  { %v1503_v61 = vpop.f32.mrf.mxu1  ;;  %v2080_v27 = vpop.f32.mrf.mxu0  ;;  %12908 = vst [vmem:[#allocation40_spill] sm:$0xff] %v11378_v11  ;;  %9594 = vmatprep.subr.mxu0 %v5872_v47  ;;  %v3677_v37 = vld [vmem:[#allocation2 + $0x11] sm:$0xff] }
 0x1d5   :  { %12906 = vst [vmem:[#allocation38_spill] sm:$0xff] %v11367_v53  ;;  %v11376_v23 = vadd.f32 %v2080_v27, %v1503_v61 }
 0x1d6   :  { %v8921_v4 = vpop.f32.mrf.mxu1  ;;  %v9025_v39 = vpop.f32.mrf.mxu0  ;;  %9176 = vmatmul.mubr.msk.f32.gmra.mxu1 %vm742_vm2, %v11378_v11  ;;  %9280 = vmatmul.mubr.msk.f32.gmra.mxu0 %vm742_vm2, %v3031_v7  ;;  %v5162_v11 = vld [vmem:[%s12855_s3 + $0xd0] sm:$0xff] }
 0x1d7   :  { %12907 = vst [vmem:[#allocation39_spill] sm:$0xff] %v11376_v23  ;;  %v11383_v53 = vadd.f32 %v9025_v39, %v8921_v4  ;;  %9290 = vmatprep.mubr.msk.f32.mxu1 %vm742_vm2, %v3677_v37  ;;  %9394 = vmatprep.mubr.msk.f32.mxu0 %vm742_vm2, %v10946_v42  ;;  %v11399_v4 = vld [vmem:[#allocation2 + $0x31] sm:$0xff] }
 0x1d8   :  { %v1513_v61 = vpop.f32.mrf.mxu1  ;;  %v2090_v27 = vpop.f32.mrf.mxu0 }
 0x1d9   :  { %v11388_v23 = vadd.f32 %v2090_v27, %v1513_v61  ;;  %v11410_v27 = vld [vmem:[#allocation2 + $0x41] sm:$0xff] }
 0x1da   :  { %v8924_v18 = vpop.f32.mrf.mxu1  ;;  %v9028_v7 = vpop.f32.mrf.mxu0  ;;  %9291 = vmatmul.mubr.msk.f32.vlgmr.msra.gmra.mxu1 %vm742_vm2, %v11390_v49  ;;  %9395 = vmatmul.mubr.msk.f32.vlgmr.msra.gmra.mxu0 %vm742_vm2, %v10955_v54  ;;  %v5161_v54 = vld [vmem:[%s12855_s3 + $0xc8] sm:$0xff] }
 0x1db   :  { %v11401_v42 = vadd.f32 %v9028_v7, %v8924_v18  ;;  %9491 = vmatpush3.msra.mxu1 %v11006_v63  ;;  %9293 = vmatprep.mubr.msk.f32.mxu1 %vm742_vm2, %v11399_v4  ;;  %v5871_v63 = vld [vmem:[%s12855_s3 + $0xf0] sm:$0xff] }
 0x1dc   :  { %9397 = vmatprep.mubr.msk.f32.mxu0 %vm742_vm2, %v10962_v40  ;;  %v1523_v39 = vpop.f32.mrf.mxu1  ;;  %v2100_v37 = vpop.f32.mrf.mxu0  ;;  %9492 = vmatprep.subr.mxu1 %v5162_v11  ;;  %v11422_v40 = vld [vmem:[#allocation2 + $0x51] sm:$0xff] }
 0x1dd   :  { %v11408_v61 = vadd.f32 %v2100_v37, %v1523_v39  ;;  %9493 = vmatpush3.msra.mxu1 %v5162_v11  ;;  %9595 = vmatpush3.msra.mxu0 %v5872_v47 }
 0x1de   :  { %v8927_v18 = vpop.f32.mrf.mxu1  ;;  %v9031_v7 = vpop.f32.mrf.mxu0  ;;  %9294 = vmatmul.mubr.msk.f32.gmra.mxu1 %vm742_vm2, %v11410_v27  ;;  %9398 = vmatmul.mubr.msk.f32.gmra.mxu0 %vm742_vm2, %v10974_v52  ;;  %v5160_v52 = vld [vmem:[%s12855_s3 + $0xc0] sm:$0xff] }
 0x1df   :  { %12909 = vst [vmem:[#allocation41_spill] sm:$0xff] %v11408_v61  ;;  %v11424_v11 = vadd.f32 %v9031_v7, %v8927_v18  ;;  %9296 = vmatprep.mubr.msk.f32.mxu1 %vm742_vm2, %v11422_v40  ;;  %9400 = vmatprep.mubr.msk.f32.mxu0 %vm742_vm2, %v10980_v15  ;;  %v11432_v61 = vld [vmem:[#allocation2 + $0x61] sm:$0xff] }
 0x1e0   :  { %v1533_v47 = vpop.f32.mrf.mxu1  ;;  %v2110_v39 = vpop.f32.mrf.mxu0  ;;  %9494 = vmatprep.subr.mxu1 %v5161_v54  ;;  %9596 = vmatprep.subr.mxu0 %v5871_v63  ;;  %12912 = vst [vmem:[#allocation44_spill] sm:$0xff] %v11432_v61  ;;  %v5870_v18 = vld [vmem:[%s12855_s3 + $0xe8] sm:$0xff] }
 0x1e1   :  { %12910 = vst [vmem:[#allocation42_spill] sm:$0xff] %v11424_v11  ;;  %v11430_v37 = vadd.f32 %v2110_v39, %v1533_v47  ;;  %9495 = vmatpush3.msra.mxu1 %v5161_v54  ;;  %9597 = vmatpush3.msra.mxu0 %v5871_v63  ;;  %v11444_v47 = vld [vmem:[#allocation2 + $0x71] sm:$0xff]  ;;  %v4393_v11 = vld [vmem:[#allocation2 + $0x82] sm:$0xff] }
 0x1e2   :  { %v8930_v7 = vpop.f32.mrf.mxu1  ;;  %v9034_v15 = vpop.f32.mrf.mxu0  ;;  %9297 = vmatmul.mubr.msk.f32.gmra.mxu1 %vm742_vm2, %v11432_v61  ;;  %9401 = vmatmul.mubr.msk.f32.gmra.mxu0 %vm742_vm2, %v10992_v0  ;;  %v5869_v0 = vld [vmem:[%s12855_s3 + $0xe0] sm:$0xff] }
 0x1e3   :  { %12911 = vst [vmem:[#allocation43_spill] sm:$0xff] %v11430_v37  ;;  %v11446_v54 = vadd.f32 %v9034_v15, %v8930_v7  ;;  %9299 = vmatprep.mubr.msk.f32.mxu1 %vm742_vm2, %v11444_v47  ;;  %9403 = vmatprep.mubr.msk.f32.mxu0 %vm742_vm2, %v10998_v16  ;;  %v11452_v37 = vld [vmem:[#allocation2 + $0x81] sm:$0xff]  ;;  %v11462_v7 = vld [vmem:[%s12855_s3 + $0x118] sm:$0xff] }
 0x1e4   :  { %v1543_v63 = vpop.f32.mrf.mxu1  ;;  %v2120_v39 = vpop.f32.mrf.mxu0  ;;  %12914 = vst [vmem:[#allocation46_spill] sm:$0xff] %v11452_v37  ;;  %9496 = vmatprep.subr.mxu1 %v5160_v52  ;;  %9598 = vmatprep.subr.mxu0 %v5870_v18 }
 0x1e5   :  { %12913 = vst [vmem:[#allocation45_spill] sm:$0xff] %v11446_v54  ;;  %v11454_v61 = vadd.f32 %v2120_v39, %v1543_v63  ;;  %9497 = vmatpush3.msra.mxu1 %v5160_v52  ;;  %9599 = vmatpush3.msra.mxu0 %v5870_v18  ;;  %v3685_v63 = vld [vmem:[#allocation2 + $0xb1] sm:$0xff]  ;;  %v11475_v54 = vld [vmem:[#allocation2 + $0xc1] sm:$0xff] }
 0x1e6   :  { %v8933_v16 = vpop.f32.mrf.mxu1  ;;  %v9037_v15 = vpop.f32.mrf.mxu0  ;;  %9300 = vmatmul.mubr.msk.f32.gmra.mxu1 %vm742_vm2, %v11452_v37  ;;  %9404 = vmatmul.mubr.msk.f32.gmra.mxu0 %vm742_vm2, %v4393_v11 }
 0x1e7   :  { %12915 = vst [vmem:[#allocation47_spill] sm:$0xff] %v11454_v61  ;;  %v11467_v39 = vadd.f32 %v9037_v15, %v8933_v16  ;;  %9302 = vmatprep.mubr.msk.f32.mxu1 %vm742_vm2, %v3685_v63  ;;  %9406 = vmatprep.mubr.msk.f32.mxu0 %vm742_vm2, %v11015_v14  ;;  %v11481_v16 = vld [vmem:[#allocation2 + $0xd1] sm:$0xff] }
 0x1e8   :  { %v1553_v52 = vpop.f32.mrf.mxu1  ;;  %v2130_v18 = vpop.f32.mrf.mxu0  ;;  %9600 = vmatprep.subr.mxu0 %v5869_v0  ;;  %9698 = vmatprep.subr.mxu1 %v11462_v7 }
 0x1e9   :  { %v11473_v61 = vadd.f32 %v2130_v18, %v1553_v52  ;;  %9601 = vmatpush3.msra.mxu0 %v5869_v0  ;;  %v11491_v52 = vld [vmem:[#allocation2 + $0xe1] sm:$0xff] }
 0x1ea   :  { %v8936_v37 = vpop.f32.mrf.mxu1  ;;  %v9040_v11 = vpop.f32.mrf.mxu0  ;;  %9303 = vmatmul.mubr.msk.f32.gmra.mxu1 %vm742_vm2, %v11475_v54  ;;  %9407 = vmatmul.mubr.msk.f32.gmra.mxu0 %vm742_vm2, %v11021_v46  ;;  %v3689_v46 = vld [vmem:[#allocation2 + $0xf1] sm:$0xff] }
 0x1eb   :  { %12916 = vst [vmem:[#allocation48_spill] sm:$0xff] %v11473_v61  ;;  %v11483_v14 = vadd.f32 %v9040_v11, %v8936_v37  ;;  %9305 = vmatprep.mubr.msk.f32.mxu1 %vm742_vm2, %v11481_v16  ;;  %9409 = vmatprep.mubr.msk.f32.mxu0 %vm742_vm2, %v11027_v24 }
 0x1ec   :  { %v1563_v15 = vpop.f32.mrf.mxu1  ;;  %v2140_v0 = vpop.f32.mrf.mxu0 }
 0x1ed   :  { %12917 = vst [vmem:[#allocation49_spill] sm:$0xff] %v11483_v14  ;;  %v11489_v63 = vadd.f32 %v2140_v0, %v1563_v15  ;;  %v11504_v0 = vld [vmem:[#allocation2 + $0x101] sm:$0xff] }
 0x1ee   :  { %v8939_v18 = vpop.f32.mrf.mxu1  ;;  %v9043_v61 = vpop.f32.mrf.mxu0  ;;  %9306 = vmatmul.mubr.msk.f32.gmra.mxu1 %vm742_vm2, %v11491_v52  ;;  %9410 = vmatmul.mubr.msk.f32.gmra.mxu0 %vm742_vm2, %v11033_v13  ;;  %12920 = vst [vmem:[#allocation52_spill] sm:$0xff] %v11504_v0  ;;  %v3691_v13 = vld [vmem:[#allocation2 + $0x111] sm:$0xff] }
 0x1ef   :  { %12918 = vst [vmem:[#allocation50_spill] sm:$0xff] %v11489_v63  ;;  %v11497_v37 = vadd.f32 %v9043_v61, %v8939_v18  ;;  %9308 = vmatprep.mubr.msk.f32.mxu1 %vm742_vm2, %v3689_v46  ;;  %9412 = vmatprep.mubr.msk.f32.mxu0 %vm742_vm2, %v11039_v28 }
 0x1f0   :  { %v1573_v24 = vpop.f32.mrf.mxu1  ;;  %v2150_v11 = vpop.f32.mrf.mxu0 }
 0x1f1   :  { %v11502_v15 = vadd.f32 %v2150_v11, %v1573_v24  ;;  %v11517_v24 = vld [vmem:[#allocation2 + $0x121] sm:$0xff] }
 0x1f2   :  { %v8942_v63 = vpop.f32.mrf.mxu1  ;;  %v9046_v14 = vpop.f32.mrf.mxu0  ;;  %9309 = vmatmul.mubr.msk.f32.gmra.mxu1 %vm742_vm2, %v11504_v0  ;;  %9413 = vmatmul.mubr.msk.f32.gmra.mxu0 %vm742_vm2, %v11045_v34  ;;  %v4401_v11 = vld [vmem:[#allocation2 + $0x122] sm:$0xff]  ;;  %v3693_v34 = vld [vmem:[#allocation2 + $0x151] sm:$0xff] }
 0x1f3   :  { %12919 = vst [vmem:[#allocation51_spill] sm:$0xff] %v11502_v15  ;;  %v11510_v61 = vadd.f32 %v9046_v14, %v8942_v63  ;;  %9311 = vmatprep.mubr.msk.f32.mxu1 %vm742_vm2, %v3691_v13  ;;  %9415 = vmatprep.mubr.msk.f32.mxu0 %vm742_vm2, %v11051_v57 }
 0x1f4   :  { %v1583_v28 = vpop.f32.mrf.mxu1  ;;  %v2160_v18 = vpop.f32.mrf.mxu0 }
 0x1f5   :  { %v11515_v46 = vadd.f32 %v2160_v18, %v1583_v28  ;;  %v11529_v28 = vld [vmem:[#allocation2 + $0x161] sm:$0xff] }
 0x1f6   :  { %v8945_v15 = vpop.f32.mrf.mxu1  ;;  %v9049_v0 = vpop.f32.mrf.mxu0  ;;  %9312 = vmatmul.mubr.msk.f32.gmra.mxu1 %vm742_vm2, %v11517_v24  ;;  %9416 = vmatmul.mubr.msk.f32.gmra.mxu0 %vm742_vm2, %v4401_v11 }
 0x1f7   :  { %12921 = vst [vmem:[#allocation53_spill] sm:$0xff] %v11515_v46  ;;  %v11522_v14 = vadd.f32 %v9049_v0, %v8945_v15  ;;  %9314 = vmatprep.mubr.msk.f32.mxu1 %vm742_vm2, %v3693_v34  ;;  %9418 = vmatprep.mubr.msk.f32.mxu0 %vm742_vm2, %v11059_v50  ;;  %v3695_v15 = vld [vmem:[#allocation2 + $0x171] sm:$0xff] }
 0x1f8   :  { %v1593_v57 = vpop.f32.mrf.mxu1  ;;  %v2170_v63 = vpop.f32.mrf.mxu0 }
 0x1f9   :  { %v11527_v13 = vadd.f32 %v2170_v63, %v1593_v57  ;;  %v3696_v57 = vld [vmem:[#allocation2 + $0x181] sm:$0xff] }
 0x1fa   :  { %v8948_v18 = vpop.f32.mrf.mxu1  ;;  %v9052_v46 = vpop.f32.mrf.mxu0  ;;  %9315 = vmatmul.mubr.msk.f32.gmra.mxu1 %vm742_vm2, %v11529_v28  ;;  %9419 = vmatmul.mubr.msk.f32.gmra.mxu0 %vm742_vm2, %v11065_v60  ;;  %v3697_v60 = vld [vmem:[#allocation2 + $0x191] sm:$0xff] }
 0x1fb   :  { %12922 = vst [vmem:[#allocation54_spill] sm:$0xff] %v11527_v13  ;;  %v11535_v0 = vadd.f32 %v9052_v46, %v8948_v18  ;;  %9317 = vmatprep.mubr.msk.f32.mxu1 %vm742_vm2, %v3695_v15  ;;  %9421 = vmatprep.mubr.msk.f32.mxu0 %vm742_vm2, %v11071_v29 }
 0x1fc   :  { %v1603_v50 = vpop.f32.mrf.mxu1  ;;  %v2180_v11 = vpop.f32.mrf.mxu0 }
 0x1fd   :  { %v11540_v34 = vadd.f32 %v2180_v11, %v1603_v50  ;;  %v3698_v50 = vld [vmem:[#allocation2 + $0x1a1] sm:$0xff] }
 0x1fe   :  { %v8951_v63 = vpop.f32.mrf.mxu1  ;;  %v9055_v13 = vpop.f32.mrf.mxu0  ;;  %9318 = vmatmul.mubr.msk.f32.gmra.mxu1 %vm742_vm2, %v3696_v57  ;;  %9422 = vmatmul.mubr.msk.f32.gmra.mxu0 %vm742_vm2, %v11077_v6  ;;  %v3699_v6 = vld [vmem:[#allocation2 + $0x1b1] sm:$0xff] }
 0x1ff   :  { %12923 = vst [vmem:[#allocation55_spill] sm:$0xff] %v11540_v34  ;;  %v11545_v46 = vadd.f32 %v9055_v13, %v8951_v63  ;;  %9320 = vmatprep.mubr.msk.f32.mxu1 %vm742_vm2, %v3697_v60  ;;  %9424 = vmatprep.mubr.msk.f32.mxu0 %vm742_vm2, %v11083_v10  ;;  %v3700_v60 = vld [vmem:[#allocation2 + $0x1c1] sm:$0xff] }
 0x200   :  { %v1613_v29 = vpop.f32.mrf.mxu1  ;;  %v2190_v18 = vpop.f32.mrf.mxu0 }
 0x201   :  { %v11550_v15 = vadd.f32 %v2190_v18, %v1613_v29  ;;  %v4409_v29 = vld [vmem:[#allocation2 + $0x1c2] sm:$0xff] }
 0x202   :  { %v8954_v11 = vpop.f32.mrf.mxu1  ;;  %v9058_v34 = vpop.f32.mrf.mxu0  ;;  %9321 = vmatmul.mubr.msk.f32.gmra.mxu1 %vm742_vm2, %v3698_v50  ;;  %9425 = vmatmul.mubr.msk.f32.gmra.mxu0 %vm742_vm2, %v11089_v19  ;;  %v3701_v19 = vld [vmem:[#allocation2 + $0x1f1] sm:$0xff] }
 0x203   :  { %12924 = vst [vmem:[#allocation56_spill] sm:$0xff] %v11550_v15  ;;  %v11555_v13 = vadd.f32 %v9058_v34, %v8954_v11  ;;  %9323 = vmatprep.mubr.msk.f32.mxu1 %vm742_vm2, %v3699_v6  ;;  %9427 = vmatprep.mubr.msk.f32.mxu0 %vm742_vm2, %v11095_v22  ;;  %v3702_v6 = vld [vmem:[#allocation2 + $0x201] sm:$0xff] }
 0x204   :  { %v1623_v10 = vpop.f32.mrf.mxu1  ;;  %v2200_v57 = vpop.f32.mrf.mxu0 }
 0x205   :  { %v11560_v63 = vadd.f32 %v2200_v57, %v1623_v10 }
 0x206   :  { %v8957_v18 = vpop.f32.mrf.mxu1  ;;  %v9061_v15 = vpop.f32.mrf.mxu0  ;;  %9324 = vmatmul.mubr.msk.f32.gmra.mxu1 %vm742_vm2, %v3700_v60  ;;  %9428 = vmatmul.mubr.msk.f32.gmra.mxu0 %vm742_vm2, %v4409_v29  ;;  %v3703_v60 = vld [vmem:[#allocation2 + $0x211] sm:$0xff] }
 0x207   :  { %v11564_v34 = vadd.f32 %v9061_v15, %v8957_v18  ;;  %9326 = vmatprep.mubr.msk.f32.mxu1 %vm742_vm2, %v3701_v19  ;;  %9430 = vmatprep.mubr.msk.f32.mxu0 %vm742_vm2, %v11103_v36  ;;  %v3704_v19 = vld [vmem:[#allocation2 + $0x221] sm:$0xff] }
 0x208   :  { %v1633_v22 = vpop.f32.mrf.mxu1  ;;  %v2210_v50 = vpop.f32.mrf.mxu0 }
 0x209   :  { %v11569_v11 = vadd.f32 %v2210_v50, %v1633_v22 }
 0x20a   :  { %v8960_v10 = vpop.f32.mrf.mxu1  ;;  %v9064_v57 = vpop.f32.mrf.mxu0  ;;  %9327 = vmatmul.mubr.msk.f32.gmra.mxu1 %vm742_vm2, %v3702_v6  ;;  %9431 = vmatmul.mubr.msk.f32.gmra.mxu0 %vm742_vm2, %v11109_v48  ;;  %v3705_v48 = vld [vmem:[#allocation2 + $0x231] sm:$0xff] }
 0x20b   :  { %v11574_v15 = vadd.f32 %v9064_v57, %v8960_v10  ;;  %9329 = vmatprep.mubr.msk.f32.mxu1 %vm742_vm2, %v3703_v60  ;;  %9433 = vmatprep.mubr.msk.f32.mxu0 %vm742_vm2, %v11115_v5  ;;  %v3706_v60 = vld [vmem:[#allocation2 + $0x241] sm:$0xff] }
 0x20c   :  { %v1643_v36 = vpop.f32.mrf.mxu1  ;;  %v2220_v29 = vpop.f32.mrf.mxu0 }
 0x20d   :  { %12925 = vst [vmem:[#allocation57_spill] sm:$0xff] %v11574_v15  ;;  %v11579_v18 = vadd.f32 %v2220_v29, %v1643_v36 }
 0x20e   :  { %v8963_v22 = vpop.f32.mrf.mxu1  ;;  %v9067_v50 = vpop.f32.mrf.mxu0  ;;  %9330 = vmatmul.mubr.msk.f32.gmra.mxu1 %vm742_vm2, %v3704_v19  ;;  %9434 = vmatmul.mubr.msk.f32.gmra.mxu0 %vm742_vm2, %v11121_v59  ;;  %v12929_v19 = vld [vmem:[#allocation6_spill] sm:$0xff]  ;;  %v3707_v59 = vld [vmem:[#allocation2 + $0x251] sm:$0xff] }
 0x20f   :  { %12926 = vst [vmem:[#allocation58_spill] sm:$0xff] %v11579_v18  ;;  %v11584_v6 = vadd.f32 %v9067_v50, %v8963_v22  ;;  %9332 = vmatprep.mubr.msk.f32.mxu1 %vm742_vm2, %v3705_v48  ;;  %9436 = vmatprep.mubr.msk.f32.mxu0 %vm742_vm2, %v11127_v1  ;;  %v12931_v50 = vld [vmem:[#allocation7_spill] sm:$0xff] }
 0x210   :  { %v1653_v5 = vpop.f32.mrf.mxu1  ;;  %v2230_v10 = vpop.f32.mrf.mxu0 }
 0x211   :  { %12927 = vst [vmem:[#allocation59_spill] sm:$0xff] %v11584_v6  ;;  %v11589_v57 = vadd.f32 %v2230_v10, %v1653_v5  ;;  %v3708_v10 = vld [vmem:[#allocation2 + $0x261] sm:$0xff] }
 0x212   :  { %v8966_v36 = vpop.f32.mrf.mxu1  ;;  %v9070_v29 = vpop.f32.mrf.mxu0  ;;  %9333 = vmatmul.mubr.msk.f32.gmra.mxu1 %vm742_vm2, %v3706_v60  ;;  %9437 = vmatmul.mubr.msk.f32.gmra.mxu0 %vm742_vm2, %v12929_v19  ;;  %v3709_v60 = vld [vmem:[#allocation2 + $0x291] sm:$0xff] }
 0x213   :  { %12928 = vst [vmem:[#allocation60_spill] sm:$0xff] %v11589_v57  ;;  %v11594_v22 = vadd.f32 %v9070_v29, %v8966_v36  ;;  %9335 = vmatprep.mubr.msk.f32.mxu1 %vm742_vm2, %v3707_v59  ;;  %9439 = vmatprep.mubr.msk.f32.mxu0 %vm742_vm2, %v12931_v50  ;;  %v4417_v57 = vld [vmem:[#allocation2 + $0x262] sm:$0xff]  ;;  %v12934_v29 = vld [vmem:[#allocation8_spill] sm:$0xff] }
 0x214   :  { %v1663_v1 = vpop.f32.mrf.mxu1  ;;  %v2240_v48 = vpop.f32.mrf.mxu0 }
 0x215   :  { %12930 = vst [vmem:[#allocation6_spill] sm:$0xff] %v11594_v22  ;;  %v11599_v5 = vadd.f32 %v2240_v48, %v1663_v1  ;;  %v3710_v1 = vld [vmem:[#allocation2 + $0x2a1] sm:$0xff] }
 0x216   :  { %v8969_v6 = vpop.f32.mrf.mxu1  ;;  %v9073_v18 = vpop.f32.mrf.mxu0  ;;  %9336 = vmatmul.mubr.msk.f32.gmra.mxu1 %vm742_vm2, %v3708_v10  ;;  %9440 = vmatmul.mubr.msk.f32.gmra.mxu0 %vm742_vm2, %v4417_v57  ;;  %v3711_v57 = vld [vmem:[#allocation2 + $0x2b1] sm:$0xff] }
 0x217   :  { %12932 = vst [vmem:[#allocation7_spill] sm:$0xff] %v11599_v5  ;;  %v11603_v36 = vadd.f32 %v9073_v18, %v8969_v6  ;;  %9338 = vmatprep.mubr.msk.f32.mxu1 %vm742_vm2, %v3709_v60  ;;  %9442 = vmatprep.mubr.msk.f32.mxu0 %vm742_vm2, %v12934_v29  ;;  %v12936_v6 = vld [vmem:[#allocation10_spill] sm:$0xff] }
 0x218   :  { %v1673_v19 = vpop.f32.mrf.mxu1  ;;  %v2250_v59 = vpop.f32.mrf.mxu0 }
 0x219   :  { %12933 = vst [vmem:[#allocation61_spill] sm:$0xff] %v11603_v36  ;;  %v11608_v50 = vadd.f32 %v2250_v59, %v1673_v19  ;;  %v12938_v19 = vld [vmem:[#allocation9_spill] sm:$0xff] }
 0x21a   :  { %v9084_v48 = vpop.f32.mrf.mxu1  ;;  %v9188_v5 = vpop.f32.mrf.mxu0  ;;  %9339 = vmatmul.mubr.msk.f32.gmra.mxu1 %vm742_vm2, %v3710_v1  ;;  %9443 = vmatmul.mubr.msk.f32.gmra.mxu0 %vm742_vm2, %v11153_v44  ;;  %v3713_v44 = vld [vmem:[#allocation2 + $0x2d1] sm:$0xff] }
 0x21b   :  { %12935 = vst [vmem:[#allocation8_spill] sm:$0xff] %v11608_v50  ;;  %v2905_v18 = vadd.f32 %v9084_v48, %v11155_v31  ;;  %9341 = vmatprep.mubr.msk.f32.mxu1 %vm742_vm2, %v3711_v57  ;;  %9445 = vmatprep.mubr.msk.f32.mxu0 %vm742_vm2, %v12936_v6  ;;  %v3712_v50 = vld [vmem:[#allocation2 + $0x2c1] sm:$0xff]  ;;  %v12940_v6 = vld [vmem:[#allocation13_spill] sm:$0xff] }
 0x21c   :  { %v2585_v10 = vpop.f32.mrf.mxu1  ;;  %v3294_v60 = vpop.f32.mrf.mxu0  ;;  %v12939_v48 = vld [vmem:[#allocation11_spill] sm:$0xff] }
 0x21d   :  { %v11617_v29 = vadd.f32 %v9188_v5, %v2905_v18  ;;  %v2904_v59 = vadd.f32 %v2585_v10, %v12938_v19  ;;  %v12941_v19 = vld [vmem:[#allocation12_spill] sm:$0xff] }
 0x21e   :  { %v9087_v36 = vpop.f32.mrf.mxu1  ;;  %v9191_v1 = vpop.f32.mrf.mxu0  ;;  %9342 = vmatmul.mubr.msk.f32.gmra.mxu1 %vm742_vm2, %v3712_v50  ;;  %9446 = vmatmul.mubr.msk.f32.gmra.mxu0 %vm742_vm2, %v11169_v2  ;;  %v3714_v50 = vld [vmem:[#allocation2 + $0x2e1] sm:$0xff]  ;;  %v3715_v2 = vld [vmem:[#allocation2 + $0x2f1] sm:$0xff] }
 0x21f   :  { %12937 = vst [vmem:[#allocation10_spill] sm:$0xff] %v11617_v29  ;;  %v11623_v31 = vadd.f32 %v3294_v60, %v2904_v59  ;;  %v2907_v57 = vadd.f32 %v9087_v36, %v12939_v48  ;;  %9344 = vmatprep.mubr.msk.f32.mxu1 %vm742_vm2, %v3713_v44  ;;  %9448 = vmatprep.mubr.msk.f32.mxu0 %vm742_vm2, %v12940_v6  ;;  %v12942_v60 = vld [vmem:[#allocation14_spill] sm:$0xff] }
 0x220   :  { %v2595_v5 = vpop.f32.mrf.mxu1  ;;  %v3304_v18 = vpop.f32.mrf.mxu0 }
 0x221   :  { %v11629_v10 = vadd.f32 %v9191_v1, %v2907_v57  ;;  %v2906_v29 = vadd.f32 %v2595_v5, %v12941_v19  ;;  %v12943_v57 = vld [vmem:[#allocation15_spill] sm:$0xff] }
 0x222   :  { %v9090_v22 = vpop.f32.mrf.mxu1  ;;  %v9194_v15 = vpop.f32.mrf.mxu0  ;;  %9345 = vmatmul.mubr.msk.f32.gmra.mxu1 %vm742_vm2, %v3714_v50  ;;  %9449 = vmatmul.mubr.msk.f32.gmra.mxu0 %vm742_vm2, %v11185_v21  ;;  %v3716_v5 = vld [vmem:[#allocation2 + $0x301] sm:$0xff] }
 0x223   :  { %v11635_v36 = vadd.f32 %v3304_v18, %v2906_v29  ;;  %v2909_v59 = vadd.f32 %v9090_v22, %v12942_v60  ;;  %9347 = vmatprep.mubr.msk.f32.mxu1 %vm742_vm2, %v3715_v2  ;;  %9451 = vmatprep.mubr.msk.f32.mxu0 %vm742_vm2, %v11195_v58  ;;  %v4425_v19 = vld [vmem:[#allocation2 + $0x302] sm:$0xff]  ;;  %v3717_v22 = vld [vmem:[#allocation2 + $0x331] sm:$0xff] }
 0x224   :  { %v2605_v1 = vpop.f32.mrf.mxu1  ;;  %v3314_v44 = vpop.f32.mrf.mxu0  ;;  %v12944_v60 = vld [vmem:[#allocation16_spill] sm:$0xff] }
 0x225   :  { %v11641_v48 = vadd.f32 %v9194_v15, %v2909_v59  ;;  %v2908_v6 = vadd.f32 %v2605_v1, %v12943_v57  ;;  %v3718_v1 = vld [vmem:[#allocation2 + $0x341] sm:$0xff] }
 0x226   :  { %v9093_v50 = vpop.f32.mrf.mxu1  ;;  %v9197_v21 = vpop.f32.mrf.mxu0  ;;  %9348 = vmatmul.mubr.msk.f32.gmra.mxu1 %vm742_vm2, %v3716_v5  ;;  %9452 = vmatmul.mubr.msk.f32.gmra.mxu0 %vm742_vm2, %v4425_v19 }
 0x227   :  { %v11646_v29 = vadd.f32 %v3314_v44, %v2908_v6  ;;  %v2911_v18 = vadd.f32 %v9093_v50, %v11200_v38  ;;  %9350 = vmatprep.mubr.msk.f32.mxu1 %vm742_vm2, %v3717_v22  ;;  %9454 = vmatprep.mubr.msk.f32.mxu0 %vm742_vm2, %v11207_v32  ;;  %v3719_v38 = vld [vmem:[#allocation2 + $0x351] sm:$0xff]  ;;  %v12945_v32 = vld [vmem:[#allocation18_spill] sm:$0xff] }
 0x228   :  { %v2615_v58 = vpop.f32.mrf.mxu1  ;;  %v3324_v15 = vpop.f32.mrf.mxu0  ;;  %v12947_v22 = vld [vmem:[#allocation17_spill] sm:$0xff] }
 0x229   :  { %v11652_v2 = vadd.f32 %v9197_v21, %v2911_v18  ;;  %v2910_v59 = vadd.f32 %v2615_v58, %v12944_v60  ;;  %v3720_v58 = vld [vmem:[#allocation2 + $0x361] sm:$0xff] }
 0x22a   :  { %v9096_v57 = vpop.f32.mrf.mxu1  ;;  %v9200_v5 = vpop.f32.mrf.mxu0  ;;  %9351 = vmatmul.mubr.msk.f32.gmra.mxu1 %vm742_vm2, %v3718_v1  ;;  %9455 = vmatmul.mubr.msk.f32.gmra.mxu0 %vm742_vm2, %v11213_v45  ;;  %v3721_v45 = vld [vmem:[#allocation2 + $0x371] sm:$0xff] }
 0x22b   :  { %v11658_v44 = vadd.f32 %v3324_v15, %v2910_v59  ;;  %v2913_v6 = vadd.f32 %v9096_v57, %v11215_v17  ;;  %9353 = vmatprep.mubr.msk.f32.mxu1 %vm742_vm2, %v3719_v38  ;;  %9457 = vmatprep.mubr.msk.f32.mxu0 %vm742_vm2, %v12945_v32  ;;  %v12948_v15 = vld [vmem:[#allocation19_spill] sm:$0xff]  ;;  %v12949_v57 = vld [vmem:[#allocation21_spill] sm:$0xff]  ;;  %v12950_v32 = vld [vmem:[#allocation20_spill] sm:$0xff] }
 0x22c   :  { %v2625_v19 = vpop.f32.mrf.mxu1  ;;  %v3334_v50 = vpop.f32.mrf.mxu0 }
 0x22d   :  { %v11664_v21 = vadd.f32 %v9200_v5, %v2913_v6  ;;  %v2912_v18 = vadd.f32 %v2625_v19, %v12947_v22  ;;  %v3722_v22 = vld [vmem:[#allocation2 + $0x381] sm:$0xff] }
 0x22e   :  { %v9099_v60 = vpop.f32.mrf.mxu1  ;;  %v9203_v1 = vpop.f32.mrf.mxu0  ;;  %9354 = vmatmul.mubr.msk.f32.gmra.mxu1 %vm742_vm2, %v3720_v58  ;;  %9458 = vmatmul.mubr.msk.f32.gmra.mxu0 %vm742_vm2, %v11229_v20  ;;  %v3723_v20 = vld [vmem:[#allocation2 + $0x391] sm:$0xff] }
 0x22f   :  { %12946 = vst [vmem:[#allocation9_spill] sm:$0xff] %v11664_v21  ;;  %v11670_v17 = vadd.f32 %v3334_v50, %v2912_v18  ;;  %v2915_v59 = vadd.f32 %v9099_v60, %v12948_v15  ;;  %9356 = vmatprep.mubr.msk.f32.mxu1 %vm742_vm2, %v3721_v45  ;;  %9460 = vmatprep.mubr.msk.f32.mxu0 %vm742_vm2, %v12949_v57  ;;  %v12951_v18 = vld [vmem:[#allocation22_spill] sm:$0xff] }
 0x230   :  { %v2635_v5 = vpop.f32.mrf.mxu1  ;;  %v3344_v38 = vpop.f32.mrf.mxu0 }
 0x231   :  { %v11676_v6 = vadd.f32 %v9203_v1, %v2915_v59  ;;  %v2914_v19 = vadd.f32 %v2635_v5, %v12950_v32  ;;  %v12952_v59 = vld [vmem:[#allocation23_spill] sm:$0xff] }
 0x232   :  { %v9102_v58 = vpop.f32.mrf.mxu1  ;;  %v9206_v21 = vpop.f32.mrf.mxu0  ;;  %9357 = vmatmul.mubr.msk.f32.gmra.mxu1 %vm742_vm2, %v3722_v22  ;;  %9461 = vmatmul.mubr.msk.f32.gmra.mxu0 %vm742_vm2, %v11245_v43  ;;  %v3724_v5 = vld [vmem:[#allocation2 + $0x3a1] sm:$0xff] }
 0x233   :  { %v11682_v50 = vadd.f32 %v3344_v38, %v2914_v19  ;;  %v2917_v60 = vadd.f32 %v9102_v58, %v12951_v18  ;;  %9359 = vmatprep.mubr.msk.f32.mxu1 %vm742_vm2, %v3723_v20  ;;  %9463 = vmatprep.mubr.msk.f32.mxu0 %vm742_vm2, %v11255_v8  ;;  %v4433_v32 = vld [vmem:[#allocation2 + $0x3a2] sm:$0xff]  ;;  %v3725_v38 = vld [vmem:[#allocation2 + $0x3d1] sm:$0xff] }
 0x234   :  { %v2645_v1 = vpop.f32.mrf.mxu1  ;;  %v3354_v45 = vpop.f32.mrf.mxu0  ;;  %v12953_v18 = vld [vmem:[#allocation24_spill] sm:$0xff] }
 0x235   :  { %v11688_v15 = vadd.f32 %v9206_v21, %v2917_v60  ;;  %v2916_v57 = vadd.f32 %v2645_v1, %v12952_v59  ;;  %v3726_v1 = vld [vmem:[#allocation2 + $0x3e1] sm:$0xff] }
 0x236   :  { %v9105_v22 = vpop.f32.mrf.mxu1  ;;  %v9209_v43 = vpop.f32.mrf.mxu0  ;;  %9360 = vmatmul.mubr.msk.f32.gmra.mxu1 %vm742_vm2, %v3724_v5  ;;  %9464 = vmatmul.mubr.msk.f32.gmra.mxu0 %vm742_vm2, %v4433_v32 }
 0x237   :  { %v11693_v19 = vadd.f32 %v3354_v45, %v2916_v57  ;;  %v2919_v58 = vadd.f32 %v9105_v22, %v11260_v41  ;;  %9362 = vmatprep.mubr.msk.f32.mxu1 %vm742_vm2, %v3725_v38  ;;  %9466 = vmatprep.mubr.msk.f32.mxu0 %vm742_vm2, %v11267_v26  ;;  %v3727_v41 = vld [vmem:[#allocation2 + $0x3f1] sm:$0xff]  ;;  %v12954_v26 = vld [vmem:[#allocation26_spill] sm:$0xff] }
 0x238   :  { %v2655_v8 = vpop.f32.mrf.mxu1  ;;  %v3364_v21 = vpop.f32.mrf.mxu0  ;;  %v12956_v38 = vld [vmem:[#allocation25_spill] sm:$0xff] }
 0x239   :  { %v11699_v20 = vadd.f32 %v9209_v43, %v2919_v58  ;;  %v2918_v60 = vadd.f32 %v2655_v8, %v12953_v18  ;;  %v3728_v8 = vld [vmem:[#allocation2 + $0x401] sm:$0xff] }
 0x23a   :  { %v9108_v59 = vpop.f32.mrf.mxu1  ;;  %v9212_v5 = vpop.f32.mrf.mxu0  ;;  %9363 = vmatmul.mubr.msk.f32.gmra.mxu1 %vm742_vm2, %v3726_v1  ;;  %9467 = vmatmul.mubr.msk.f32.gmra.mxu0 %vm742_vm2, %v11273_v9  ;;  %v3729_v9 = vld [vmem:[#allocation2 + $0x411] sm:$0xff] }
 0x23b   :  { %v11705_v45 = vadd.f32 %v3364_v21, %v2918_v60  ;;  %v2921_v57 = vadd.f32 %v9108_v59, %v11275_v12  ;;  %9365 = vmatprep.mubr.msk.f32.mxu1 %vm742_vm2, %v3727_v41  ;;  %9469 = vmatprep.mubr.msk.f32.mxu0 %vm742_vm2, %v12954_v26  ;;  %v12957_v21 = vld [vmem:[#allocation27_spill] sm:$0xff]  ;;  %v12958_v59 = vld [vmem:[#allocation29_spill] sm:$0xff]  ;;  %v12959_v26 = vld [vmem:[#allocation28_spill] sm:$0xff] }
 0x23c   :  { %v2665_v32 = vpop.f32.mrf.mxu1  ;;  %v3374_v22 = vpop.f32.mrf.mxu0 }
 0x23d   :  { %v11711_v43 = vadd.f32 %v9212_v5, %v2921_v57  ;;  %v2920_v58 = vadd.f32 %v2665_v32, %v12956_v38  ;;  %v3730_v38 = vld [vmem:[#allocation2 + $0x421] sm:$0xff] }
 0x23e   :  { %v9111_v18 = vpop.f32.mrf.mxu1  ;;  %v9215_v1 = vpop.f32.mrf.mxu0  ;;  %9366 = vmatmul.mubr.msk.f32.gmra.mxu1 %vm742_vm2, %v3728_v8  ;;  %9470 = vmatmul.mubr.msk.f32.gmra.mxu0 %vm742_vm2, %v11289_v62  ;;  %v3731_v62 = vld [vmem:[#allocation2 + $0x431] sm:$0xff] }
 0x23f   :  { %12955 = vst [vmem:[#allocation11_spill] sm:$0xff] %v11711_v43  ;;  %v11717_v12 = vadd.f32 %v3374_v22, %v2920_v58  ;;  %v2923_v60 = vadd.f32 %v9111_v18, %v12957_v21  ;;  %9368 = vmatprep.mubr.msk.f32.mxu1 %vm742_vm2, %v3729_v9  ;;  %9472 = vmatprep.mubr.msk.f32.mxu0 %vm742_vm2, %v12958_v59  ;;  %v12960_v58 = vld [vmem:[#allocation30_spill] sm:$0xff] }
 0x240   :  { %v2675_v5 = vpop.f32.mrf.mxu1  ;;  %v3384_v41 = vpop.f32.mrf.mxu0 }
 0x241   :  { %v11723_v57 = vadd.f32 %v9215_v1, %v2923_v60  ;;  %v2922_v32 = vadd.f32 %v2675_v5, %v12959_v26  ;;  %v12961_v60 = vld [vmem:[#allocation31_spill] sm:$0xff] }
 0x242   :  { %v9114_v8 = vpop.f32.mrf.mxu1  ;;  %v9218_v43 = vpop.f32.mrf.mxu0  ;;  %9369 = vmatmul.mubr.msk.f32.gmra.mxu1 %vm742_vm2, %v3730_v38  ;;  %9473 = vmatmul.mubr.msk.f32.gmra.mxu0 %vm742_vm2, %v11305_v30  ;;  %v3732_v5 = vld [vmem:[#allocation2 + $0x441] sm:$0xff] }
 0x243   :  { %v11729_v22 = vadd.f32 %v3384_v41, %v2922_v32  ;;  %v2925_v18 = vadd.f32 %v9114_v8, %v12960_v58  ;;  %9371 = vmatprep.mubr.msk.f32.mxu1 %vm742_vm2, %v3731_v62  ;;  %9475 = vmatprep.mubr.msk.f32.mxu0 %vm742_vm2, %v11315_v51  ;;  %v4441_v26 = vld [vmem:[#allocation2 + $0x442] sm:$0xff]  ;;  %v3733_v41 = vld [vmem:[#allocation2 + $0x471] sm:$0xff] }
 0x244   :  { %v2685_v1 = vpop.f32.mrf.mxu1  ;;  %v3394_v9 = vpop.f32.mrf.mxu0  ;;  %v12962_v58 = vld [vmem:[#allocation32_spill] sm:$0xff] }
 0x245   :  { %v11735_v21 = vadd.f32 %v9218_v43, %v2925_v18  ;;  %v2924_v59 = vadd.f32 %v2685_v1, %v12961_v60  ;;  %v3734_v1 = vld [vmem:[#allocation2 + $0x481] sm:$0xff] }
 0x246   :  { %v9117_v38 = vpop.f32.mrf.mxu1  ;;  %v9221_v30 = vpop.f32.mrf.mxu0  ;;  %9372 = vmatmul.mubr.msk.f32.gmra.mxu1 %vm742_vm2, %v3732_v5  ;;  %9476 = vmatmul.mubr.msk.f32.gmra.mxu0 %vm742_vm2, %v4441_v26 }
 0x247   :  { %v11740_v32 = vadd.f32 %v3394_v9, %v2924_v59  ;;  %v2927_v8 = vadd.f32 %v9117_v38, %v11320_v3  ;;  %9374 = vmatprep.mubr.msk.f32.mxu1 %vm742_vm2, %v3733_v41  ;;  %9478 = vmatprep.mubr.msk.f32.mxu0 %vm742_vm2, %v11327_v55  ;;  %v3735_v3 = vld [vmem:[#allocation2 + $0x491] sm:$0xff]  ;;  %v12963_v55 = vld [vmem:[#allocation34_spill] sm:$0xff] }
 0x248   :  { %v2695_v51 = vpop.f32.mrf.mxu1  ;;  %v3404_v43 = vpop.f32.mrf.mxu0  ;;  %v12964_v41 = vld [vmem:[#allocation33_spill] sm:$0xff] }
 0x249   :  { %v11746_v62 = vadd.f32 %v9221_v30, %v2927_v8  ;;  %v2926_v18 = vadd.f32 %v2695_v51, %v12962_v58  ;;  %v3736_v51 = vld [vmem:[#allocation2 + $0x4a1] sm:$0xff] }
 0x24a   :  { %v9120_v60 = vpop.f32.mrf.mxu1  ;;  %v9224_v5 = vpop.f32.mrf.mxu0  ;;  %9375 = vmatmul.mubr.msk.f32.gmra.mxu1 %vm742_vm2, %v3734_v1  ;;  %9479 = vmatmul.mubr.msk.f32.gmra.mxu0 %vm742_vm2, %v11333_v33  ;;  %v3737_v33 = vld [vmem:[#allocation2 + $0x4b1] sm:$0xff] }
 0x24b   :  { %v11752_v9 = vadd.f32 %v3404_v43, %v2926_v18  ;;  %v2929_v59 = vadd.f32 %v9120_v60, %v11335_v35  ;;  %9377 = vmatprep.mubr.msk.f32.mxu1 %vm742_vm2, %v3735_v3  ;;  %9481 = vmatprep.mubr.msk.f32.mxu0 %vm742_vm2, %v12963_v55  ;;  %v12966_v18 = vld [vmem:[#allocation36_spill] sm:$0xff] }
 0x24c   :  { %v2705_v26 = vpop.f32.mrf.mxu1  ;;  %v3414_v38 = vpop.f32.mrf.mxu0 }
 0x24d   :  { %v11758_v30 = vadd.f32 %v9224_v5, %v2929_v59  ;;  %v2928_v8 = vadd.f32 %v2705_v26, %v12964_v41  ;;  %v12968_v59 = vld [vmem:[#allocation35_spill] sm:$0xff] }
 0x24e   :  { %v9123_v58 = vpop.f32.mrf.mxu1  ;;  %v9227_v1 = vpop.f32.mrf.mxu0  ;;  %9378 = vmatmul.mubr.msk.f32.gmra.mxu1 %vm742_vm2, %v3736_v51  ;;  %9482 = vmatmul.mubr.msk.f32.gmra.mxu0 %vm742_vm2, %v11349_v25  ;;  %v3738_v26 = vld [vmem:[#allocation2 + $0x4c1] sm:$0xff]  ;;  %v12969_v25 = vld [vmem:[#allocation37_spill] sm:$0xff] }
 0x24f   :  { %v11764_v35 = vadd.f32 %v3414_v38, %v2928_v8  ;;  %v2931_v43 = vadd.f32 %v9123_v58, %v11351_v56  ;;  %9380 = vmatprep.mubr.msk.f32.mxu1 %vm742_vm2, %v3737_v33  ;;  %9484 = vmatprep.mubr.msk.f32.mxu0 %vm742_vm2, %v12966_v18  ;;  %v3739_v56 = vld [vmem:[#allocation2 + $0x4d1] sm:$0xff]  ;;  %v12970_v8 = vld [vmem:[#allocation38_spill] sm:$0xff] }
 0x250   :  { %v2715_v60 = vpop.f32.mrf.mxu1  ;;  %v3424_v5 = vpop.f32.mrf.mxu0  ;;  %v12971_v33 = vld [vmem:[#allocation40_spill] sm:$0xff] }
 0x251   :  { %12965 = vst [vmem:[#allocation13_spill] sm:$0xff] %v11764_v35  ;;  %v11770_v3 = vadd.f32 %v9227_v1, %v2931_v43  ;;  %v2930_v55 = vadd.f32 %v2715_v60, %v12968_v59  ;;  %v12972_v60 = vld [vmem:[#allocation39_spill] sm:$0xff] }
 0x252   :  { %v9126_v41 = vpop.f32.mrf.mxu1  ;;  %v9230_v51 = vpop.f32.mrf.mxu0  ;;  %9381 = vmatmul.mubr.msk.f32.gmra.mxu1 %vm742_vm2, %v3738_v26  ;;  %9485 = vmatmul.mubr.msk.f32.gmra.mxu0 %vm742_vm2, %v12969_v25  ;;  %v3740_v26 = vld [vmem:[#allocation2 + $0x4e1] sm:$0xff] }
 0x253   :  { %12967 = vst [vmem:[#allocation12_spill] sm:$0xff] %v11770_v3  ;;  %v11776_v38 = vadd.f32 %v3424_v5, %v2930_v55  ;;  %v2933_v58 = vadd.f32 %v9126_v41, %v12970_v8  ;;  %9383 = vmatprep.mubr.msk.f32.mxu1 %vm742_vm2, %v3739_v56  ;;  %9487 = vmatprep.mubr.msk.f32.mxu0 %vm742_vm2, %v12971_v33  ;;  %v4449_v3 = vld [vmem:[#allocation2 + $0x4e2] sm:$0xff]  ;;  %v5097_v33 = vld [vmem:[#allocation2 + $0x30] sm:$0xff] }
 0x254   :  { %v2725_v1 = vpop.f32.mrf.mxu1  ;;  %v3434_v43 = vpop.f32.mrf.mxu0  ;;  %v5096_v5 = vld [vmem:[#allocation2 + $0x20] sm:$0xff] }
 0x255   :  { %v11782_v18 = vadd.f32 %v9230_v51, %v2933_v58  ;;  %v2932_v59 = vadd.f32 %v2725_v1, %v12972_v60 }
 0x256   :  { %v9129_v35 = vpop.f32.mrf.mxu1  ;;  %v9233_v25 = vpop.f32.mrf.mxu0  ;;  %9384 = vmatmul.mubr.msk.f32.gmra.mxu1 %vm742_vm2, %v3740_v26  ;;  %9488 = vmatmul.mubr.msk.f32.gmra.mxu0 %vm742_vm2, %v4449_v3  ;;  %v6580_v3 = vld [vmem:[%s12855_s3 + $0x110] sm:$0xff]  ;;  %v12973_v26 = vld [vmem:[#allocation41_spill] sm:$0xff] }
 0x257   :  { %v11787_v55 = vadd.f32 %v3434_v43, %v2932_v59  ;;  %v2935_v41 = vadd.f32 %v9129_v35, %v11383_v53  ;;  %9498 = vmatprep.mubr.msk.f32.mxu1 %vm742_vm2, %v5096_v5  ;;  %9602 = vmatprep.mubr.msk.f32.mxu0 %vm742_vm2, %v11390_v49  ;;  %v5098_v53 = vld [vmem:[#allocation2 + $0x40] sm:$0xff] }
 0x258   :  { %v2735_v51 = vpop.f32.mrf.mxu1  ;;  %v3444_v56 = vpop.f32.mrf.mxu0 }
 0x259   :  { %v11793_v8 = vadd.f32 %v9233_v25, %v2935_v41  ;;  %v2934_v58 = vadd.f32 %v2735_v51, %v11388_v23  ;;  %v12974_v51 = vld [vmem:[#allocation42_spill] sm:$0xff] }
 0x25a   :  { %v9132_v1 = vpop.f32.mrf.mxu1  ;;  %v9236_v43 = vpop.f32.mrf.mxu0  ;;  %9499 = vmatmul.mubr.msk.f32.vlgmr.msra.gmra.mxu1 %vm742_vm2, %v5097_v33  ;;  %9603 = vmatmul.mubr.msk.f32.vlgmr.msra.gmra.mxu0 %vm742_vm2, %v11399_v4  ;;  %v5099_v4 = vld [vmem:[#allocation2 + $0x50] sm:$0xff] }
 0x25b   :  { %v11802_v49 = vadd.f32 %v3444_v56, %v2934_v58  ;;  %v2937_v35 = vadd.f32 %v9132_v1, %v11401_v42  ;;  %9699 = vmatpush3.msra.mxu1 %v11462_v7  ;;  %9501 = vmatprep.mubr.msk.f32.mxu1 %vm742_vm2, %v5098_v53  ;;  %v6579_v42 = vld [vmem:[%s12855_s3 + $0x108] sm:$0xff]  ;;  %v12975_v58 = vld [vmem:[#allocation44_spill] sm:$0xff] }
 0x25c   :  { %9605 = vmatprep.mubr.msk.f32.mxu0 %vm742_vm2, %v11410_v27  ;;  %v2745_v23 = vpop.f32.mrf.mxu1  ;;  %v3454_v60 = vpop.f32.mrf.mxu0  ;;  %9700 = vmatprep.subr.mxu1 %v6580_v3  ;;  %v5100_v27 = vld [vmem:[#allocation2 + $0x60] sm:$0xff] }
 0x25d   :  { %v11809_v59 = vadd.f32 %v9236_v43, %v2937_v35  ;;  %v2936_v25 = vadd.f32 %v2745_v23, %v12973_v26  ;;  %9701 = vmatpush3.msra.mxu1 %v6580_v3  ;;  %v12976_v43 = vld [vmem:[#allocation43_spill] sm:$0xff]  ;;  %v5101_v35 = vld [vmem:[#allocation2 + $0x70] sm:$0xff]  ;;  %v5102_v26 = vld [vmem:[#allocation2 + $0x80] sm:$0xff] }
 0x25e   :  { %v9135_v5 = vpop.f32.mrf.mxu1  ;;  %v9239_v7 = vpop.f32.mrf.mxu0  ;;  %9502 = vmatmul.mubr.msk.f32.gmra.mxu1 %vm742_vm2, %v5099_v4  ;;  %9606 = vmatmul.mubr.msk.f32.gmra.mxu0 %vm742_vm2, %v11422_v40  ;;  %v6578_v40 = vld [vmem:[%s12855_s3 + $0x100] sm:$0xff]  ;;  %v12977_v4 = vld [vmem:[#allocation45_spill] sm:$0xff] }
 0x25f   :  { %v11818_v41 = vadd.f32 %v3454_v60, %v2936_v25  ;;  %v2939_v56 = vadd.f32 %v9135_v5, %v12974_v51  ;;  %9504 = vmatprep.mubr.msk.f32.mxu1 %vm742_vm2, %v5100_v27  ;;  %9608 = vmatprep.mubr.msk.f32.mxu0 %vm742_vm2, %v12975_v58  ;;  %v5812_v27 = vld [vmem:[#allocation2 + $0x91] sm:$0xff] }
 0x260   :  { %v2755_v33 = vpop.f32.mrf.mxu1  ;;  %v3464_v3 = vpop.f32.mrf.mxu0  ;;  %9702 = vmatprep.subr.mxu1 %v6579_v42 }
 0x261   :  { %v11824_v1 = vadd.f32 %v9239_v7, %v2939_v56  ;;  %v2938_v53 = vadd.f32 %v2755_v33, %v12976_v43  ;;  %9703 = vmatpush3.msra.mxu1 %v6579_v42  ;;  %v12978_v7 = vld [vmem:[#allocation46_spill] sm:$0xff]  ;;  %v5103_v42 = vld [vmem:[#allocation2 + $0x90] sm:$0xff]  ;;  %v12979_v33 = vld [vmem:[#allocation47_spill] sm:$0xff] }
 0x262   :  { %v9138_v23 = vpop.f32.mrf.mxu1  ;;  %v9242_v60 = vpop.f32.mrf.mxu0  ;;  %9505 = vmatmul.mubr.msk.f32.gmra.mxu1 %vm742_vm2, %v5101_v35  ;;  %9609 = vmatmul.mubr.msk.f32.gmra.mxu0 %vm742_vm2, %v11444_v47 }
 0x263   :  { %v11833_v25 = vadd.f32 %v3464_v3, %v2938_v53  ;;  %v2941_v5 = vadd.f32 %v9138_v23, %v12977_v4  ;;  %9507 = vmatprep.mubr.msk.f32.mxu1 %vm742_vm2, %v5102_v26  ;;  %9611 = vmatprep.mubr.msk.f32.mxu0 %vm742_vm2, %v12978_v7  ;;  %v5104_v53 = vld [vmem:[#allocation2 + $0xc0] sm:$0xff]  ;;  %v5105_v7 = vld [vmem:[#allocation2 + $0xd0] sm:$0xff] }
 0x264   :  { %v2765_v51 = vpop.f32.mrf.mxu1  ;;  %v3474_v56 = vpop.f32.mrf.mxu0  ;;  %9704 = vmatprep.subr.mxu1 %v6578_v40 }
 0x265   :  { %v11839_v58 = vadd.f32 %v9242_v60, %v2941_v5  ;;  %v2940_v43 = vadd.f32 %v2765_v51, %v12979_v33  ;;  %9705 = vmatpush3.msra.mxu1 %v6578_v40  ;;  %v12980_v40 = vld [vmem:[#allocation48_spill] sm:$0xff] }
 0x266   :  { %v9141_v47 = vpop.f32.mrf.mxu1  ;;  %v9245_v3 = vpop.f32.mrf.mxu0  ;;  %9508 = vmatmul.mubr.msk.f32.gmra.mxu1 %vm742_vm2, %v5103_v42  ;;  %9612 = vmatmul.mubr.msk.f32.gmra.mxu0 %vm742_vm2, %v5812_v27 }
 0x267   :  { %v11844_v35 = vadd.f32 %v3474_v56, %v2940_v43  ;;  %v2943_v23 = vadd.f32 %v9141_v47, %v11467_v39  ;;  %9510 = vmatprep.mubr.msk.f32.mxu1 %vm742_vm2, %v5104_v53  ;;  %9614 = vmatprep.mubr.msk.f32.mxu0 %vm742_vm2, %v11475_v54  ;;  %v5106_v39 = vld [vmem:[#allocation2 + $0xe0] sm:$0xff]  ;;  %v12981_v56 = vld [vmem:[#allocation49_spill] sm:$0xff] }
 0x268   :  { %v2775_v60 = vpop.f32.mrf.mxu1  ;;  %v3484_v26 = vpop.f32.mrf.mxu0 }
 0x269   :  { %v11850_v4 = vadd.f32 %v9245_v3, %v2943_v23  ;;  %v2942_v5 = vadd.f32 %v2775_v60, %v12980_v40  ;;  %v12982_v3 = vld [vmem:[#allocation50_spill] sm:$0xff]  ;;  %v5107_v23 = vld [vmem:[#allocation2 + $0xf0] sm:$0xff] }
 0x26a   :  { %v9144_v42 = vpop.f32.mrf.mxu1  ;;  %v9248_v51 = vpop.f32.mrf.mxu0  ;;  %9511 = vmatmul.mubr.msk.f32.gmra.mxu1 %vm742_vm2, %v5105_v7  ;;  %9615 = vmatmul.mubr.msk.f32.gmra.mxu0 %vm742_vm2, %v11481_v16  ;;  %v5816_v60 = vld [vmem:[#allocation2 + $0xf1] sm:$0xff] }
 0x26b   :  { %v11856_v27 = vadd.f32 %v3484_v26, %v2942_v5  ;;  %v2945_v33 = vadd.f32 %v9144_v42, %v12981_v56  ;;  %9513 = vmatprep.mubr.msk.f32.mxu1 %vm742_vm2, %v5106_v39  ;;  %9617 = vmatprep.mubr.msk.f32.mxu0 %vm742_vm2, %v11491_v52  ;;  %v5108_v26 = vld [vmem:[#allocation2 + $0x100] sm:$0xff]  ;;  %v12983_v52 = vld [vmem:[#allocation52_spill] sm:$0xff]  ;;  %v12984_v56 = vld [vmem:[#allocation51_spill] sm:$0xff] }
 0x26c   :  { %v2785_v54 = vpop.f32.mrf.mxu1  ;;  %v3494_v43 = vpop.f32.mrf.mxu0 }
 0x26d   :  { %v11862_v47 = vadd.f32 %v9248_v51, %v2945_v33  ;;  %v2944_v53 = vadd.f32 %v2785_v54, %v12982_v3  ;;  %v5109_v54 = vld [vmem:[#allocation2 + $0x110] sm:$0xff] }
 0x26e   :  { %v9147_v40 = vpop.f32.mrf.mxu1  ;;  %v9251_v16 = vpop.f32.mrf.mxu0  ;;  %9514 = vmatmul.mubr.msk.f32.gmra.mxu1 %vm742_vm2, %v5107_v23  ;;  %9618 = vmatmul.mubr.msk.f32.gmra.mxu0 %vm742_vm2, %v5816_v60  ;;  %v5818_v3 = vld [vmem:[#allocation2 + $0x111] sm:$0xff] }
 0x26f   :  { %v11867_v5 = vadd.f32 %v3494_v43, %v2944_v53  ;;  %v2947_v7 = vadd.f32 %v9147_v40, %v11497_v37  ;;  %9516 = vmatprep.mubr.msk.f32.mxu1 %vm742_vm2, %v5108_v26  ;;  %9620 = vmatprep.mubr.msk.f32.mxu0 %vm742_vm2, %v12983_v52  ;;  %v5110_v37 = vld [vmem:[#allocation2 + $0x120] sm:$0xff]  ;;  %v5111_v40 = vld [vmem:[#allocation2 + $0x130] sm:$0xff] }
 0x270   :  { %v2795_v42 = vpop.f32.mrf.mxu1  ;;  %v3504_v51 = vpop.f32.mrf.mxu0 }
 0x271   :  { %v11873_v39 = vadd.f32 %v9251_v16, %v2947_v7  ;;  %v2946_v33 = vadd.f32 %v2795_v42, %v12984_v56  ;;  %v5820_v16 = vld [vmem:[#allocation2 + $0x131] sm:$0xff] }
 0x272   :  { %v9150_v23 = vpop.f32.mrf.mxu1  ;;  %v9254_v60 = vpop.f32.mrf.mxu0  ;;  %9517 = vmatmul.mubr.msk.f32.gmra.mxu1 %vm742_vm2, %v5109_v54  ;;  %9621 = vmatmul.mubr.msk.f32.gmra.mxu0 %vm742_vm2, %v5818_v3  ;;  %v12985_v42 = vld [vmem:[#allocation53_spill] sm:$0xff] }
 0x273   :  { %v11878_v43 = vadd.f32 %v3504_v51, %v2946_v33  ;;  %v2949_v53 = vadd.f32 %v9150_v23, %v11510_v61  ;;  %9519 = vmatprep.mubr.msk.f32.mxu1 %vm742_vm2, %v5110_v37  ;;  %9623 = vmatprep.mubr.msk.f32.mxu0 %vm742_vm2, %v11517_v24  ;;  %v5112_v61 = vld [vmem:[#allocation2 + $0x160] sm:$0xff] }
 0x274   :  { %v2805_v26 = vpop.f32.mrf.mxu1  ;;  %v3514_v7 = vpop.f32.mrf.mxu0  ;;  %v12987_v37 = vld [vmem:[#allocation54_spill] sm:$0xff] }
 0x275   :  { %v11884_v52 = vadd.f32 %v9254_v60, %v2949_v53  ;;  %v2948_v56 = vadd.f32 %v2805_v26, %v12985_v42  ;;  %v5113_v26 = vld [vmem:[#allocation2 + $0x170] sm:$0xff] }
 0x276   :  { %v9153_v54 = vpop.f32.mrf.mxu1  ;;  %v9257_v3 = vpop.f32.mrf.mxu0  ;;  %9520 = vmatmul.mubr.msk.f32.gmra.mxu1 %vm742_vm2, %v5111_v40  ;;  %9624 = vmatmul.mubr.msk.f32.gmra.mxu0 %vm742_vm2, %v5820_v16  ;;  %v5822_v40 = vld [vmem:[#allocation2 + $0x171] sm:$0xff] }
 0x277   :  { %v11889_v51 = vadd.f32 %v3514_v7, %v2948_v56  ;;  %v2951_v33 = vadd.f32 %v9153_v54, %v11522_v14  ;;  %9522 = vmatprep.mubr.msk.f32.mxu1 %vm742_vm2, %v5112_v61  ;;  %9626 = vmatprep.mubr.msk.f32.mxu0 %vm742_vm2, %v11529_v28  ;;  %v5114_v14 = vld [vmem:[#allocation2 + $0x180] sm:$0xff] }
 0x278   :  { %v2815_v24 = vpop.f32.mrf.mxu1  ;;  %v3524_v23 = vpop.f32.mrf.mxu0  ;;  %v5823_v7 = vld [vmem:[#allocation2 + $0x181] sm:$0xff] }
 0x279   :  { %v11895_v60 = vadd.f32 %v9257_v3, %v2951_v33  ;;  %v2950_v53 = vadd.f32 %v2815_v24, %v12987_v37  ;;  %v12989_v33 = vld [vmem:[#allocation55_spill] sm:$0xff]  ;;  %v5115_v37 = vld [vmem:[#allocation2 + $0x190] sm:$0xff] }
 0x27a   :  { %v9156_v42 = vpop.f32.mrf.mxu1  ;;  %v9260_v16 = vpop.f32.mrf.mxu0  ;;  %9523 = vmatmul.mubr.msk.f32.gmra.mxu1 %vm742_vm2, %v5113_v26  ;;  %9627 = vmatmul.mubr.msk.f32.gmra.mxu0 %vm742_vm2, %v5822_v40  ;;  %v5824_v26 = vld [vmem:[#allocation2 + $0x191] sm:$0xff] }
 0x27b   :  { %12986 = vst [vmem:[#allocation14_spill] sm:$0xff] %v11895_v60  ;;  %v11900_v56 = vadd.f32 %v3524_v23, %v2950_v53  ;;  %v2953_v28 = vadd.f32 %v9156_v42, %v11535_v0  ;;  %9525 = vmatprep.mubr.msk.f32.mxu1 %vm742_vm2, %v5114_v14  ;;  %9629 = vmatprep.mubr.msk.f32.mxu0 %vm742_vm2, %v5823_v7  ;;  %v5116_v23 = vld [vmem:[#allocation2 + $0x1a0] sm:$0xff] }
 0x27c   :  { %v2825_v54 = vpop.f32.mrf.mxu1  ;;  %v3534_v3 = vpop.f32.mrf.mxu0  ;;  %v5825_v0 = vld [vmem:[#allocation2 + $0x1a1] sm:$0xff] }
 0x27d   :  { %v11905_v61 = vadd.f32 %v9260_v16, %v2953_v28  ;;  %v2952_v24 = vadd.f32 %v2825_v54, %v12989_v33  ;;  %v12990_v28 = vld [vmem:[#allocation56_spill] sm:$0xff] }
 0x27e   :  { %v9159_v60 = vpop.f32.mrf.mxu1  ;;  %v9263_v40 = vpop.f32.mrf.mxu0  ;;  %9526 = vmatmul.mubr.msk.f32.gmra.mxu1 %vm742_vm2, %v5115_v37  ;;  %9630 = vmatmul.mubr.msk.f32.gmra.mxu0 %vm742_vm2, %v5824_v26  ;;  %v5117_v33 = vld [vmem:[#allocation2 + $0x1b0] sm:$0xff] }
 0x27f   :  { %12988 = vst [vmem:[#allocation15_spill] sm:$0xff] %v11905_v61  ;;  %v11910_v53 = vadd.f32 %v3534_v3, %v2952_v24  ;;  %v2955_v42 = vadd.f32 %v9159_v60, %v11545_v46  ;;  %9528 = vmatprep.mubr.msk.f32.mxu1 %vm742_vm2, %v5116_v23  ;;  %9632 = vmatprep.mubr.msk.f32.mxu0 %vm742_vm2, %v5825_v0  ;;  %v5826_v37 = vld [vmem:[#allocation2 + $0x1b1] sm:$0xff]  ;;  %v5118_v3 = vld [vmem:[#allocation2 + $0x1c0] sm:$0xff] }
 0x280   :  { %v2835_v16 = vpop.f32.mrf.mxu1  ;;  %v3544_v14 = vpop.f32.mrf.mxu0  ;;  %v5827_v46 = vld [vmem:[#allocation2 + $0x1c1] sm:$0xff]  ;;  %v5828_v23 = vld [vmem:[#allocation2 + $0x1d1] sm:$0xff] }
 0x281   :  { %v11915_v7 = vadd.f32 %v9263_v40, %v2955_v42  ;;  %v2954_v54 = vadd.f32 %v2835_v16, %v12990_v28  ;;  %v5119_v40 = vld [vmem:[#allocation2 + $0x1d0] sm:$0xff] }
 0x282   :  { %v9162_v61 = vpop.f32.mrf.mxu1  ;;  %v9266_v26 = vpop.f32.mrf.mxu0  ;;  %9529 = vmatmul.mubr.msk.f32.gmra.mxu1 %vm742_vm2, %v5117_v33  ;;  %9633 = vmatmul.mubr.msk.f32.gmra.mxu0 %vm742_vm2, %v5826_v37 }
 0x283   :  { %v11920_v60 = vadd.f32 %v3544_v14, %v2954_v54  ;;  %v2957_v24 = vadd.f32 %v9162_v61, %v11555_v13  ;;  %9531 = vmatprep.mubr.msk.f32.mxu1 %vm742_vm2, %v5118_v3  ;;  %9635 = vmatprep.mubr.msk.f32.mxu0 %vm742_vm2, %v5827_v46  ;;  %v5120_v14 = vld [vmem:[#allocation2 + $0x200] sm:$0xff] }
 0x284   :  { %v2845_v0 = vpop.f32.mrf.mxu1  ;;  %v3554_v42 = vpop.f32.mrf.mxu0  ;;  %v5829_v13 = vld [vmem:[#allocation2 + $0x201] sm:$0xff] }
 0x285   :  { %v11925_v16 = vadd.f32 %v9266_v26, %v2957_v24  ;;  %v2956_v28 = vadd.f32 %v2845_v0, %v11560_v63  ;;  %v5121_v24 = vld [vmem:[#allocation2 + $0x210] sm:$0xff] }
 0x286   :  { %v9165_v33 = vpop.f32.mrf.mxu1  ;;  %v9269_v37 = vpop.f32.mrf.mxu0  ;;  %9532 = vmatmul.mubr.msk.f32.gmra.mxu1 %vm742_vm2, %v5119_v40  ;;  %9636 = vmatmul.mubr.msk.f32.gmra.mxu0 %vm742_vm2, %v5828_v23  ;;  %v5830_v40 = vld [vmem:[#allocation2 + $0x211] sm:$0xff] }
 0x287   :  { %v11930_v61 = vadd.f32 %v3554_v42, %v2956_v28  ;;  %v2959_v54 = vadd.f32 %v9165_v33, %v11564_v34  ;;  %9534 = vmatprep.mubr.msk.f32.mxu1 %vm742_vm2, %v5120_v14  ;;  %9638 = vmatprep.mubr.msk.f32.mxu0 %vm742_vm2, %v5829_v13  ;;  %v5122_v42 = vld [vmem:[#allocation2 + $0x220] sm:$0xff]  ;;  %v12994_v33 = vld [vmem:[#allocation57_spill] sm:$0xff] }
 0x288   :  { %v2855_v26 = vpop.f32.mrf.mxu1  ;;  %v3564_v3 = vpop.f32.mrf.mxu0  ;;  %v5831_v34 = vld [vmem:[#allocation2 + $0x221] sm:$0xff] }
 0x289   :  { %12991 = vst [vmem:[#allocation16_spill] sm:$0xff] %v11930_v61  ;;  %v11935_v46 = vadd.f32 %v9269_v37, %v2959_v54  ;;  %v2958_v63 = vadd.f32 %v2855_v26, %v11569_v11  ;;  %v12996_v54 = vld [vmem:[#allocation58_spill] sm:$0xff] }
 0x28a   :  { %v9168_v0 = vpop.f32.mrf.mxu1  ;;  %v9272_v23 = vpop.f32.mrf.mxu0  ;;  %9535 = vmatmul.mubr.msk.f32.gmra.mxu1 %vm742_vm2, %v5121_v24  ;;  %9639 = vmatmul.mubr.msk.f32.gmra.mxu0 %vm742_vm2, %v5830_v40  ;;  %v5832_v24 = vld [vmem:[#allocation2 + $0x231] sm:$0xff] }
 0x28b   :  { %12992 = vst [vmem:[#allocation18_spill] sm:$0xff] %v11935_v46  ;;  %v11940_v28 = vadd.f32 %v3564_v3, %v2958_v63  ;;  %v2961_v14 = vadd.f32 %v9168_v0, %v12994_v33  ;;  %9537 = vmatprep.mubr.msk.f32.mxu1 %vm742_vm2, %v5122_v42  ;;  %9641 = vmatprep.mubr.msk.f32.mxu0 %vm742_vm2, %v5831_v34  ;;  %v5123_v46 = vld [vmem:[#allocation2 + $0x230] sm:$0xff]  ;;  %v5124_v3 = vld [vmem:[#allocation2 + $0x240] sm:$0xff]  ;;  %v12998_v42 = vld [vmem:[#allocation59_spill] sm:$0xff] }
 0x28c   :  { %v2865_v37 = vpop.f32.mrf.mxu1  ;;  %v3574_v11 = vpop.f32.mrf.mxu0  ;;  %v5833_v63 = vld [vmem:[#allocation2 + $0x241] sm:$0xff] }
 0x28d   :  { %12993 = vst [vmem:[#allocation17_spill] sm:$0xff] %v11940_v28  ;;  %v11945_v13 = vadd.f32 %v9272_v23, %v2961_v14  ;;  %v2960_v26 = vadd.f32 %v2865_v37, %v12996_v54  ;;  %v13000_v37 = vld [vmem:[#allocation60_spill] sm:$0xff] }
 0x28e   :  { %v9171_v61 = vpop.f32.mrf.mxu1  ;;  %v9275_v40 = vpop.f32.mrf.mxu0  ;;  %9538 = vmatmul.mubr.msk.f32.gmra.mxu1 %vm742_vm2, %v5123_v46  ;;  %9642 = vmatmul.mubr.msk.f32.gmra.mxu0 %vm742_vm2, %v5832_v24  ;;  %v5834_v46 = vld [vmem:[#allocation2 + $0x251] sm:$0xff] }
 0x28f   :  { %12995 = vst [vmem:[#allocation19_spill] sm:$0xff] %v11945_v13  ;;  %v11950_v0 = vadd.f32 %v3574_v11, %v2960_v26  ;;  %v2963_v34 = vadd.f32 %v9171_v61, %v12998_v42  ;;  %9540 = vmatprep.mubr.msk.f32.mxu1 %vm742_vm2, %v5124_v3  ;;  %9644 = vmatprep.mubr.msk.f32.mxu0 %vm742_vm2, %v5833_v63  ;;  %v5125_v13 = vld [vmem:[#allocation2 + $0x250] sm:$0xff]  ;;  %v5126_v11 = vld [vmem:[#allocation2 + $0x260] sm:$0xff] }
 0x290   :  { %v2875_v23 = vpop.f32.mrf.mxu1  ;;  %v3584_v33 = vpop.f32.mrf.mxu0  ;;  %v5835_v61 = vld [vmem:[#allocation2 + $0x261] sm:$0xff]  ;;  %v5836_v42 = vld [vmem:[#allocation2 + $0x271] sm:$0xff] }
 0x291   :  { %12997 = vst [vmem:[#allocation21_spill] sm:$0xff] %v11950_v0  ;;  %v11955_v14 = vadd.f32 %v9275_v40, %v2963_v34  ;;  %v2962_v54 = vadd.f32 %v2875_v23, %v13000_v37  ;;  %v13002_v3 = vld [vmem:[#allocation6_spill] sm:$0xff]  ;;  %v5127_v40 = vld [vmem:[#allocation2 + $0x270] sm:$0xff] }
 0x292   :  { %v9174_v28 = vpop.f32.mrf.mxu1  ;;  %v9278_v24 = vpop.f32.mrf.mxu0  ;;  %9541 = vmatmul.mubr.msk.f32.gmra.mxu1 %vm742_vm2, %v5125_v13  ;;  %9645 = vmatmul.mubr.msk.f32.gmra.mxu0 %vm742_vm2, %v5834_v46 }
 0x293   :  { %12999 = vst [vmem:[#allocation20_spill] sm:$0xff] %v11955_v14  ;;  %v11960_v26 = vadd.f32 %v3584_v33, %v2962_v54  ;;  %v2965_v63 = vadd.f32 %v9174_v28, %v13002_v3  ;;  %9543 = vmatprep.mubr.msk.f32.mxu1 %vm742_vm2, %v5126_v11  ;;  %9647 = vmatprep.mubr.msk.f32.mxu0 %vm742_vm2, %v5835_v61  ;;  %v13004_v14 = vld [vmem:[#allocation7_spill] sm:$0xff]  ;;  %v5128_v33 = vld [vmem:[#allocation2 + $0x2a0] sm:$0xff]  ;;  %v13005_v11 = vld [vmem:[#allocation61_spill] sm:$0xff] }
 0x294   :  { %v2885_v34 = vpop.f32.mrf.mxu1  ;;  %v3594_v23 = vpop.f32.mrf.mxu0  ;;  %v5837_v28 = vld [vmem:[#allocation2 + $0x2a1] sm:$0xff] }
 0x295   :  { %13001 = vst [vmem:[#allocation22_spill] sm:$0xff] %v11960_v26  ;;  %v11965_v37 = vadd.f32 %v9278_v24, %v2965_v63  ;;  %v2964_v13 = vadd.f32 %v2885_v34, %v13004_v14  ;;  %v13007_v14 = vld [vmem:[#allocation8_spill] sm:$0xff] }
 0x296   :  { %v9177_v0 = vpop.f32.mrf.mxu1  ;;  %v9281_v46 = vpop.f32.mrf.mxu0  ;;  %9544 = vmatmul.mubr.msk.f32.gmra.mxu1 %vm742_vm2, %v5127_v40  ;;  %9648 = vmatmul.mubr.msk.f32.gmra.mxu0 %vm742_vm2, %v5836_v42  ;;  %v5838_v40 = vld [vmem:[#allocation2 + $0x2b1] sm:$0xff] }
 0x297   :  { %13003 = vst [vmem:[#allocation23_spill] sm:$0xff] %v11965_v37  ;;  %v11970_v54 = vadd.f32 %v3594_v23, %v2964_v13  ;;  %v2967_v61 = vadd.f32 %v9177_v0, %v13005_v11  ;;  %9546 = vmatprep.mubr.msk.f32.mxu1 %vm742_vm2, %v5128_v33  ;;  %9650 = vmatprep.mubr.msk.f32.mxu0 %vm742_vm2, %v5837_v28  ;;  %v5129_v37 = vld [vmem:[#allocation2 + $0x2b0] sm:$0xff]  ;;  %v5130_v23 = vld [vmem:[#allocation2 + $0x2c0] sm:$0xff] }
 0x298   :  { %v2895_v24 = vpop.f32.mrf.mxu1  ;;  %v3604_v3 = vpop.f32.mrf.mxu0  ;;  %v5839_v0 = vld [vmem:[#allocation2 + $0x2c1] sm:$0xff] }
 0x299   :  { %v11975_v63 = vadd.f32 %v9281_v46, %v2967_v61  ;;  %v2966_v34 = vadd.f32 %v2895_v24, %v13007_v14  ;;  %v13008_v33 = vld [vmem:[#allocation10_spill] sm:$0xff]  ;;  %v5131_v14 = vld [vmem:[#allocation2 + $0x2d0] sm:$0xff] }
 0x29a   :  { %v9292_v26 = vpop.f32.mrf.mxu1  ;;  %v9396_v42 = vpop.f32.mrf.mxu0  ;;  %9547 = vmatmul.mubr.msk.f32.gmra.mxu1 %vm742_vm2, %v5129_v37  ;;  %9651 = vmatmul.mubr.msk.f32.gmra.mxu0 %vm742_vm2, %v5838_v40  ;;  %v5840_v37 = vld [vmem:[#allocation2 + $0x2d1] sm:$0xff] }
 0x29b   :  { %13006 = vst [vmem:[#allocation24_spill] sm:$0xff] %v11975_v63  ;;  %v11980_v13 = vadd.f32 %v3604_v3, %v2966_v34  ;;  %v4323_v28 = vadd.f32 %v9292_v26, %v13008_v33  ;;  %9549 = vmatprep.mubr.msk.f32.mxu1 %vm742_vm2, %v5130_v23  ;;  %9653 = vmatprep.mubr.msk.f32.mxu0 %vm742_vm2, %v5839_v0  ;;  %v5132_v3 = vld [vmem:[#allocation2 + $0x2e0] sm:$0xff] }
 0x29c   :  { %v4003_v46 = vpop.f32.mrf.mxu1  ;;  %v4712_v11 = vpop.f32.mrf.mxu0  ;;  %v5841_v26 = vld [vmem:[#allocation2 + $0x2e1] sm:$0xff] }
 0x29d   :  { %v11985_v61 = vadd.f32 %v9396_v42, %v4323_v28  ;;  %v4322_v24 = vadd.f32 %v4003_v46, %v11623_v31  ;;  %v5133_v28 = vld [vmem:[#allocation2 + $0x2f0] sm:$0xff] }
 0x29e   :  { %v9295_v63 = vpop.f32.mrf.mxu1  ;;  %v9399_v40 = vpop.f32.mrf.mxu0  ;;  %9550 = vmatmul.mubr.msk.f32.gmra.mxu1 %vm742_vm2, %v5131_v14  ;;  %9654 = vmatmul.mubr.msk.f32.gmra.mxu0 %vm742_vm2, %v5840_v37  ;;  %v5842_v46 = vld [vmem:[#allocation2 + $0x2f1] sm:$0xff] }
 0x29f   :  { %v11990_v34 = vadd.f32 %v4712_v11, %v4322_v24  ;;  %v4325_v23 = vadd.f32 %v9295_v63, %v11629_v10  ;;  %9552 = vmatprep.mubr.msk.f32.mxu1 %vm742_vm2, %v5132_v3  ;;  %9656 = vmatprep.mubr.msk.f32.mxu0 %vm742_vm2, %v5841_v26  ;;  %v5134_v11 = vld [vmem:[#allocation2 + $0x300] sm:$0xff] }
 0x2a0   :  { %v4013_v42 = vpop.f32.mrf.mxu1  ;;  %v4722_v31 = vpop.f32.mrf.mxu0  ;;  %v5843_v10 = vld [vmem:[#allocation2 + $0x301] sm:$0xff] }
 0x2a1   :  { %v11995_v0 = vadd.f32 %v9399_v40, %v4325_v23  ;;  %v4324_v33 = vadd.f32 %v4013_v42, %v11635_v36  ;;  %v5135_v40 = vld [vmem:[#allocation2 + $0x310] sm:$0xff] }
 0x2a2   :  { %v9298_v14 = vpop.f32.mrf.mxu1  ;;  %v9402_v37 = vpop.f32.mrf.mxu0  ;;  %9553 = vmatmul.mubr.msk.f32.gmra.mxu1 %vm742_vm2, %v5133_v28  ;;  %9657 = vmatmul.mubr.msk.f32.gmra.mxu0 %vm742_vm2, %v5842_v46  ;;  %v5844_v36 = vld [vmem:[#allocation2 + $0x311] sm:$0xff] }
 0x2a3   :  { %v12000_v63 = vadd.f32 %v4722_v31, %v4324_v33  ;;  %v4327_v24 = vadd.f32 %v9298_v14, %v11641_v48  ;;  %9555 = vmatprep.mubr.msk.f32.mxu1 %vm742_vm2, %v5134_v11  ;;  %9659 = vmatprep.mubr.msk.f32.mxu0 %vm742_vm2, %v5843_v10  ;;  %v5136_v31 = vld [vmem:[#allocation2 + $0x340] sm:$0xff] }
 0x2a4   :  { %v4023_v3 = vpop.f32.mrf.mxu1  ;;  %v4732_v26 = vpop.f32.mrf.mxu0  ;;  %v5845_v48 = vld [vmem:[#allocation2 + $0x341] sm:$0xff] }
 0x2a5   :  { %v12005_v23 = vadd.f32 %v9402_v37, %v4327_v24  ;;  %v4326_v42 = vadd.f32 %v4023_v3, %v11646_v29  ;;  %v5137_v24 = vld [vmem:[#allocation2 + $0x350] sm:$0xff] }
 0x2a6   :  { %v9301_v28 = vpop.f32.mrf.mxu1  ;;  %v9405_v46 = vpop.f32.mrf.mxu0  ;;  %9556 = vmatmul.mubr.msk.f32.gmra.mxu1 %vm742_vm2, %v5135_v40  ;;  %9660 = vmatmul.mubr.msk.f32.gmra.mxu0 %vm742_vm2, %v5844_v36  ;;  %v5846_v40 = vld [vmem:[#allocation2 + $0x351] sm:$0xff] }
 0x2a7   :  { %v12010_v33 = vadd.f32 %v4732_v26, %v4326_v42  ;;  %v4329_v14 = vadd.f32 %v9301_v28, %v11652_v2  ;;  %9558 = vmatprep.mubr.msk.f32.mxu1 %vm742_vm2, %v5136_v31  ;;  %9662 = vmatprep.mubr.msk.f32.mxu0 %vm742_vm2, %v5845_v48  ;;  %v5138_v26 = vld [vmem:[#allocation2 + $0x360] sm:$0xff]  ;;  %v13010_v28 = vld [vmem:[#allocation9_spill] sm:$0xff] }
 0x2a8   :  { %v4033_v37 = vpop.f32.mrf.mxu1  ;;  %v4742_v11 = vpop.f32.mrf.mxu0  ;;  %v5847_v2 = vld [vmem:[#allocation2 + $0x361] sm:$0xff] }
 0x2a9   :  { %v12015_v10 = vadd.f32 %v9405_v46, %v4329_v14  ;;  %v4328_v29 = vadd.f32 %v4033_v37, %v11658_v44  ;;  %v5139_v37 = vld [vmem:[#allocation2 + $0x370] sm:$0xff] }
 0x2aa   :  { %v9304_v3 = vpop.f32.mrf.mxu1  ;;  %v9408_v36 = vpop.f32.mrf.mxu0  ;;  %9559 = vmatmul.mubr.msk.f32.gmra.mxu1 %vm742_vm2, %v5137_v24  ;;  %9663 = vmatmul.mubr.msk.f32.gmra.mxu0 %vm742_vm2, %v5846_v40  ;;  %v5848_v24 = vld [vmem:[#allocation2 + $0x371] sm:$0xff] }
 0x2ab   :  { %13009 = vst [vmem:[#allocation26_spill] sm:$0xff] %v12015_v10  ;;  %v12020_v42 = vadd.f32 %v4742_v11, %v4328_v29  ;;  %v4331_v31 = vadd.f32 %v9304_v3, %v13010_v28  ;;  %9561 = vmatprep.mubr.msk.f32.mxu1 %vm742_vm2, %v5138_v26  ;;  %9665 = vmatprep.mubr.msk.f32.mxu0 %vm742_vm2, %v5847_v2  ;;  %v5140_v11 = vld [vmem:[#allocation2 + $0x380] sm:$0xff] }
 0x2ac   :  { %v4043_v46 = vpop.f32.mrf.mxu1  ;;  %v4752_v44 = vpop.f32.mrf.mxu0  ;;  %v5849_v29 = vld [vmem:[#allocation2 + $0x381] sm:$0xff] }
 0x2ad   :  { %v12025_v48 = vadd.f32 %v9408_v36, %v4331_v31  ;;  %v4330_v14 = vadd.f32 %v4043_v46, %v11670_v17  ;;  %v5141_v31 = vld [vmem:[#allocation2 + $0x390] sm:$0xff] }
 0x2ae   :  { %v9307_v10 = vpop.f32.mrf.mxu1  ;;  %v9411_v40 = vpop.f32.mrf.mxu0  ;;  %9562 = vmatmul.mubr.msk.f32.gmra.mxu1 %vm742_vm2, %v5139_v37  ;;  %9666 = vmatmul.mubr.msk.f32.gmra.mxu0 %vm742_vm2, %v5848_v24  ;;  %v5850_v46 = vld [vmem:[#allocation2 + $0x391] sm:$0xff] }
 0x2af   :  { %v12030_v3 = vadd.f32 %v4752_v44, %v4330_v14  ;;  %v4333_v26 = vadd.f32 %v9307_v10, %v11676_v6  ;;  %9564 = vmatprep.mubr.msk.f32.mxu1 %vm742_vm2, %v5140_v11  ;;  %9668 = vmatprep.mubr.msk.f32.mxu0 %vm742_vm2, %v5849_v29  ;;  %v5142_v44 = vld [vmem:[#allocation2 + $0x3a0] sm:$0xff] }
 0x2b0   :  { %v4053_v36 = vpop.f32.mrf.mxu1  ;;  %v4762_v17 = vpop.f32.mrf.mxu0  ;;  %v5851_v6 = vld [vmem:[#allocation2 + $0x3a1] sm:$0xff] }
 0x2b1   :  { %v12035_v2 = vadd.f32 %v9411_v40, %v4333_v26  ;;  %v4332_v28 = vadd.f32 %v4053_v36, %v11682_v50  ;;  %v5143_v40 = vld [vmem:[#allocation2 + $0x3b0] sm:$0xff] }
 0x2b2   :  { %v9310_v37 = vpop.f32.mrf.mxu1  ;;  %v9414_v24 = vpop.f32.mrf.mxu0  ;;  %9565 = vmatmul.mubr.msk.f32.gmra.mxu1 %vm742_vm2, %v5141_v31  ;;  %9669 = vmatmul.mubr.msk.f32.gmra.mxu0 %vm742_vm2, %v5850_v46  ;;  %v5852_v50 = vld [vmem:[#allocation2 + $0x3b1] sm:$0xff] }
 0x2b3   :  { %v12040_v10 = vadd.f32 %v4762_v17, %v4332_v28  ;;  %v4335_v14 = vadd.f32 %v9310_v37, %v11688_v15  ;;  %9567 = vmatprep.mubr.msk.f32.mxu1 %vm742_vm2, %v5142_v44  ;;  %9671 = vmatprep.mubr.msk.f32.mxu0 %vm742_vm2, %v5851_v6  ;;  %v5144_v17 = vld [vmem:[#allocation2 + $0x3e0] sm:$0xff] }
 0x2b4   :  { %v4063_v11 = vpop.f32.mrf.mxu1  ;;  %v4772_v29 = vpop.f32.mrf.mxu0  ;;  %v5853_v15 = vld [vmem:[#allocation2 + $0x3e1] sm:$0xff] }
 0x2b5   :  { %v12045_v26 = vadd.f32 %v9414_v24, %v4335_v14  ;;  %v4334_v36 = vadd.f32 %v4063_v11, %v11693_v19  ;;  %v5145_v14 = vld [vmem:[#allocation2 + $0x3f0] sm:$0xff] }
 0x2b6   :  { %v9313_v31 = vpop.f32.mrf.mxu1  ;;  %v9417_v46 = vpop.f32.mrf.mxu0  ;;  %9568 = vmatmul.mubr.msk.f32.gmra.mxu1 %vm742_vm2, %v5143_v40  ;;  %9672 = vmatmul.mubr.msk.f32.gmra.mxu0 %vm742_vm2, %v5852_v50  ;;  %v5854_v40 = vld [vmem:[#allocation2 + $0x3f1] sm:$0xff] }
 0x2b7   :  { %v12050_v28 = vadd.f32 %v4772_v29, %v4334_v36  ;;  %v4337_v37 = vadd.f32 %v9313_v31, %v11699_v20  ;;  %9570 = vmatprep.mubr.msk.f32.mxu1 %vm742_vm2, %v5144_v17  ;;  %9674 = vmatprep.mubr.msk.f32.mxu0 %vm742_vm2, %v5853_v15  ;;  %v5146_v29 = vld [vmem:[#allocation2 + $0x400] sm:$0xff]  ;;  %v13012_v31 = vld [vmem:[#allocation11_spill] sm:$0xff] }
 0x2b8   :  { %v4073_v24 = vpop.f32.mrf.mxu1  ;;  %v4782_v44 = vpop.f32.mrf.mxu0  ;;  %v5855_v20 = vld [vmem:[#allocation2 + $0x401] sm:$0xff] }
 0x2b9   :  { %v12055_v6 = vadd.f32 %v9417_v46, %v4337_v37  ;;  %v4336_v19 = vadd.f32 %v4073_v24, %v11705_v45  ;;  %v5147_v24 = vld [vmem:[#allocation2 + $0x410] sm:$0xff] }
 0x2ba   :  { %v9316_v11 = vpop.f32.mrf.mxu1  ;;  %v9420_v50 = vpop.f32.mrf.mxu0  ;;  %9571 = vmatmul.mubr.msk.f32.gmra.mxu1 %vm742_vm2, %v5145_v14  ;;  %9675 = vmatmul.mubr.msk.f32.gmra.mxu0 %vm742_vm2, %v5854_v40  ;;  %v5856_v14 = vld [vmem:[#allocation2 + $0x411] sm:$0xff] }
 0x2bb   :  { %13011 = vst [vmem:[#allocation25_spill] sm:$0xff] %v12055_v6  ;;  %v12060_v36 = vadd.f32 %v4782_v44, %v4336_v19  ;;  %v4339_v17 = vadd.f32 %v9316_v11, %v13012_v31  ;;  %9573 = vmatprep.mubr.msk.f32.mxu1 %vm742_vm2, %v5146_v29  ;;  %9677 = vmatprep.mubr.msk.f32.mxu0 %vm742_vm2, %v5855_v20  ;;  %v5148_v44 = vld [vmem:[#allocation2 + $0x420] sm:$0xff] }
 0x2bc   :  { %v4083_v46 = vpop.f32.mrf.mxu1  ;;  %v4792_v45 = vpop.f32.mrf.mxu0  ;;  %v5857_v19 = vld [vmem:[#allocation2 + $0x421] sm:$0xff] }
 0x2bd   :  { %v12065_v15 = vadd.f32 %v9420_v50, %v4339_v17  ;;  %v4338_v37 = vadd.f32 %v4083_v46, %v11717_v12  ;;  %v5149_v17 = vld [vmem:[#allocation2 + $0x430] sm:$0xff] }
 0x2be   :  { %v9319_v6 = vpop.f32.mrf.mxu1  ;;  %v9423_v40 = vpop.f32.mrf.mxu0  ;;  %9574 = vmatmul.mubr.msk.f32.gmra.mxu1 %vm742_vm2, %v5147_v24  ;;  %9678 = vmatmul.mubr.msk.f32.gmra.mxu0 %vm742_vm2, %v5856_v14  ;;  %v5858_v46 = vld [vmem:[#allocation2 + $0x431] sm:$0xff] }
 0x2bf   :  { %v12070_v11 = vadd.f32 %v4792_v45, %v4338_v37  ;;  %v4341_v29 = vadd.f32 %v9319_v6, %v11723_v57  ;;  %9576 = vmatprep.mubr.msk.f32.mxu1 %vm742_vm2, %v5148_v44  ;;  %9680 = vmatprep.mubr.msk.f32.mxu0 %vm742_vm2, %v5857_v19  ;;  %v5150_v45 = vld [vmem:[#allocation2 + $0x440] sm:$0xff] }
 0x2c0   :  { %v4093_v50 = vpop.f32.mrf.mxu1  ;;  %v4802_v12 = vpop.f32.mrf.mxu0  ;;  %v5859_v57 = vld [vmem:[#allocation2 + $0x441] sm:$0xff] }
 0x2c1   :  { %v12075_v20 = vadd.f32 %v9423_v40, %v4341_v29  ;;  %v4340_v31 = vadd.f32 %v4093_v50, %v11729_v22  ;;  %v5151_v40 = vld [vmem:[#allocation2 + $0x450] sm:$0xff] }
 0x2c2   :  { %v9322_v24 = vpop.f32.mrf.mxu1  ;;  %v9426_v14 = vpop.f32.mrf.mxu0  ;;  %9577 = vmatmul.mubr.msk.f32.gmra.mxu1 %vm742_vm2, %v5149_v17  ;;  %9681 = vmatmul.mubr.msk.f32.gmra.mxu0 %vm742_vm2, %v5858_v46  ;;  %v5860_v22 = vld [vmem:[#allocation2 + $0x451] sm:$0xff] }
 0x2c3   :  { %v12080_v6 = vadd.f32 %v4802_v12, %v4340_v31  ;;  %v4343_v37 = vadd.f32 %v9322_v24, %v11735_v21  ;;  %9579 = vmatprep.mubr.msk.f32.mxu1 %vm742_vm2, %v5150_v45  ;;  %9683 = vmatprep.mubr.msk.f32.mxu0 %vm742_vm2, %v5859_v57  ;;  %v5152_v12 = vld [vmem:[#allocation2 + $0x480] sm:$0xff] }
 0x2c4   :  { %v4103_v44 = vpop.f32.mrf.mxu1  ;;  %v4812_v19 = vpop.f32.mrf.mxu0  ;;  %v5861_v21 = vld [vmem:[#allocation2 + $0x481] sm:$0xff] }
 0x2c5   :  { %v12085_v29 = vadd.f32 %v9426_v14, %v4343_v37  ;;  %v4342_v50 = vadd.f32 %v4103_v44, %v11740_v32  ;;  %v5153_v37 = vld [vmem:[#allocation2 + $0x490] sm:$0xff] }
 0x2c6   :  { %v9325_v17 = vpop.f32.mrf.mxu1  ;;  %v9429_v46 = vpop.f32.mrf.mxu0  ;;  %9580 = vmatmul.mubr.msk.f32.gmra.mxu1 %vm742_vm2, %v5151_v40  ;;  %9684 = vmatmul.mubr.msk.f32.gmra.mxu0 %vm742_vm2, %v5860_v22  ;;  %v5862_v40 = vld [vmem:[#allocation2 + $0x491] sm:$0xff] }
 0x2c7   :  { %v12090_v31 = vadd.f32 %v4812_v19, %v4342_v50  ;;  %v4345_v24 = vadd.f32 %v9325_v17, %v11746_v62  ;;  %9582 = vmatprep.mubr.msk.f32.mxu1 %vm742_vm2, %v5152_v12  ;;  %9686 = vmatprep.mubr.msk.f32.mxu0 %vm742_vm2, %v5861_v21  ;;  %v5154_v19 = vld [vmem:[#allocation2 + $0x4a0] sm:$0xff]  ;;  %v13015_v21 = vld [vmem:[#allocation13_spill] sm:$0xff] }
 0x2c8   :  { %v4113_v14 = vpop.f32.mrf.mxu1  ;;  %v4822_v45 = vpop.f32.mrf.mxu0  ;;  %v5863_v62 = vld [vmem:[#allocation2 + $0x4a1] sm:$0xff] }
 0x2c9   :  { %v12095_v57 = vadd.f32 %v9429_v46, %v4345_v24  ;;  %v4344_v32 = vadd.f32 %v4113_v14, %v11752_v9  ;;  %v5155_v14 = vld [vmem:[#allocation2 + $0x4b0] sm:$0xff] }
 0x2ca   :  { %v9328_v44 = vpop.f32.mrf.mxu1  ;;  %v9432_v22 = vpop.f32.mrf.mxu0  ;;  %9583 = vmatmul.mubr.msk.f32.gmra.mxu1 %vm742_vm2, %v5153_v37  ;;  %9687 = vmatmul.mubr.msk.f32.gmra.mxu0 %vm742_vm2, %v5862_v40  ;;  %v5864_v37 = vld [vmem:[#allocation2 + $0x4b1] sm:$0xff] }
 0x2cb   :  { %13013 = vst [vmem:[#allocation27_spill] sm:$0xff] %v12095_v57  ;;  %v12100_v50 = vadd.f32 %v4822_v45, %v4344_v32  ;;  %v4347_v17 = vadd.f32 %v9328_v44, %v11758_v30  ;;  %9585 = vmatprep.mubr.msk.f32.mxu1 %vm742_vm2, %v5154_v19  ;;  %9689 = vmatprep.mubr.msk.f32.mxu0 %vm742_vm2, %v5863_v62  ;;  %v5156_v45 = vld [vmem:[#allocation2 + $0x4c0] sm:$0xff]  ;;  %v13016_v44 = vld [vmem:[#allocation12_spill] sm:$0xff] }
 0x2cc   :  { %v4123_v46 = vpop.f32.mrf.mxu1  ;;  %v4832_v9 = vpop.f32.mrf.mxu0  ;;  %v5865_v30 = vld [vmem:[#allocation2 + $0x4c1] sm:$0xff] }
 0x2cd   :  { %v12105_v12 = vadd.f32 %v9432_v22, %v4347_v17  ;;  %v4346_v24 = vadd.f32 %v4123_v46, %v13015_v21  ;;  %v5157_v21 = vld [vmem:[#allocation2 + $0x4d0] sm:$0xff] }
 0x2ce   :  { %v9331_v57 = vpop.f32.mrf.mxu1  ;;  %v9435_v40 = vpop.f32.mrf.mxu0  ;;  %9586 = vmatmul.mubr.msk.f32.gmra.mxu1 %vm742_vm2, %v5155_v14  ;;  %9690 = vmatmul.mubr.msk.f32.gmra.mxu0 %vm742_vm2, %v5864_v37  ;;  %v5866_v14 = vld [vmem:[#allocation2 + $0x4d1] sm:$0xff] }
 0x2cf   :  { %13014 = vst [vmem:[#allocation29_spill] sm:$0xff] %v12105_v12  ;;  %v12110_v32 = vadd.f32 %v4832_v9, %v4346_v24  ;;  %v4349_v19 = vadd.f32 %v9331_v57, %v13016_v44  ;;  %9588 = vmatprep.mubr.msk.f32.mxu1 %vm742_vm2, %v5156_v45  ;;  %9692 = vmatprep.mubr.msk.f32.mxu0 %vm742_vm2, %v5865_v30  ;;  %v5158_v9 = vld [vmem:[#allocation2 + $0x4e0] sm:$0xff] }
 0x2d0   :  { %v4133_v22 = vpop.f32.mrf.mxu1  ;;  %v4842_v62 = vpop.f32.mrf.mxu0  ;;  %v5867_v57 = vld [vmem:[#allocation2 + $0x4e1] sm:$0xff] }
 0x2d1   :  { %v12115_v17 = vadd.f32 %v9435_v40, %v4349_v19  ;;  %v4348_v46 = vadd.f32 %v4133_v22, %v11776_v38  ;;  %v5159_v40 = vld [vmem:[#allocation2 + $0x4f0] sm:$0xff] }
 0x2d2   :  { %v9334_v12 = vpop.f32.mrf.mxu1  ;;  %v9438_v37 = vpop.f32.mrf.mxu0  ;;  %9589 = vmatmul.mubr.msk.f32.gmra.mxu1 %vm742_vm2, %v5157_v21  ;;  %9693 = vmatmul.mubr.msk.f32.gmra.mxu0 %vm742_vm2, %v5866_v14  ;;  %v5868_v38 = vld [vmem:[#allocation2 + $0x4f1] sm:$0xff] }
 0x2d3   :  { %v12120_v24 = vadd.f32 %v4842_v62, %v4348_v46  ;;  %v4351_v45 = vadd.f32 %v9334_v12, %v11782_v18  ;;  %9591 = vmatprep.mubr.msk.f32.mxu1 %vm742_vm2, %v5158_v9  ;;  %9695 = vmatprep.mubr.msk.f32.mxu0 %vm742_vm2, %v5867_v57  ;;  %v6514_v62 = vld [vmem:[#allocation2 + $0x22] sm:$0xff] }
 0x2d4   :  { %v4143_v30 = vpop.f32.mrf.mxu1  ;;  %v4852_v44 = vpop.f32.mrf.mxu0 }
 0x2d5   :  { %v12125_v19 = vadd.f32 %v9438_v37, %v4351_v45  ;;  %v4350_v22 = vadd.f32 %v4143_v30, %v11787_v55  ;;  %v6515_v55 = vld [vmem:[#allocation2 + $0x32] sm:$0xff] }
 0x2d6   :  { %v9337_v21 = vpop.f32.mrf.mxu1  ;;  %v9441_v14 = vpop.f32.mrf.mxu0  ;;  %9592 = vmatmul.mubr.msk.f32.gmra.mxu1 %vm742_vm2, %v5159_v40  ;;  %9696 = vmatmul.mubr.msk.f32.gmra.mxu0 %vm742_vm2, %v5868_v38  ;;  %v6516_v40 = vld [vmem:[#allocation2 + $0x42] sm:$0xff] }
 0x2d7   :  { %13017 = vst [vmem:[#allocation28_spill] sm:$0xff] %v12125_v19  ;;  %v12130_v18 = vadd.f32 %v4852_v44, %v4350_v22  ;;  %v4353_v12 = vadd.f32 %v9337_v21, %v11793_v8  ;;  %9706 = vmatprep.mubr.msk.f32.mxu1 %vm742_vm2, %v6514_v62 }
 0x2d8   :  { %v4153_v46 = vpop.f32.mrf.mxu1  ;;  %v4862_v9 = vpop.f32.mrf.mxu0 }
 0x2d9   :  { %v12134_v57 = vadd.f32 %v9441_v14, %v4353_v12  ;;  %v4352_v37 = vadd.f32 %v4153_v46, %v11802_v49  ;;  %v6517_v14 = vld [vmem:[#allocation2 + $0x52] sm:$0xff]  ;;  %v6518_v12 = vld [vmem:[#allocation2 + $0x62] sm:$0xff] }
 0x2da   :  { %v9340_v45 = vpop.f32.mrf.mxu1  ;;  %v9444_v30 = vpop.f32.mrf.mxu0  ;;  %9707 = vmatmul.mubr.msk.f32.vlgmr.msra.gmra.mxu1 %vm742_vm2, %v6515_v55 }
 0x2db   :  { %v12138_v19 = vadd.f32 %v4862_v9, %v4352_v37  ;;  %v4355_v38 = vadd.f32 %v9340_v45, %v11809_v59  ;;  %9709 = vmatprep.mubr.msk.f32.mxu1 %vm742_vm2, %v6516_v40 }
 0x2dc   :  { %v4163_v8 = vpop.f32.mrf.mxu1  ;;  %v4872_v44 = vpop.f32.mrf.mxu0 }
 0x2dd   :  { %v12142_v22 = vadd.f32 %v9444_v30, %v4355_v38  ;;  %v4354_v21 = vadd.f32 %v4163_v8, %v11818_v41  ;;  %v6519_v30 = vld [vmem:[#allocation2 + $0x72] sm:$0xff]  ;;  %v6520_v38 = vld [vmem:[#allocation2 + $0x82] sm:$0xff] }
 0x2de   :  { %v9343_v49 = vpop.f32.mrf.mxu1  ;;  %v9447_v62 = vpop.f32.mrf.mxu0  ;;  %9710 = vmatmul.mubr.msk.f32.gmra.mxu1 %vm742_vm2, %v6517_v14 }
 0x2df   :  { %v12146_v46 = vadd.f32 %v4872_v44, %v4354_v21  ;;  %v4357_v9 = vadd.f32 %v9343_v49, %v11824_v1  ;;  %9712 = vmatprep.mubr.msk.f32.mxu1 %vm742_vm2, %v6518_v12  ;;  %v6521_v1 = vld [vmem:[#allocation2 + $0x92] sm:$0xff] }
 0x2e0   :  { %v4173_v59 = vpop.f32.mrf.mxu1  ;;  %v4882_v37 = vpop.f32.mrf.mxu0 }
 0x2e1   :  { %v12150_v55 = vadd.f32 %v9447_v62, %v4357_v9  ;;  %v4356_v45 = vadd.f32 %v4173_v59, %v11833_v25  ;;  %v6522_v9 = vld [vmem:[#allocation2 + $0xc2] sm:$0xff] }
 0x2e2   :  { %v9346_v41 = vpop.f32.mrf.mxu1  ;;  %v9450_v40 = vpop.f32.mrf.mxu0  ;;  %9713 = vmatmul.mubr.msk.f32.gmra.mxu1 %vm742_vm2, %v6519_v30 }
 0x2e3   :  { %v12154_v8 = vadd.f32 %v4882_v37, %v4356_v45  ;;  %v4359_v44 = vadd.f32 %v9346_v41, %v11839_v58  ;;  %9715 = vmatprep.mubr.msk.f32.mxu1 %vm742_vm2, %v6520_v38 }
 0x2e4   :  { %v4183_v21 = vpop.f32.mrf.mxu1  ;;  %v4892_v14 = vpop.f32.mrf.mxu0 }
 0x2e5   :  { %v12158_v49 = vadd.f32 %v9450_v40, %v4359_v44  ;;  %v4358_v62 = vadd.f32 %v4183_v21, %v11844_v35  ;;  %v6523_v40 = vld [vmem:[#allocation2 + $0xd2] sm:$0xff]  ;;  %v6524_v44 = vld [vmem:[#allocation2 + $0xe2] sm:$0xff] }
 0x2e6   :  { %v9349_v25 = vpop.f32.mrf.mxu1  ;;  %v9453_v12 = vpop.f32.mrf.mxu0  ;;  %9716 = vmatmul.mubr.msk.f32.gmra.mxu1 %vm742_vm2, %v6521_v1 }
 0x2e7   :  { %v12162_v59 = vadd.f32 %v4892_v14, %v4358_v62  ;;  %v4361_v37 = vadd.f32 %v9349_v25, %v11850_v4  ;;  %9718 = vmatprep.mubr.msk.f32.mxu1 %vm742_vm2, %v6522_v9 }
 0x2e8   :  { %v4193_v58 = vpop.f32.mrf.mxu1  ;;  %v4902_v45 = vpop.f32.mrf.mxu0 }
 0x2e9   :  { %v12166_v30 = vadd.f32 %v9453_v12, %v4361_v37  ;;  %v4360_v41 = vadd.f32 %v4193_v58, %v11856_v27  ;;  %v6525_v12 = vld [vmem:[#allocation2 + $0xf2] sm:$0xff]  ;;  %v6526_v37 = vld [vmem:[#allocation2 + $0x102] sm:$0xff] }
 0x2ea   :  { %v9352_v38 = vpop.f32.mrf.mxu1  ;;  %v9456_v35 = vpop.f32.mrf.mxu0  ;;  %9719 = vmatmul.mubr.msk.f32.gmra.mxu1 %vm742_vm2, %v6523_v40 }
 0x2eb   :  { %v12170_v1 = vadd.f32 %v4902_v45, %v4360_v41  ;;  %v4363_v21 = vadd.f32 %v9352_v38, %v11862_v47  ;;  %9721 = vmatprep.mubr.msk.f32.mxu1 %vm742_vm2, %v6524_v44 }
 0x2ec   :  { %v4203_v4 = vpop.f32.mrf.mxu1  ;;  %v4912_v14 = vpop.f32.mrf.mxu0 }
 0x2ed   :  { %v12174_v62 = vadd.f32 %v9456_v35, %v4363_v21  ;;  %v4362_v25 = vadd.f32 %v4203_v4, %v11867_v5  ;;  %v6527_v35 = vld [vmem:[#allocation2 + $0x112] sm:$0xff]  ;;  %v6528_v21 = vld [vmem:[#allocation2 + $0x122] sm:$0xff] }
 0x2ee   :  { %v9355_v27 = vpop.f32.mrf.mxu1  ;;  %v9459_v9 = vpop.f32.mrf.mxu0  ;;  %9722 = vmatmul.mubr.msk.f32.gmra.mxu1 %vm742_vm2, %v6525_v12 }
 0x2ef   :  { %v12178_v58 = vadd.f32 %v4912_v14, %v4362_v25  ;;  %v4365_v45 = vadd.f32 %v9355_v27, %v11873_v39  ;;  %9724 = vmatprep.mubr.msk.f32.mxu1 %vm742_vm2, %v6526_v37  ;;  %v6529_v39 = vld [vmem:[#allocation2 + $0x132] sm:$0xff] }
 0x2f0   :  { %v4213_v47 = vpop.f32.mrf.mxu1  ;;  %v4922_v41 = vpop.f32.mrf.mxu0 }
 0x2f1   :  { %v12182_v40 = vadd.f32 %v9459_v9, %v4365_v45  ;;  %v4364_v38 = vadd.f32 %v4213_v47, %v11878_v43  ;;  %v6530_v45 = vld [vmem:[#allocation2 + $0x162] sm:$0xff] }
 0x2f2   :  { %v9358_v5 = vpop.f32.mrf.mxu1  ;;  %v9462_v44 = vpop.f32.mrf.mxu0  ;;  %9725 = vmatmul.mubr.msk.f32.gmra.mxu1 %vm742_vm2, %v6527_v35 }
 0x2f3   :  { %v12186_v4 = vadd.f32 %v4922_v41, %v4364_v38  ;;  %v4367_v14 = vadd.f32 %v9358_v5, %v11884_v52  ;;  %9727 = vmatprep.mubr.msk.f32.mxu1 %vm742_vm2, %v6528_v21  ;;  %v13018_v41 = vld [vmem:[#allocation14_spill] sm:$0xff]  ;;  %v6531_v21 = vld [vmem:[#allocation2 + $0x172] sm:$0xff] }
 0x2f4   :  { %v4223_v25 = vpop.f32.mrf.mxu1  ;;  %v4932_v12 = vpop.f32.mrf.mxu0 }
 0x2f5   :  { %v12190_v27 = vadd.f32 %v9462_v44, %v4367_v14  ;;  %v4366_v9 = vadd.f32 %v4223_v25, %v11889_v51  ;;  %v6532_v25 = vld [vmem:[#allocation2 + $0x182] sm:$0xff] }
 0x2f6   :  { %v9361_v43 = vpop.f32.mrf.mxu1  ;;  %v9465_v37 = vpop.f32.mrf.mxu0  ;;  %9728 = vmatmul.mubr.msk.f32.gmra.mxu1 %vm742_vm2, %v6529_v39 }
 0x2f7   :  { %v12194_v47 = vadd.f32 %v4932_v12, %v4366_v9  ;;  %v4369_v38 = vadd.f32 %v9361_v43, %v13018_v41  ;;  %9730 = vmatprep.mubr.msk.f32.mxu1 %vm742_vm2, %v6530_v45  ;;  %v13020_v12 = vld [vmem:[#allocation15_spill] sm:$0xff] }
 0x2f8   :  { %v4233_v52 = vpop.f32.mrf.mxu1  ;;  %v4942_v35 = vpop.f32.mrf.mxu0 }
 0x2f9   :  { %v12198_v5 = vadd.f32 %v9465_v37, %v4369_v38  ;;  %v4368_v44 = vadd.f32 %v4233_v52, %v11900_v56  ;;  %v6533_v38 = vld [vmem:[#allocation2 + $0x192] sm:$0xff] }
 0x2fa   :  { %v9364_v14 = vpop.f32.mrf.mxu1  ;;  %v9468_v51 = vpop.f32.mrf.mxu0  ;;  %9731 = vmatmul.mubr.msk.f32.gmra.mxu1 %vm742_vm2, %v6531_v21 }
 0x2fb   :  { %13019 = vst [vmem:[#allocation30_spill] sm:$0xff] %v12198_v5  ;;  %v12202_v39 = vadd.f32 %v4942_v35, %v4368_v44  ;;  %v4371_v9 = vadd.f32 %v9364_v14, %v13020_v12  ;;  %9733 = vmatprep.mubr.msk.f32.mxu1 %vm742_vm2, %v6532_v25  ;;  %v6534_v5 = vld [vmem:[#allocation2 + $0x1a2] sm:$0xff]  ;;  %v6535_v12 = vld [vmem:[#allocation2 + $0x1b2] sm:$0xff] }
 0x2fc   :  { %v4243_v43 = vpop.f32.mrf.mxu1  ;;  %v4952_v45 = vpop.f32.mrf.mxu0 }
 0x2fd   :  { %v12206_v41 = vadd.f32 %v9468_v51, %v4371_v9  ;;  %v4370_v37 = vadd.f32 %v4243_v43, %v11910_v53  ;;  %v6536_v43 = vld [vmem:[#allocation2 + $0x1c2] sm:$0xff] }
 0x2fe   :  { %v9367_v56 = vpop.f32.mrf.mxu1  ;;  %v9471_v52 = vpop.f32.mrf.mxu0  ;;  %9734 = vmatmul.mubr.msk.f32.gmra.mxu1 %vm742_vm2, %v6533_v38 }
 0x2ff   :  { %v12210_v21 = vadd.f32 %v4952_v45, %v4370_v37  ;;  %v4373_v35 = vadd.f32 %v9367_v56, %v11915_v7  ;;  %9736 = vmatprep.mubr.msk.f32.mxu1 %vm742_vm2, %v6534_v5  ;;  %v6537_v7 = vld [vmem:[#allocation2 + $0x1d2] sm:$0xff] }
 0x300   :  { %v4253_v44 = vpop.f32.mrf.mxu1  ;;  %v4962_v14 = vpop.f32.mrf.mxu0 }
 0x301   :  { %v12214_v25 = vadd.f32 %v9471_v52, %v4373_v35  ;;  %v4372_v51 = vadd.f32 %v4253_v44, %v11920_v60  ;;  %v13024_v52 = vld [vmem:[#allocation16_spill] sm:$0xff] }
 0x302   :  { %v9370_v53 = vpop.f32.mrf.mxu1  ;;  %v9474_v9 = vpop.f32.mrf.mxu0  ;;  %9737 = vmatmul.mubr.msk.f32.gmra.mxu1 %vm742_vm2, %v6535_v12 }
 0x303   :  { %13021 = vst [vmem:[#allocation31_spill] sm:$0xff] %v12214_v25  ;;  %v12218_v38 = vadd.f32 %v4962_v14, %v4372_v51  ;;  %v4375_v45 = vadd.f32 %v9370_v53, %v11925_v16  ;;  %9739 = vmatprep.mubr.msk.f32.mxu1 %vm742_vm2, %v6536_v43  ;;  %v6538_v25 = vld [vmem:[#allocation2 + $0x202] sm:$0xff] }
 0x304   :  { %v4263_v5 = vpop.f32.mrf.mxu1  ;;  %v4972_v37 = vpop.f32.mrf.mxu0  ;;  %v13026_v14 = vld [vmem:[#allocation18_spill] sm:$0xff] }
 0x305   :  { %13022 = vst [vmem:[#allocation32_spill] sm:$0xff] %v12218_v38  ;;  %v12222_v56 = vadd.f32 %v9474_v9, %v4375_v45  ;;  %v4374_v35 = vadd.f32 %v4263_v5, %v13024_v52  ;;  %v13028_v38 = vld [vmem:[#allocation17_spill] sm:$0xff]  ;;  %v6540_v52 = vld [vmem:[#allocation2 + $0x222] sm:$0xff] }
 0x306   :  { %v9373_v60 = vpop.f32.mrf.mxu1  ;;  %v9477_v44 = vpop.f32.mrf.mxu0  ;;  %9740 = vmatmul.mubr.msk.f32.gmra.mxu1 %vm742_vm2, %v6537_v7  ;;  %v6539_v45 = vld [vmem:[#allocation2 + $0x212] sm:$0xff] }
 0x307   :  { %13023 = vst [vmem:[#allocation34_spill] sm:$0xff] %v12222_v56  ;;  %v12226_v12 = vadd.f32 %v4972_v37, %v4374_v35  ;;  %v4377_v51 = vadd.f32 %v9373_v60, %v13026_v14  ;;  %9742 = vmatprep.mubr.msk.f32.mxu1 %vm742_vm2, %v6538_v25  ;;  %v13030_v37 = vld [vmem:[#allocation19_spill] sm:$0xff] }
 0x308   :  { %v4273_v16 = vpop.f32.mrf.mxu1  ;;  %v4982_v53 = vpop.f32.mrf.mxu0 }
 0x309   :  { %13025 = vst [vmem:[#allocation33_spill] sm:$0xff] %v12226_v12  ;;  %v12230_v43 = vadd.f32 %v9477_v44, %v4377_v51  ;;  %v4376_v9 = vadd.f32 %v4273_v16, %v13028_v38  ;;  %v13032_v44 = vld [vmem:[#allocation21_spill] sm:$0xff]  ;;  %v6542_v12 = vld [vmem:[#allocation2 + $0x242] sm:$0xff] }
 0x30a   :  { %v9376_v56 = vpop.f32.mrf.mxu1  ;;  %v9480_v5 = vpop.f32.mrf.mxu0  ;;  %9743 = vmatmul.mubr.msk.f32.gmra.mxu1 %vm742_vm2, %v6539_v45 }
 0x30b   :  { %13027 = vst [vmem:[#allocation36_spill] sm:$0xff] %v12230_v43  ;;  %v12234_v7 = vadd.f32 %v4982_v53, %v4376_v9  ;;  %v4379_v35 = vadd.f32 %v9376_v56, %v13030_v37  ;;  %9745 = vmatprep.mubr.msk.f32.mxu1 %vm742_vm2, %v6540_v52  ;;  %v6541_v43 = vld [vmem:[#allocation2 + $0x232] sm:$0xff] }
 0x30c   :  { %v4283_v60 = vpop.f32.mrf.mxu1  ;;  %v4992_v25 = vpop.f32.mrf.mxu0  ;;  %v13034_v53 = vld [vmem:[#allocation20_spill] sm:$0xff] }
 0x30d   :  { %13029 = vst [vmem:[#allocation35_spill] sm:$0xff] %v12234_v7  ;;  %v12238_v14 = vadd.f32 %v9480_v5, %v4379_v35  ;;  %v4378_v51 = vadd.f32 %v4283_v60, %v13032_v44  ;;  %v13035_v5 = vld [vmem:[#allocation22_spill] sm:$0xff] }
 0x30e   :  { %v9379_v38 = vpop.f32.mrf.mxu1  ;;  %v9483_v16 = vpop.f32.mrf.mxu0  ;;  %9746 = vmatmul.mubr.msk.f32.gmra.mxu1 %vm742_vm2, %v6541_v43  ;;  %v6544_v7 = vld [vmem:[#allocation2 + $0x262] sm:$0xff] }
 0x30f   :  { %13031 = vst [vmem:[#allocation37_spill] sm:$0xff] %v12238_v14  ;;  %v12242_v45 = vadd.f32 %v4992_v25, %v4378_v51  ;;  %v4381_v9 = vadd.f32 %v9379_v38, %v13034_v53  ;;  %9748 = vmatprep.mubr.msk.f32.mxu1 %vm742_vm2, %v6542_v12  ;;  %v6543_v14 = vld [vmem:[#allocation2 + $0x252] sm:$0xff]  ;;  %v13036_v25 = vld [vmem:[#allocation23_spill] sm:$0xff] }
 0x310   :  { %v4293_v56 = vpop.f32.mrf.mxu1  ;;  %v5002_v52 = vpop.f32.mrf.mxu0  ;;  %v6545_v38 = vld [vmem:[#allocation2 + $0x272] sm:$0xff] }
 0x311   :  { %13033 = vst [vmem:[#allocation38_spill] sm:$0xff] %v12242_v45  ;;  %v12246_v37 = vadd.f32 %v9483_v16, %v4381_v9  ;;  %v4380_v35 = vadd.f32 %v4293_v56, %v13035_v5  ;;  %v6546_v5 = vld [vmem:[#allocation2 + $0x2a2] sm:$0xff] }
 0x312   :  { %v9382_v60 = vpop.f32.mrf.mxu1  ;;  %v9486_v44 = vpop.f32.mrf.mxu0  ;;  %9749 = vmatmul.mubr.msk.f32.gmra.mxu1 %vm742_vm2, %v6543_v14 }
 0x313   :  { %v12250_v43 = vadd.f32 %v5002_v52, %v4380_v35  ;;  %v4383_v51 = vadd.f32 %v9382_v60, %v13036_v25  ;;  %9751 = vmatprep.mubr.msk.f32.mxu1 %vm742_vm2, %v6544_v7  ;;  %v13038_v52 = vld [vmem:[#allocation24_spill] sm:$0xff] }
 0x314   :  { %v4303_v12 = vpop.f32.mrf.mxu1  ;;  %v5012_v53 = vpop.f32.mrf.mxu0 }
 0x315   :  { %v12254_v45 = vadd.f32 %v9486_v44, %v4383_v51  ;;  %v4382_v16 = vadd.f32 %v4303_v12, %v11970_v54  ;;  %v6547_v51 = vld [vmem:[#allocation2 + $0x2b2] sm:$0xff] }
 0x316   :  { %v9385_v9 = vpop.f32.mrf.mxu1  ;;  %v9489_v56 = vpop.f32.mrf.mxu0  ;;  %9752 = vmatmul.mubr.msk.f32.gmra.mxu1 %vm742_vm2, %v6545_v38  ;;  %v6548_v38 = vld [vmem:[#allocation2 + $0x2c2] sm:$0xff] }
 0x317   :  { %13037 = vst [vmem:[#allocation40_spill] sm:$0xff] %v12254_v45  ;;  %v12258_v14 = vadd.f32 %v5012_v53, %v4382_v16  ;;  %v4385_v35 = vadd.f32 %v9385_v9, %v13038_v52  ;;  %9754 = vmatprep.mubr.msk.f32.mxu1 %vm742_vm2, %v6546_v5  ;;  %v6550_v52 = vld [vmem:[#allocation2 + $0x2e2] sm:$0xff] }
 0x318   :  { %v4313_v60 = vpop.f32.mrf.mxu1  ;;  %v5022_v7 = vpop.f32.mrf.mxu0 }
 0x319   :  { %v12262_v25 = vadd.f32 %v9489_v56, %v4385_v35  ;;  %v4384_v44 = vadd.f32 %v4313_v60, %v11980_v13  ;;  %v6549_v56 = vld [vmem:[#allocation2 + $0x2d2] sm:$0xff] }
 0x31a   :  { %v9500_v45 = vpop.f32.mrf.mxu1  ;;  %v12265_v54 = vpop.f32.mrf.mxu0  ;;  %9755 = vmatmul.mubr.msk.f32.gmra.mxu1 %vm742_vm2, %v6547_v51  ;;  %v6551_v60 = vld [vmem:[#allocation2 + $0x2f2] sm:$0xff] }
 0x31b   :  { %v12268_v12 = vadd.f32 %v5022_v7, %v4384_v44  ;;  %v12271_v53 = vadd.f32 %v9500_v45, %v11985_v61  ;;  %9757 = vmatprep.mubr.msk.f32.mxu1 %vm742_vm2, %v6548_v38  ;;  %v6552_v44 = vld [vmem:[#allocation2 + $0x302] sm:$0xff] }
 0x31c   :  { %v5422_v16 = vpop.f32.mrf.mxu1  ;;  %v12277_v13 = vpop.f32.mrf.mxu0 }
 0x31d   :  { %v12275_v9 = vadd.f32 %v5422_v16, %v11990_v34 }
 0x31e   :  { %v9503_v5 = vpop.f32.mrf.mxu1  ;;  %9758 = vmatmul.mubr.msk.f32.gmra.mxu1 %vm742_vm2, %v6549_v56  ;;  %v12287_v7 = vpop.f32.mrf.mxu0 }
 0x31f   :  { %v12281_v35 = vadd.f32 %v9503_v5, %v11995_v0  ;;  %9760 = vmatprep.mubr.msk.f32.mxu1 %vm742_vm2, %v6550_v52  ;;  %v6553_v0 = vld [vmem:[#allocation2 + $0x312] sm:$0xff]  ;;  %v6554_v5 = vld [vmem:[#allocation2 + $0x342] sm:$0xff] }
 0x320   :  { %v5432_v61 = vpop.f32.mrf.mxu1  ;;  %v12297_v56 = vpop.f32.mrf.mxu0  ;;  %v13040_v52 = vld [vmem:[#allocation26_spill] sm:$0xff] }
 0x321   :  { %v12285_v45 = vadd.f32 %v5432_v61, %v12000_v63 }
 0x322   :  { %v9506_v34 = vpop.f32.mrf.mxu1  ;;  %9761 = vmatmul.mubr.msk.f32.gmra.mxu1 %vm742_vm2, %v6551_v60 }
 0x323   :  { %v12291_v51 = vadd.f32 %v9506_v34, %v12005_v23  ;;  %9763 = vmatprep.mubr.msk.f32.mxu1 %vm742_vm2, %v6552_v44  ;;  %v6555_v34 = vld [vmem:[#allocation2 + $0x352] sm:$0xff]  ;;  %v12307_v44 = vpop.f32.mrf.mxu0 }
 0x324   :  { %v5442_v38 = vpop.f32.mrf.mxu1 }
 0x325   :  { %v12295_v16 = vadd.f32 %v5442_v38, %v12010_v33  ;;  %v6556_v38 = vld [vmem:[#allocation2 + $0x362] sm:$0xff] }
 0x326   :  { %v9509_v63 = vpop.f32.mrf.mxu1  ;;  %9764 = vmatmul.mubr.msk.f32.gmra.mxu1 %vm742_vm2, %v6553_v0 }
 0x327   :  { %13039 = vst [vmem:[#allocation39_spill] sm:$0xff] %v12295_v16  ;;  %v12301_v61 = vadd.f32 %v9509_v63, %v13040_v52  ;;  %9766 = vmatprep.mubr.msk.f32.mxu1 %vm742_vm2, %v6554_v5  ;;  %v6557_v5 = vld [vmem:[#allocation2 + $0x372] sm:$0xff]  ;;  %v12317_v52 = vpop.f32.mrf.mxu0 }
 0x328   :  { %v5452_v23 = vpop.f32.mrf.mxu1 }
 0x329   :  { %v12305_v60 = vadd.f32 %v5452_v23, %v12020_v42  ;;  %v6558_v23 = vld [vmem:[#allocation2 + $0x382] sm:$0xff] }
 0x32a   :  { %v9512_v33 = vpop.f32.mrf.mxu1  ;;  %9767 = vmatmul.mubr.msk.f32.gmra.mxu1 %vm742_vm2, %v6555_v34 }
 0x32b   :  { %13041 = vst [vmem:[#allocation41_spill] sm:$0xff] %v12305_v60  ;;  %v12311_v16 = vadd.f32 %v9512_v33, %v12025_v48  ;;  %9769 = vmatprep.mubr.msk.f32.mxu1 %vm742_vm2, %v6556_v38  ;;  %v6559_v33 = vld [vmem:[#allocation2 + $0x392] sm:$0xff]  ;;  %v12327_v38 = vpop.f32.mrf.mxu0 }
 0x32c   :  { %v5462_v0 = vpop.f32.mrf.mxu1 }
 0x32d   :  { %v12315_v63 = vadd.f32 %v5462_v0, %v12030_v3  ;;  %v6560_v0 = vld [vmem:[#allocation2 + $0x3a2] sm:$0xff] }
 0x32e   :  { %v9515_v42 = vpop.f32.mrf.mxu1  ;;  %9770 = vmatmul.mubr.msk.f32.gmra.mxu1 %vm742_vm2, %v6557_v5 }
 0x32f   :  { %13042 = vst [vmem:[#allocation42_spill] sm:$0xff] %v12315_v63  ;;  %v12321_v60 = vadd.f32 %v9515_v42, %v12035_v2  ;;  %9772 = vmatprep.mubr.msk.f32.mxu1 %vm742_vm2, %v6558_v23  ;;  %v6561_v2 = vld [vmem:[#allocation2 + $0x3b2] sm:$0xff]  ;;  %v12337_v23 = vpop.f32.mrf.mxu0 }
 0x330   :  { %v5472_v48 = vpop.f32.mrf.mxu1 }
 0x331   :  { %13043 = vst [vmem:[#allocation44_spill] sm:$0xff] %v12321_v60  ;;  %v12325_v34 = vadd.f32 %v5472_v48, %v12040_v10  ;;  %v6562_v48 = vld [vmem:[#allocation2 + $0x3e2] sm:$0xff] }
 0x332   :  { %v9518_v3 = vpop.f32.mrf.mxu1  ;;  %9773 = vmatmul.mubr.msk.f32.gmra.mxu1 %vm742_vm2, %v6559_v33 }
 0x333   :  { %13044 = vst [vmem:[#allocation43_spill] sm:$0xff] %v12325_v34  ;;  %v12331_v63 = vadd.f32 %v9518_v3, %v12045_v26  ;;  %9775 = vmatprep.mubr.msk.f32.mxu1 %vm742_vm2, %v6560_v0  ;;  %v13046_v34 = vld [vmem:[#allocation25_spill] sm:$0xff]  ;;  %v12347_v0 = vpop.f32.mrf.mxu0 }
 0x334   :  { %v5482_v5 = vpop.f32.mrf.mxu1  ;;  %v6563_v3 = vld [vmem:[#allocation2 + $0x3f2] sm:$0xff] }
 0x335   :  { %v12335_v42 = vadd.f32 %v5482_v5, %v12050_v28  ;;  %v6564_v5 = vld [vmem:[#allocation2 + $0x402] sm:$0xff] }
 0x336   :  { %v9521_v10 = vpop.f32.mrf.mxu1  ;;  %9776 = vmatmul.mubr.msk.f32.gmra.mxu1 %vm742_vm2, %v6561_v2 }
 0x337   :  { %13045 = vst [vmem:[#allocation45_spill] sm:$0xff] %v12335_v42  ;;  %v12341_v60 = vadd.f32 %v9521_v10, %v13046_v34  ;;  %9778 = vmatprep.mubr.msk.f32.mxu1 %vm742_vm2, %v6562_v48  ;;  %v6565_v10 = vld [vmem:[#allocation2 + $0x412] sm:$0xff]  ;;  %v12357_v48 = vpop.f32.mrf.mxu0 }
 0x338   :  { %v5492_v26 = vpop.f32.mrf.mxu1 }
 0x339   :  { %v12345_v33 = vadd.f32 %v5492_v26, %v12060_v36  ;;  %v6566_v26 = vld [vmem:[#allocation2 + $0x422] sm:$0xff] }
 0x33a   :  { %v9524_v28 = vpop.f32.mrf.mxu1  ;;  %9779 = vmatmul.mubr.msk.f32.gmra.mxu1 %vm742_vm2, %v6563_v3 }
 0x33b   :  { %13047 = vst [vmem:[#allocation46_spill] sm:$0xff] %v12345_v33  ;;  %v12351_v42 = vadd.f32 %v9524_v28, %v12065_v15  ;;  %9781 = vmatprep.mubr.msk.f32.mxu1 %vm742_vm2, %v6564_v5  ;;  %v6567_v28 = vld [vmem:[#allocation2 + $0x432] sm:$0xff]  ;;  %v12367_v5 = vpop.f32.mrf.mxu0 }
 0x33c   :  { %v5502_v34 = vpop.f32.mrf.mxu1 }
 0x33d   :  { %v12355_v2 = vadd.f32 %v5502_v34, %v12070_v11  ;;  %v6568_v34 = vld [vmem:[#allocation2 + $0x442] sm:$0xff] }
 0x33e   :  { %v9527_v36 = vpop.f32.mrf.mxu1  ;;  %9782 = vmatmul.mubr.msk.f32.gmra.mxu1 %vm742_vm2, %v6565_v10 }
 0x33f   :  { %13048 = vst [vmem:[#allocation47_spill] sm:$0xff] %v12355_v2  ;;  %v12361_v33 = vadd.f32 %v9527_v36, %v12075_v20  ;;  %9784 = vmatprep.mubr.msk.f32.mxu1 %vm742_vm2, %v6566_v26  ;;  %v6569_v20 = vld [vmem:[#allocation2 + $0x452] sm:$0xff]  ;;  %v12377_v26 = vpop.f32.mrf.mxu0 }
 0x340   :  { %v5512_v15 = vpop.f32.mrf.mxu1 }
 0x341   :  { %13049 = vst [vmem:[#allocation48_spill] sm:$0xff] %v12361_v33  ;;  %v12365_v3 = vadd.f32 %v5512_v15, %v12080_v6  ;;  %v6570_v15 = vld [vmem:[#allocation2 + $0x482] sm:$0xff] }
 0x342   :  { %v9530_v11 = vpop.f32.mrf.mxu1  ;;  %9785 = vmatmul.mubr.msk.f32.gmra.mxu1 %vm742_vm2, %v6567_v28 }
 0x343   :  { %13050 = vst [vmem:[#allocation49_spill] sm:$0xff] %v12365_v3  ;;  %v12371_v2 = vadd.f32 %v9530_v11, %v12085_v29  ;;  %9787 = vmatprep.mubr.msk.f32.mxu1 %vm742_vm2, %v6568_v34  ;;  %v13053_v3 = vld [vmem:[#allocation27_spill] sm:$0xff]  ;;  %v6571_v11 = vld [vmem:[#allocation2 + $0x492] sm:$0xff]  ;;  %v12387_v34 = vpop.f32.mrf.mxu0 }
 0x344   :  { %v5522_v10 = vpop.f32.mrf.mxu1 }
 0x345   :  { %13051 = vst [vmem:[#allocation50_spill] sm:$0xff] %v12371_v2  ;;  %v12375_v36 = vadd.f32 %v5522_v10, %v12090_v31  ;;  %v6572_v10 = vld [vmem:[#allocation2 + $0x4a2] sm:$0xff] }
 0x346   :  { %v9533_v6 = vpop.f32.mrf.mxu1  ;;  %9788 = vmatmul.mubr.msk.f32.gmra.mxu1 %vm742_vm2, %v6569_v20 }
 0x347   :  { %13052 = vst [vmem:[#allocation52_spill] sm:$0xff] %v12375_v36  ;;  %v12381_v33 = vadd.f32 %v9533_v6, %v13053_v3  ;;  %9790 = vmatprep.mubr.msk.f32.mxu1 %vm742_vm2, %v6570_v15  ;;  %v13055_v36 = vld [vmem:[#allocation29_spill] sm:$0xff]  ;;  %v12397_v15 = vpop.f32.mrf.mxu0 }
 0x348   :  { %v5532_v29 = vpop.f32.mrf.mxu1  ;;  %v6573_v6 = vld [vmem:[#allocation2 + $0x4b2] sm:$0xff] }
 0x349   :  { %v12385_v28 = vadd.f32 %v5532_v29, %v12100_v50  ;;  %v6574_v29 = vld [vmem:[#allocation2 + $0x4c2] sm:$0xff] }
 0x34a   :  { %v9536_v31 = vpop.f32.mrf.mxu1  ;;  %9791 = vmatmul.mubr.msk.f32.gmra.mxu1 %vm742_vm2, %v6571_v11 }
 0x34b   :  { %13054 = vst [vmem:[#allocation51_spill] sm:$0xff] %v12385_v28  ;;  %v12391_v2 = vadd.f32 %v9536_v31, %v13055_v36  ;;  %9793 = vmatprep.mubr.msk.f32.mxu1 %vm742_vm2, %v6572_v10  ;;  %v6575_v31 = vld [vmem:[#allocation2 + $0x4d2] sm:$0xff]  ;;  %v12407_v10 = vpop.f32.mrf.mxu0 }
 0x34c   :  { %v5542_v3 = vpop.f32.mrf.mxu1 }
 0x34d   :  { %13056 = vst [vmem:[#allocation53_spill] sm:$0xff] %v12391_v2  ;;  %v12395_v20 = vadd.f32 %v5542_v3, %v12110_v32  ;;  %v6576_v3 = vld [vmem:[#allocation2 + $0x4e2] sm:$0xff] }
 0x34e   :  { %v9539_v50 = vpop.f32.mrf.mxu1  ;;  %9794 = vmatmul.mubr.msk.f32.gmra.mxu1 %vm742_vm2, %v6573_v6 }
 0x34f   :  { %13057 = vst [vmem:[#allocation54_spill] sm:$0xff] %v12395_v20  ;;  %v12401_v28 = vadd.f32 %v9539_v50, %v12115_v17  ;;  %9796 = vmatprep.mubr.msk.f32.mxu1 %vm742_vm2, %v6574_v29  ;;  %v13059_v20 = vld [vmem:[#allocation28_spill] sm:$0xff]  ;;  %v12417_v29 = vpop.f32.mrf.mxu0 }
 0x350   :  { %v5552_v36 = vpop.f32.mrf.mxu1  ;;  %v6577_v17 = vld [vmem:[#allocation2 + $0x4f2] sm:$0xff] }
 0x351   :  { %v12405_v11 = vadd.f32 %v5552_v36, %v12120_v24 }
 0x352   :  { %v9542_v32 = vpop.f32.mrf.mxu1  ;;  %9797 = vmatmul.mubr.msk.f32.gmra.mxu1 %vm742_vm2, %v6575_v31 }
 0x353   :  { %13058 = vst [vmem:[#allocation55_spill] sm:$0xff] %v12405_v11  ;;  %v12411_v2 = vadd.f32 %v9542_v32, %v13059_v20  ;;  %9799 = vmatprep.mubr.msk.f32.mxu1 %vm742_vm2, %v6576_v3  ;;  %v12426_v20 = vpop.f32.mrf.mxu0 }
 0x354   :  { %v5562_v6 = vpop.f32.mrf.mxu1 }
 0x355   :  { %v12415_v50 = vadd.f32 %v5562_v6, %v12130_v18 }
 0x356   :  { %v9545_v24 = vpop.f32.mrf.mxu1  ;;  %9800 = vmatmul.mubr.msk.f32.gmra.mxu1 %vm742_vm2, %v6577_v17 }
 0x357   :  { %13060 = vst [vmem:[#allocation56_spill] sm:$0xff] %v12415_v50  ;;  %v12421_v36 = vadd.f32 %v9545_v24, %v12134_v57  ;;  %v12434_v50 = vpop.f32.mrf.mxu0 }
 0x358   :  { %v5572_v31 = vpop.f32.mrf.mxu1 }
 0x359   :  { %v12424_v11 = vadd.f32 %v5572_v31, %v12138_v19  ;;  %v12442_v31 = vpop.f32.mrf.mxu0 }
 0x35a   :  { %v9548_v32 = vpop.f32.mrf.mxu1 }
 0x35b   :  { %13061 = vst [vmem:[#allocation57_spill] sm:$0xff] %v12424_v11  ;;  %v12429_v3 = vadd.f32 %v9548_v32, %v12142_v22 }
 0x35c   :  { %v5582_v18 = vpop.f32.mrf.mxu1 }
 0x35d   :  { %v12432_v6 = vadd.f32 %v5582_v18, %v12146_v46  ;;  %v12450_v18 = vpop.f32.mrf.mxu0 }
 0x35e   :  { %v9551_v17 = vpop.f32.mrf.mxu1 }
 0x35f   :  { %13062 = vst [vmem:[#allocation58_spill] sm:$0xff] %v12432_v6  ;;  %v12437_v57 = vadd.f32 %v9551_v17, %v12150_v55 }
 0x360   :  { %v5592_v24 = vpop.f32.mrf.mxu1 }
 0x361   :  { %v12440_v19 = vadd.f32 %v5592_v24, %v12154_v8  ;;  %v12458_v24 = vpop.f32.mrf.mxu0 }
 0x362   :  { %v9554_v11 = vpop.f32.mrf.mxu1 }
 0x363   :  { %13063 = vst [vmem:[#allocation59_spill] sm:$0xff] %v12440_v19  ;;  %v12445_v22 = vadd.f32 %v9554_v11, %v12158_v49 }
 0x364   :  { %v5602_v32 = vpop.f32.mrf.mxu1 }
 0x365   :  { %13064 = vst [vmem:[#allocation60_spill] sm:$0xff] %v12445_v22  ;;  %v12448_v46 = vadd.f32 %v5602_v32, %v12162_v59  ;;  %v12466_v32 = vpop.f32.mrf.mxu0  ;;  %v13091_v22 = vld [vmem:[#allocation37_spill] sm:$0xff] }
 0x366   :  { %v9557_v6 = vpop.f32.mrf.mxu1 }
 0x367   :  { %13065 = vst [vmem:[#allocation6_spill] sm:$0xff] %v12448_v46  ;;  %v12453_v55 = vadd.f32 %v9557_v6, %v12166_v30 }
 0x368   :  { %v5612_v17 = vpop.f32.mrf.mxu1 }
 0x369   :  { %13066 = vst [vmem:[#allocation7_spill] sm:$0xff] %v12453_v55  ;;  %v12456_v8 = vadd.f32 %v5612_v17, %v12170_v1  ;;  %v12474_v17 = vpop.f32.mrf.mxu0  ;;  %v13087_v55 = vld [vmem:[#allocation36_spill] sm:$0xff] }
 0x36a   :  { %v9560_v19 = vpop.f32.mrf.mxu1 }
 0x36b   :  { %13067 = vst [vmem:[#allocation61_spill] sm:$0xff] %v12456_v8  ;;  %v12461_v49 = vadd.f32 %v9560_v19, %v12174_v62 }
 0x36c   :  { %v5622_v11 = vpop.f32.mrf.mxu1 }
 0x36d   :  { %13068 = vst [vmem:[#allocation8_spill] sm:$0xff] %v12461_v49  ;;  %v12464_v59 = vadd.f32 %v5622_v11, %v12178_v58  ;;  %v12482_v11 = vpop.f32.mrf.mxu0  ;;  %v13074_v49 = vld [vmem:[#allocation30_spill] sm:$0xff] }
 0x36e   :  { %v9563_v46 = vpop.f32.mrf.mxu1 }
 0x36f   :  { %13069 = vst [vmem:[#allocation10_spill] sm:$0xff] %v12464_v59  ;;  %v12469_v30 = vadd.f32 %v9563_v46, %v12182_v40 }
 0x370   :  { %v5632_v6 = vpop.f32.mrf.mxu1 }
 0x371   :  { %13070 = vst [vmem:[#allocation9_spill] sm:$0xff] %v12469_v30  ;;  %v12472_v1 = vadd.f32 %v5632_v6, %v12186_v4  ;;  %v12490_v6 = vpop.f32.mrf.mxu0  ;;  %v13083_v30 = vld [vmem:[#allocation34_spill] sm:$0xff] }
 0x372   :  { %v9566_v8 = vpop.f32.mrf.mxu1 }
 0x373   :  { %13071 = vst [vmem:[#allocation11_spill] sm:$0xff] %v12472_v1  ;;  %v12477_v62 = vadd.f32 %v9566_v8, %v12190_v27 }
 0x374   :  { %v5642_v19 = vpop.f32.mrf.mxu1 }
 0x375   :  { %13072 = vst [vmem:[#allocation13_spill] sm:$0xff] %v12477_v62  ;;  %v12480_v58 = vadd.f32 %v5642_v19, %v12194_v47  ;;  %v12498_v19 = vpop.f32.mrf.mxu0  ;;  %v13079_v62 = vld [vmem:[#allocation31_spill] sm:$0xff] }
 0x376   :  { %v9569_v59 = vpop.f32.mrf.mxu1 }
 0x377   :  { %13073 = vst [vmem:[#allocation12_spill] sm:$0xff] %v12480_v58  ;;  %v12485_v40 = vadd.f32 %v9569_v59, %v13074_v49 }
 0x378   :  { %v5652_v46 = vpop.f32.mrf.mxu1 }
 0x379   :  { %13075 = vst [vmem:[#allocation14_spill] sm:$0xff] %v12485_v40  ;;  %v12488_v4 = vadd.f32 %v5652_v46, %v12202_v39  ;;  %v13081_v40 = vld [vmem:[#allocation32_spill] sm:$0xff]  ;;  %v12506_v46 = vpop.f32.mrf.mxu0 }
 0x37a   :  { %v9572_v1 = vpop.f32.mrf.mxu1 }
 0x37b   :  { %13076 = vst [vmem:[#allocation15_spill] sm:$0xff] %v12488_v4  ;;  %v12493_v27 = vadd.f32 %v9572_v1, %v12206_v41 }
 0x37c   :  { %v5662_v8 = vpop.f32.mrf.mxu1 }
 0x37d   :  { %13077 = vst [vmem:[#allocation16_spill] sm:$0xff] %v12493_v27  ;;  %v12496_v47 = vadd.f32 %v5662_v8, %v12210_v21  ;;  %v13085_v27 = vld [vmem:[#allocation33_spill] sm:$0xff]  ;;  %v12514_v8 = vpop.f32.mrf.mxu0 }
 0x37e   :  { %v9575_v58 = vpop.f32.mrf.mxu1 }
 0x37f   :  { %13078 = vst [vmem:[#allocation18_spill] sm:$0xff] %v12496_v47  ;;  %v12501_v49 = vadd.f32 %v9575_v58, %v13079_v62 }
 0x380   :  { %v5672_v59 = vpop.f32.mrf.mxu1 }
 0x381   :  { %13080 = vst [vmem:[#allocation17_spill] sm:$0xff] %v12501_v49  ;;  %v12504_v39 = vadd.f32 %v5672_v59, %v13081_v40  ;;  %v13089_v49 = vld [vmem:[#allocation35_spill] sm:$0xff]  ;;  %v12522_v59 = vpop.f32.mrf.mxu0 }
 0x382   :  { %v9578_v4 = vpop.f32.mrf.mxu1 }
 0x383   :  { %13082 = vst [vmem:[#allocation19_spill] sm:$0xff] %v12504_v39  ;;  %v12509_v41 = vadd.f32 %v9578_v4, %v13083_v30 }
 0x384   :  { %v5682_v1 = vpop.f32.mrf.mxu1 }
 0x385   :  { %13084 = vst [vmem:[#allocation21_spill] sm:$0xff] %v12509_v41  ;;  %v12512_v21 = vadd.f32 %v5682_v1, %v13085_v27  ;;  %v13092_v41 = vld [vmem:[#allocation38_spill] sm:$0xff]  ;;  %v12530_v1 = vpop.f32.mrf.mxu0 }
 0x386   :  { %v9581_v47 = vpop.f32.mrf.mxu1 }
 0x387   :  { %13086 = vst [vmem:[#allocation20_spill] sm:$0xff] %v12512_v21  ;;  %v12517_v62 = vadd.f32 %v9581_v47, %v13087_v55 }
 0x388   :  { %v5692_v58 = vpop.f32.mrf.mxu1 }
 0x389   :  { %13088 = vst [vmem:[#allocation22_spill] sm:$0xff] %v12517_v62  ;;  %v12520_v40 = vadd.f32 %v5692_v58, %v13089_v49  ;;  %v12538_v58 = vpop.f32.mrf.mxu0  ;;  %v13095_v62 = vld [vmem:[#allocation40_spill] sm:$0xff] }
 0x38a   :  { %v9584_v39 = vpop.f32.mrf.mxu1 }
 0x38b   :  { %13090 = vst [vmem:[#allocation23_spill] sm:$0xff] %v12520_v40  ;;  %v12525_v30 = vadd.f32 %v9584_v39, %v13091_v22 }
 0x38c   :  { %v5702_v4 = vpop.f32.mrf.mxu1 }
 0x38d   :  { %v12528_v27 = vadd.f32 %v5702_v4, %v13092_v41  ;;  %v12546_v4 = vpop.f32.mrf.mxu0 }
 0x38e   :  { %v9587_v21 = vpop.f32.mrf.mxu1 }
 0x38f   :  { %13093 = vst [vmem:[#allocation24_spill] sm:$0xff] %v12528_v27  ;;  %v12533_v55 = vadd.f32 %v9587_v21, %v12246_v37 }
 0x390   :  { %v5712_v47 = vpop.f32.mrf.mxu1 }
 0x391   :  { %v12536_v49 = vadd.f32 %v5712_v47, %v12250_v43  ;;  %v6451_v43 = vadd.f32 %v12265_v54, %v12271_v53 }
 0x392   :  { %v9590_v40 = vpop.f32.mrf.mxu1 }
 0x393   :  { %13094 = vst [vmem:[#allocation26_spill] sm:$0xff] %v12536_v49  ;;  %v12541_v22 = vadd.f32 %v9590_v40, %v13095_v62  ;;  %v12556_v49 = vpop.f32.mrf.mxu0  ;;  %v6450_v40 = vadd.f32 %v12277_v13, %v12275_v9  ;;  %v6455_v13 = vadd.f32 %v12307_v44, %v12291_v51  ;;  %v6457_v51 = vadd.f32 %v12327_v38, %v12301_v61 }
 0x394   :  { %v5722_v39 = vpop.f32.mrf.mxu1  ;;  %v6459_v61 = vadd.f32 %v12347_v0, %v12311_v16  ;;  %v13103_v16 = vld [vmem:[#allocation44_spill] sm:$0xff] }
 0x395   :  { %13096 = vst [vmem:[#allocation25_spill] sm:$0xff] %v12541_v22  ;;  %v12544_v41 = vadd.f32 %v5722_v39, %v12258_v14  ;;  %v12561_v14 = vld [vmem:[%s12856_s4] ss:$0 sm:$0xff]  ;;  %v6453_v39 = vadd.f32 %v12287_v7, %v12281_v35  ;;  %v12568_v53 = vpop.f32.mrf.mxu0  ;;  %v6461_v0 = vadd.f32 %v12367_v5, %v13103_v16  ;;  %v6463_v5 = vadd.f32 %v12387_v34, %v12331_v63  ;;  %s9829_s4 = smov [#allocation3]  }
 0x396   :  { %v9593_v27 = vpop.f32.mrf.mxu1  ;;  %v6465_v63 = vadd.f32 %v12407_v10, %v12341_v60  ;;  %v6467_v60 = vadd.f32 %v12426_v20, %v12351_v42  ;;  %v13108_v42 = vld [vmem:[#allocation48_spill] sm:$0xff]  ;;  %s7428_s17 = sshll.u32 %s9829_s4, 4  ;;  %s7429_s17 = int_to_ptr.vmem [resolvable:$true] %s7428_s17 }
 0x397   :  { %13097 = vst [vmem:[#allocation27_spill] sm:$0xff] %v12544_v41  ;;  %v12549_v37 = vadd.f32 %v9593_v27, %v12262_v25  ;;  %v6469_v20 = vadd.f32 %v12442_v31, %v13108_v42  ;;  %v13110_v31 = vld [vmem:[#allocation50_spill] sm:$0xff]  ;;  %s9806_s0 = scalar_lea.vmem %s7429_s17, 8192  ;;  %p9811_p1 = scmp.lt.s32.totalorder %s7429_s17, %s7429_s17 }
 0x398   :  { %v5732_v21 = vpop.f32.mrf.mxu1  ;;  %p9807_p0 = scmp.ne.s32.totalorder %s7429_s17, %s9806_s0  ;;  %p9812_p2 = scmp.lt.s32.totalorder %s9806_s0, %s9806_s0 }
 0x399   :  { %13098 = vst [vmem:[#allocation29_spill] sm:$0xff] %v12549_v37  ;;  %v12554_v47 = vadd.f32 %v5732_v21, %v12268_v12 }
 0x39a   :  { %v9708_v62 = vpop.f32.mrf.mxu1  ;;  %p9813_p3 = por %p9812_p2, %p9811_p1 }
 0x39b   :  { %13099 = vst [vmem:[#allocation28_spill] sm:$0xff] %v12554_v47  ;;  %v7160_v25 = vadd.f32 %v9708_v62, %v6451_v43  ;;  %v6452_v47 = vadd.f32 %v12297_v56, %v12285_v45  ;;  %v12577_v62 = vpop.f32.mrf.mxu0 }
 0x39c   :  { %v6840_v27 = vpop.f32.mrf.mxu1  ;;  %p9814_p4 = pnand %p9813_p3, %p9807_p0 }
 0x39d   :  { %v7231_v54 = vadd.f32 %v12561_v14, %v7160_v25  ;;  %v7159_v12 = vadd.f32 %v6840_v27, %v6450_v40  ;;  %v13100_v25 = vld [vmem:[#allocation39_spill] sm:$0xff] }
 0x39e   :  { %v9711_v21 = vpop.f32.mrf.mxu1  ;;  %v6454_v45 = vadd.f32 %v12317_v52, %v13100_v25  ;;  %v13101_v52 = vld [vmem:[#allocation41_spill] sm:$0xff] }
 0x39f   :  { %v7295_v37 = vmax.f32 %v7231_v54, 0.0  ;;  %v7230_v41 = vadd.f32 %v12561_v14, %v7159_v12  ;;  %v7162_v22 = vadd.f32 %v9711_v21, %v6453_v39  ;;  %v6456_v12 = vadd.f32 %v12337_v23, %v13101_v52  ;;  %v13102_v23 = vld [vmem:[#allocation42_spill] sm:$0xff] }
 0x3a0   :  { %v6850_v9 = vpop.f32.mrf.mxu1 }
 0x3a1   :  { %7360 = vst.msk [vmem:[#allocation3 + $0x8] sm:$0xff] %vm7358_vm4, %v7295_v37  ;;  %v7294_v35 = vmax.f32 %v7230_v41, 0.0  ;;  %v7233_v7 = vadd.f32 %v12561_v14, %v7162_v22  ;;  %v7161_v43 = vadd.f32 %v6850_v9, %v6452_v47  ;;  %v12587_v37 = vpop.f32.mrf.mxu0 }
 0x3a2   :  { %v9714_v40 = vpop.f32.mrf.mxu1 }
 0x3a3   :  { %7359 = vst.msk [vmem:[#allocation3] sm:$0xff] %vm7358_vm4, %v7294_v35  ;;  %v7297_v56 = vmax.f32 %v7233_v7, 0.0  ;;  %v7232_v27 = vadd.f32 %v12561_v14, %v7161_v43  ;;  %v7164_v39 = vadd.f32 %v9714_v40, %v6455_v13  ;;  %v12597_v40 = vpop.f32.mrf.mxu0 }
 0x3a4   :  { %v6860_v54 = vpop.f32.mrf.mxu1 }
 0x3a5   :  { %7362 = vst.msk [vmem:[#allocation3 + $0x18] sm:$0xff] %vm7358_vm4, %v7297_v56  ;;  %v7296_v44 = vmax.f32 %v7232_v27, 0.0  ;;  %v7235_v22 = vadd.f32 %v12561_v14, %v7164_v39  ;;  %v7163_v41 = vadd.f32 %v6860_v54, %v6454_v45  ;;  %v6458_v45 = vadd.f32 %v12357_v48, %v13102_v23  ;;  %v13104_v48 = vld [vmem:[#allocation43_spill] sm:$0xff] }
 0x3a6   :  { %v9717_v47 = vpop.f32.mrf.mxu1  ;;  %v6460_v52 = vadd.f32 %v12377_v26, %v13104_v48  ;;  %v13105_v26 = vld [vmem:[#allocation45_spill] sm:$0xff] }
 0x3a7   :  { %7361 = vst.msk [vmem:[#allocation3 + $0x10] sm:$0xff] %vm7358_vm4, %v7296_v44  ;;  %v7299_v21 = vmax.f32 %v7235_v22, 0.0  ;;  %v7234_v9 = vadd.f32 %v12561_v14, %v7163_v41  ;;  %v7166_v13 = vadd.f32 %v9717_v47, %v6457_v51  ;;  %v12607_v41 = vpop.f32.mrf.mxu0 }
 0x3a8   :  { %v6870_v35 = vpop.f32.mrf.mxu1 }
 0x3a9   :  { %7364 = vst.msk [vmem:[#allocation3 + $0x28] sm:$0xff] %vm7358_vm4, %v7299_v21  ;;  %v7298_v38 = vmax.f32 %v7234_v9, 0.0  ;;  %v7237_v7 = vadd.f32 %v12561_v14, %v7166_v13  ;;  %v7165_v43 = vadd.f32 %v6870_v35, %v6456_v12 }
 0x3aa   :  { %v9720_v25 = vpop.f32.mrf.mxu1 }
 0x3ab   :  { %7363 = vst.msk [vmem:[#allocation3 + $0x20] sm:$0xff] %vm7358_vm4, %v7298_v38  ;;  %v7301_v56 = vmax.f32 %v7237_v7, 0.0  ;;  %v7236_v27 = vadd.f32 %v12561_v14, %v7165_v43  ;;  %v7168_v39 = vadd.f32 %v9720_v25, %v6459_v61  ;;  %v12617_v7 = vpop.f32.mrf.mxu0  ;;  %v6462_v25 = vadd.f32 %v12397_v15, %v13105_v26  ;;  %v13106_v15 = vld [vmem:[#allocation46_spill] sm:$0xff] }
 0x3ac   :  { %v6880_v54 = vpop.f32.mrf.mxu1 }
 0x3ad   :  { %7366 = vst.msk [vmem:[#allocation3 + $0x38] sm:$0xff] %vm7358_vm4, %v7301_v56  ;;  %v7300_v51 = vmax.f32 %v7236_v27, 0.0  ;;  %v7239_v44 = vadd.f32 %v12561_v14, %v7168_v39  ;;  %v7167_v22 = vadd.f32 %v6880_v54, %v6458_v45  ;;  %v12627_v16 = vpop.f32.mrf.mxu0 }
 0x3ae   :  { %v9723_v47 = vpop.f32.mrf.mxu1 }
 0x3af   :  { %7365 = vst.msk [vmem:[#allocation3 + $0x30] sm:$0xff] %vm7358_vm4, %v7300_v51  ;;  %v7303_v12 = vmax.f32 %v7239_v44, 0.0  ;;  %v7238_v21 = vadd.f32 %v12561_v14, %v7167_v22  ;;  %v7170_v9 = vadd.f32 %v9723_v47, %v6461_v0  ;;  %v6464_v51 = vadd.f32 %v12417_v29, %v13106_v15  ;;  %v13107_v29 = vld [vmem:[#allocation47_spill] sm:$0xff] }
 0x3b0   :  { %v6890_v13 = vpop.f32.mrf.mxu1 }
 0x3b1   :  { %7368 = vst.msk [vmem:[#allocation3 + $0x48] sm:$0xff] %vm7358_vm4, %v7303_v12  ;;  %v7302_v35 = vmax.f32 %v7238_v21, 0.0  ;;  %v7241_v61 = vadd.f32 %v12561_v14, %v7170_v9  ;;  %v7169_v38 = vadd.f32 %v6890_v13, %v6460_v52  ;;  %v12637_v21 = vpop.f32.mrf.mxu0  ;;  %v6466_v13 = vadd.f32 %v12434_v50, %v13107_v29  ;;  %v13109_v50 = vld [vmem:[#allocation49_spill] sm:$0xff] }
 0x3b2   :  { %v9726_v43 = vpop.f32.mrf.mxu1 }
 0x3b3   :  { %7367 = vst.msk [vmem:[#allocation3 + $0x40] sm:$0xff] %vm7358_vm4, %v7302_v35  ;;  %v7305_v23 = vmax.f32 %v7241_v61, 0.0  ;;  %v7240_v45 = vadd.f32 %v12561_v14, %v7169_v38  ;;  %v7172_v56 = vadd.f32 %v9726_v43, %v6463_v5 }
 0x3b4   :  { %v6900_v27 = vpop.f32.mrf.mxu1 }
 0x3b5   :  { %7370 = vst.msk [vmem:[#allocation3 + $0x58] sm:$0xff] %vm7358_vm4, %v7305_v23  ;;  %v7304_v34 = vmax.f32 %v7240_v45, 0.0  ;;  %v7243_v39 = vadd.f32 %v12561_v14, %v7172_v56  ;;  %v7171_v54 = vadd.f32 %v6900_v27, %v6462_v25  ;;  %v12647_v23 = vpop.f32.mrf.mxu0  ;;  %v6468_v56 = vadd.f32 %v12450_v18, %v13109_v50  ;;  %v13111_v18 = vld [vmem:[#allocation52_spill] sm:$0xff] }
 0x3b6   :  { %v9729_v0 = vpop.f32.mrf.mxu1 }
 0x3b7   :  { %7369 = vst.msk [vmem:[#allocation3 + $0x50] sm:$0xff] %vm7358_vm4, %v7304_v34  ;;  %v7307_v44 = vmax.f32 %v7243_v39, 0.0  ;;  %v7242_v22 = vadd.f32 %v12561_v14, %v7171_v54  ;;  %v7174_v47 = vadd.f32 %v9729_v0, %v6465_v63  ;;  %v6471_v54 = vadd.f32 %v12458_v24, %v13110_v31 }
 0x3b8   :  { %v6910_v48 = vpop.f32.mrf.mxu1  ;;  %v6473_v24 = vadd.f32 %v12474_v17, %v12381_v33  ;;  %v13113_v33 = vld [vmem:[#allocation53_spill] sm:$0xff] }
 0x3b9   :  { %7372 = vst.msk [vmem:[#allocation3 + $0x68] sm:$0xff] %vm7358_vm4, %v7307_v44  ;;  %v7306_v10 = vmax.f32 %v7242_v22, 0.0  ;;  %v7245_v52 = vadd.f32 %v12561_v14, %v7174_v47  ;;  %v7173_v12 = vadd.f32 %v6910_v48, %v6464_v51  ;;  %v12657_v44 = vpop.f32.mrf.mxu0  ;;  %v6470_v47 = vadd.f32 %v12466_v32, %v13111_v18  ;;  %v13112_v32 = vld [vmem:[#allocation51_spill] sm:$0xff] }
 0x3ba   :  { %v9732_v9 = vpop.f32.mrf.mxu1  ;;  %v6475_v17 = vadd.f32 %v12490_v6, %v13113_v33  ;;  %v6477_v6 = vadd.f32 %v12506_v46, %v12401_v28  ;;  %v6479_v28 = vadd.f32 %v12522_v59, %v12411_v2  ;;  %v6481_v2 = vadd.f32 %v12538_v58, %v12421_v36 }
 0x3bb   :  { %7371 = vst.msk [vmem:[#allocation3 + $0x60] sm:$0xff] %vm7358_vm4, %v7306_v10  ;;  %v7309_v5 = vmax.f32 %v7245_v52, 0.0  ;;  %v7244_v35 = vadd.f32 %v12561_v14, %v7173_v12  ;;  %v7176_v61 = vadd.f32 %v9732_v9, %v6467_v60  ;;  %v6483_v36 = vadd.f32 %v12556_v49, %v12429_v3 }
 0x3bc   :  { %v6920_v38 = vpop.f32.mrf.mxu1  ;;  %v6485_v3 = vadd.f32 %v12577_v62, %v12437_v57  ;;  %v13120_v57 = vld [vmem:[#allocation60_spill] sm:$0xff] }
 0x3bd   :  { %7374 = vst.msk [vmem:[#allocation3 + $0x78] sm:$0xff] %vm7358_vm4, %v7309_v5  ;;  %v7308_v43 = vmax.f32 %v7244_v35, 0.0  ;;  %v7247_v26 = vadd.f32 %v12561_v14, %v7176_v61  ;;  %v7175_v25 = vadd.f32 %v6920_v38, %v6466_v13  ;;  %v12667_v13 = vpop.f32.mrf.mxu0  ;;  %v6472_v35 = vadd.f32 %v12482_v11, %v13112_v32  ;;  %v13114_v11 = vld [vmem:[#allocation54_spill] sm:$0xff] }
 0x3be   :  { %v9735_v45 = vpop.f32.mrf.mxu1  ;;  %v6487_v62 = vadd.f32 %v12597_v40, %v13120_v57  ;;  %v13122_v40 = vld [vmem:[#allocation7_spill] sm:$0xff] }
 0x3bf   :  { %7373 = vst.msk [vmem:[#allocation3 + $0x70] sm:$0xff] %vm7358_vm4, %v7308_v43  ;;  %v7311_v27 = vmax.f32 %v7247_v26, 0.0  ;;  %v7246_v63 = vadd.f32 %v12561_v14, %v7175_v25  ;;  %v7178_v34 = vadd.f32 %v9735_v45, %v6469_v20  ;;  %v12677_v45 = vpop.f32.mrf.mxu0 }
 0x3c0   :  { %v6930_v39 = vpop.f32.mrf.mxu1 }
 0x3c1   :  { %7376 = vst.msk [vmem:[#allocation3 + $0x88] sm:$0xff] %vm7358_vm4, %v7311_v27  ;;  %v7310_v0 = vmax.f32 %v7246_v63, 0.0  ;;  %v7249_v15 = vadd.f32 %v12561_v14, %v7178_v34  ;;  %v7177_v51 = vadd.f32 %v6930_v39, %v6468_v56  ;;  %v6474_v56 = vadd.f32 %v12498_v19, %v13114_v11  ;;  %v13115_v19 = vld [vmem:[#allocation55_spill] sm:$0xff] }
 0x3c2   :  { %v9738_v22 = vpop.f32.mrf.mxu1 }
 0x3c3   :  { %7375 = vst.msk [vmem:[#allocation3 + $0x80] sm:$0xff] %vm7358_vm4, %v7310_v0  ;;  %v7313_v48 = vmax.f32 %v7249_v15, 0.0  ;;  %v7248_v60 = vadd.f32 %v12561_v14, %v7177_v51  ;;  %v7180_v10 = vadd.f32 %v9738_v22, %v6471_v54  ;;  %v12687_v15 = vpop.f32.mrf.mxu0  ;;  %v6476_v22 = vadd.f32 %v12514_v8, %v13115_v19  ;;  %v13116_v8 = vld [vmem:[#allocation56_spill] sm:$0xff] }
 0x3c4   :  { %v6940_v52 = vpop.f32.mrf.mxu1 }
 0x3c5   :  { %7378 = vst.msk [vmem:[#allocation3 + $0x98] sm:$0xff] %vm7358_vm4, %v7313_v48  ;;  %v7312_v12 = vmax.f32 %v7248_v60, 0.0  ;;  %v7251_v9 = vadd.f32 %v12561_v14, %v7180_v10  ;;  %v7179_v29 = vadd.f32 %v6940_v52, %v6470_v47 }
 0x3c6   :  { %v9741_v5 = vpop.f32.mrf.mxu1 }
 0x3c7   :  { %7377 = vst.msk [vmem:[#allocation3 + $0x90] sm:$0xff] %vm7358_vm4, %v7312_v12  ;;  %v7315_v61 = vmax.f32 %v7251_v9, 0.0  ;;  %v7250_v38 = vadd.f32 %v12561_v14, %v7179_v29  ;;  %v7182_v42 = vadd.f32 %v9741_v5, %v6473_v24  ;;  %v12697_v24 = vpop.f32.mrf.mxu0  ;;  %v6478_v9 = vadd.f32 %v12530_v1, %v13116_v8  ;;  %v13117_v1 = vld [vmem:[#allocation57_spill] sm:$0xff] }
 0x3c8   :  { %v6950_v20 = vpop.f32.mrf.mxu1  ;;  %v6480_v33 = vadd.f32 %v12546_v4, %v13117_v1  ;;  %v13118_v4 = vld [vmem:[#allocation58_spill] sm:$0xff] }
 0x3c9   :  { %7380 = vst.msk [vmem:[#allocation3 + $0xa8] sm:$0xff] %vm7358_vm4, %v7315_v61  ;;  %v7314_v43 = vmax.f32 %v7250_v38, 0.0  ;;  %v7253_v26 = vadd.f32 %v12561_v14, %v7182_v42  ;;  %v7181_v25 = vadd.f32 %v6950_v20, %v6472_v35  ;;  %v12707_v42 = vpop.f32.mrf.mxu0 }
 0x3ca   :  { %v9744_v50 = vpop.f32.mrf.mxu1 }
 0x3cb   :  { %7379 = vst.msk [vmem:[#allocation3 + $0xa0] sm:$0xff] %vm7358_vm4, %v7314_v43  ;;  %v7317_v27 = vmax.f32 %v7253_v26, 0.0  ;;  %v7252_v63 = vadd.f32 %v12561_v14, %v7181_v25  ;;  %v7184_v34 = vadd.f32 %v9744_v50, %v6475_v17 }
 0x3cc   :  { %v6960_v39 = vpop.f32.mrf.mxu1 }
 0x3cd   :  { %7382 = vst.msk [vmem:[#allocation3 + $0xb8] sm:$0xff] %vm7358_vm4, %v7317_v27  ;;  %v7316_v31 = vmax.f32 %v7252_v63, 0.0  ;;  %v7255_v54 = vadd.f32 %v12561_v14, %v7184_v34  ;;  %v7183_v0 = vadd.f32 %v6960_v39, %v6474_v56  ;;  %v12717_v56 = vpop.f32.mrf.mxu0  ;;  %v6482_v63 = vadd.f32 %v12568_v53, %v13118_v4  ;;  %v13119_v53 = vld [vmem:[#allocation59_spill] sm:$0xff] }
 0x3ce   :  { %v9747_v51 = vpop.f32.mrf.mxu1 }
 0x3cf   :  { %7381 = vst.msk [vmem:[#allocation3 + $0xb0] sm:$0xff] %vm7358_vm4, %v7316_v31  ;;  %v7319_v18 = vmax.f32 %v7255_v54, 0.0  ;;  %v7254_v47 = vadd.f32 %v12561_v14, %v7183_v0  ;;  %v7186_v48 = vadd.f32 %v9747_v51, %v6477_v6  ;;  %v12727_v51 = vpop.f32.mrf.mxu0 }
 0x3d0   :  { %v6970_v60 = vpop.f32.mrf.mxu1 }
 0x3d1   :  { %7384 = vst.msk [vmem:[#allocation3 + $0xc8] sm:$0xff] %vm7358_vm4, %v7319_v18  ;;  %v7318_v46 = vmax.f32 %v7254_v47, 0.0  ;;  %v7257_v10 = vadd.f32 %v12561_v14, %v7186_v48  ;;  %v7185_v52 = vadd.f32 %v6970_v60, %v6476_v22  ;;  %v6484_v22 = vadd.f32 %v12587_v37, %v13119_v53  ;;  %v13121_v37 = vld [vmem:[#allocation6_spill] sm:$0xff] }
 0x3d2   :  { %v9750_v12 = vpop.f32.mrf.mxu1  ;;  %v6486_v8 = vadd.f32 %v12607_v41, %v13121_v37  ;;  %v13123_v41 = vld [vmem:[#allocation61_spill] sm:$0xff] }
 0x3d3   :  { %7383 = vst.msk [vmem:[#allocation3 + $0xc0] sm:$0xff] %vm7358_vm4, %v7318_v46  ;;  %v7321_v29 = vmax.f32 %v7257_v10, 0.0  ;;  %v7256_v5 = vadd.f32 %v12561_v14, %v7185_v52  ;;  %v7188_v32 = vadd.f32 %v9750_v12, %v6479_v28  ;;  %v12737_v52 = vpop.f32.mrf.mxu0  ;;  %v6488_v1 = vadd.f32 %v12627_v16, %v13123_v41  ;;  %v13125_v16 = vld [vmem:[#allocation10_spill] sm:$0xff] }
 0x3d4   :  { %v6980_v35 = vpop.f32.mrf.mxu1  ;;  %v6490_v4 = vadd.f32 %v12647_v23, %v13125_v16  ;;  %v13127_v23 = vld [vmem:[#allocation11_spill] sm:$0xff] }
 0x3d5   :  { %7386 = vst.msk [vmem:[#allocation3 + $0xd8] sm:$0xff] %vm7358_vm4, %v7321_v29  ;;  %v7320_v59 = vmax.f32 %v7256_v5, 0.0  ;;  %v7259_v61 = vadd.f32 %v12561_v14, %v7188_v32  ;;  %v7187_v38 = vadd.f32 %v6980_v35, %v6478_v9  ;;  %v6489_v35 = vadd.f32 %v12617_v7, %v13122_v40  ;;  %v13124_v7 = vld [vmem:[#allocation8_spill] sm:$0xff] }
 0x3d6   :  { %v9753_v20 = vpop.f32.mrf.mxu1  ;;  %v6492_v53 = vadd.f32 %v12667_v13, %v13127_v23 }
 0x3d7   :  { %7385 = vst.msk [vmem:[#allocation3 + $0xd0] sm:$0xff] %vm7358_vm4, %v7320_v59  ;;  %v7323_v17 = vmax.f32 %v7259_v61, 0.0  ;;  %v7258_v43 = vadd.f32 %v12561_v14, %v7187_v38  ;;  %v7190_v26 = vadd.f32 %v9753_v20, %v6481_v2  ;;  %v12747_v38 = vpop.f32.mrf.mxu0 }
 0x3d8   :  { %v6990_v25 = vpop.f32.mrf.mxu1 }
 0x3d9   :  { %7388 = vst.msk [vmem:[#allocation3 + $0xe8] sm:$0xff] %vm7358_vm4, %v7323_v17  ;;  %v7322_v58 = vmax.f32 %v7258_v43, 0.0  ;;  %v7261_v50 = vadd.f32 %v12561_v14, %v7190_v26  ;;  %v7189_v11 = vadd.f32 %v6990_v25, %v6480_v33  ;;  %v6491_v25 = vadd.f32 %v12637_v21, %v13124_v7  ;;  %v13126_v21 = vld [vmem:[#allocation9_spill] sm:$0xff] }
 0x3da   :  { %v9756_v27 = vpop.f32.mrf.mxu1 }
 0x3db   :  { %7387 = vst.msk [vmem:[#allocation3 + $0xe0] sm:$0xff] %vm7358_vm4, %v7322_v58  ;;  %v7325_v34 = vmax.f32 %v7261_v50, 0.0  ;;  %v7260_v39 = vadd.f32 %v12561_v14, %v7189_v11  ;;  %v7192_v6 = vadd.f32 %v9756_v27, %v6483_v36  ;;  %v12757_v11 = vpop.f32.mrf.mxu0 }
 0x3dc   :  { %v7000_v31 = vpop.f32.mrf.mxu1 }
 0x3dd   :  { %7390 = vst.msk [vmem:[#allocation3 + $0xf8] sm:$0xff] %vm7358_vm4, %v7325_v34  ;;  %v7324_v49 = vmax.f32 %v7260_v39, 0.0  ;;  %v7263_v54 = vadd.f32 %v12561_v14, %v7192_v6  ;;  %v7191_v0 = vadd.f32 %v7000_v31, %v6482_v63  ;;  %v6493_v31 = vadd.f32 %v12657_v44, %v13126_v21  ;;  %v13128_v44 = vld [vmem:[#allocation13_spill] sm:$0xff] }
 0x3de   :  { %v9759_v19 = vpop.f32.mrf.mxu1 }
 0x3df   :  { %7389 = vst.msk [vmem:[#allocation3 + $0xf0] sm:$0xff] %vm7358_vm4, %v7324_v49  ;;  %v7327_v18 = vmax.f32 %v7263_v54, 0.0  ;;  %v7262_v47 = vadd.f32 %v12561_v14, %v7191_v0  ;;  %v7194_v48 = vadd.f32 %v9759_v19, %v6485_v3  ;;  %v12767_v0 = vpop.f32.mrf.mxu0 }
 0x3e0   :  { %v7010_v60 = vpop.f32.mrf.mxu1 }
 0x3e1   :  { %7392 = vst.msk [vmem:[#allocation3 + $0x108] sm:$0xff] %vm7358_vm4, %v7327_v18  ;;  %v7326_v28 = vmax.f32 %v7262_v47, 0.0  ;;  %v7265_v46 = vadd.f32 %v12561_v14, %v7194_v48  ;;  %v7193_v10 = vadd.f32 %v7010_v60, %v6484_v22  ;;  %v6495_v60 = vadd.f32 %v12677_v45, %v13128_v44 }
 0x3e2   :  { %v9762_v12 = vpop.f32.mrf.mxu1 }
 0x3e3   :  { %7391 = vst.msk [vmem:[#allocation3 + $0x100] sm:$0xff] %vm7358_vm4, %v7326_v28  ;;  %v7329_v9 = vmax.f32 %v7265_v46, 0.0  ;;  %v7264_v29 = vadd.f32 %v12561_v14, %v7193_v10  ;;  %v7196_v5 = vadd.f32 %v9762_v12, %v6487_v62  ;;  %v9685_v46 = vpop.f32.mrf.mxu0  ;;  %v13129_v12 = vld [vmem:[#allocation12_spill] sm:$0xff] }
 0x3e4   :  { %v7020_v32 = vpop.f32.mrf.mxu1  ;;  %v6494_v13 = vadd.f32 %v12687_v15, %v13129_v12  ;;  %v13138_v12 = vld [vmem:[#allocation22_spill] sm:$0xff] }
 0x3e5   :  { %7394 = vst.msk [vmem:[#allocation3 + $0x118] sm:$0xff] %vm7358_vm4, %v7329_v9  ;;  %v7328_v2 = vmax.f32 %v7264_v29, 0.0  ;;  %v7267_v59 = vadd.f32 %v12561_v14, %v7196_v5  ;;  %v7195_v61 = vadd.f32 %v7020_v32, %v6486_v8  ;;  %v13130_v5 = vld [vmem:[#allocation14_spill] sm:$0xff] }
 0x3e6   :  { %v9765_v20 = vpop.f32.mrf.mxu1  ;;  %v6497_v45 = vadd.f32 %v12697_v24, %v13130_v5  ;;  %v13139_v5 = vld [vmem:[#allocation23_spill] sm:$0xff] }
 0x3e7   :  { %7393 = vst.msk [vmem:[#allocation3 + $0x110] sm:$0xff] %vm7358_vm4, %v7328_v2  ;;  %v7331_v33 = vmax.f32 %v7267_v59, 0.0  ;;  %v7266_v17 = vadd.f32 %v12561_v14, %v7195_v61  ;;  %v7198_v43 = vadd.f32 %v9765_v20, %v6489_v35  ;;  %v6401_v2 = vpop.f32.mrf.mxu0  ;;  %v13131_v61 = vld [vmem:[#allocation15_spill] sm:$0xff] }
 0x3e8   :  { %v7030_v26 = vpop.f32.mrf.mxu1  ;;  %v6496_v15 = vadd.f32 %v12707_v42, %v13131_v61 }
 0x3e9   :  { %7396 = vst.msk [vmem:[#allocation3 + $0x128] sm:$0xff] %vm7358_vm4, %v7331_v33  ;;  %v7330_v36 = vmax.f32 %v7266_v17, 0.0  ;;  %v7269_v58 = vadd.f32 %v12561_v14, %v7198_v43  ;;  %v7197_v50 = vadd.f32 %v7030_v26, %v6488_v1  ;;  %v13132_v17 = vld [vmem:[#allocation16_spill] sm:$0xff] }
 0x3ea   :  { %v9768_v27 = vpop.f32.mrf.mxu1  ;;  %v6499_v24 = vadd.f32 %v12717_v56, %v13132_v17 }
 0x3eb   :  { %7395 = vst.msk [vmem:[#allocation3 + $0x120] sm:$0xff] %vm7358_vm4, %v7330_v36  ;;  %v7333_v63 = vmax.f32 %v7269_v58, 0.0  ;;  %v7268_v34 = vadd.f32 %v12561_v14, %v7197_v50  ;;  %v7200_v39 = vadd.f32 %v9768_v27, %v6491_v25  ;;  %v9688_v25 = vpop.f32.mrf.mxu0  ;;  %v13133_v58 = vld [vmem:[#allocation18_spill] sm:$0xff] }
 0x3ec   :  { %v7040_v6 = vpop.f32.mrf.mxu1  ;;  %v6498_v42 = vadd.f32 %v12727_v51, %v13133_v58 }
 0x3ed   :  { %7398 = vst.msk [vmem:[#allocation3 + $0x138] sm:$0xff] %vm7358_vm4, %v7333_v63  ;;  %v7332_v3 = vmax.f32 %v7268_v34, 0.0  ;;  %v7271_v49 = vadd.f32 %v12561_v14, %v7200_v39  ;;  %v7199_v54 = vadd.f32 %v7040_v6, %v6490_v4  ;;  %v13134_v63 = vld [vmem:[#allocation17_spill] sm:$0xff]  ;;  %v6411_v21 = vpop.f32.mrf.mxu0 }
 0x3ee   :  { %v9771_v19 = vpop.f32.mrf.mxu1  ;;  %v6501_v56 = vadd.f32 %v12737_v52, %v13134_v63 }
 0x3ef   :  { %7397 = vst.msk [vmem:[#allocation3 + $0x130] sm:$0xff] %vm7358_vm4, %v7332_v3  ;;  %v7335_v22 = vmax.f32 %v7271_v49, 0.0  ;;  %v7270_v18 = vadd.f32 %v12561_v14, %v7199_v54  ;;  %v7202_v47 = vadd.f32 %v9771_v19, %v6493_v31  ;;  %v13135_v3 = vld [vmem:[#allocation19_spill] sm:$0xff] }
 0x3f0   :  { %v7050_v48 = vpop.f32.mrf.mxu1  ;;  %v6500_v51 = vadd.f32 %v12747_v38, %v13135_v3  ;;  %v13143_v3 = vld [vmem:[#allocation27_spill] sm:$0xff] }
 0x3f1   :  { %7400 = vst.msk [vmem:[#allocation3 + $0x148] sm:$0xff] %vm7358_vm4, %v7335_v22  ;;  %v7334_v57 = vmax.f32 %v7270_v18, 0.0  ;;  %v7273_v62 = vadd.f32 %v12561_v14, %v7202_v47  ;;  %v7201_v28 = vadd.f32 %v7050_v48, %v6492_v53  ;;  %v13136_v53 = vld [vmem:[#allocation21_spill] sm:$0xff]  ;;  %v9691_v48 = vpop.f32.mrf.mxu0 }
 0x3f2   :  { %v9774_v10 = vpop.f32.mrf.mxu1  ;;  %v6503_v52 = vadd.f32 %v12757_v11, %v13136_v53  ;;  %v6505_v11 = vadd.f32 %v9685_v46, %v13138_v12 }
 0x3f3   :  { %7399 = vst.msk [vmem:[#allocation3 + $0x140] sm:$0xff] %vm7358_vm4, %v7334_v57  ;;  %v7337_v37 = vmax.f32 %v7273_v62, 0.0  ;;  %v7272_v8 = vadd.f32 %v12561_v14, %v7201_v28  ;;  %v7204_v9 = vadd.f32 %v9774_v10, %v6495_v60  ;;  %v13137_v60 = vld [vmem:[#allocation20_spill] sm:$0xff] }
 0x3f4   :  { %v7060_v29 = vpop.f32.mrf.mxu1  ;;  %v6502_v38 = vadd.f32 %v12767_v0, %v13137_v60  ;;  %v13145_v60 = vld [vmem:[#allocation28_spill] sm:$0xff] }
 0x3f5   :  { %7402 = vst.msk [vmem:[#allocation3 + $0x158] sm:$0xff] %vm7358_vm4, %v7337_v37  ;;  %v7336_v32 = vmax.f32 %v7272_v8, 0.0  ;;  %v7275_v40 = vadd.f32 %v12561_v14, %v7204_v9  ;;  %v7203_v35 = vadd.f32 %v7060_v29, %v6494_v13  ;;  %v6421_v9 = vpop.f32.mrf.mxu0 }
 0x3f6   :  { %v9777_v59 = vpop.f32.mrf.mxu1 }
 0x3f7   :  { %7401 = vst.msk [vmem:[#allocation3 + $0x150] sm:$0xff] %vm7358_vm4, %v7336_v32  ;;  %v7339_v20 = vmax.f32 %v7275_v40, 0.0  ;;  %v7274_v41 = vadd.f32 %v12561_v14, %v7203_v35  ;;  %v7206_v1 = vadd.f32 %v9777_v59, %v6497_v45  ;;  %v6504_v45 = vadd.f32 %v6401_v2, %v13139_v5 }
 0x3f8   :  { %v7070_v33 = vpop.f32.mrf.mxu1  ;;  %v6507_v59 = vadd.f32 %v9688_v25, %v12525_v30 }
 0x3f9   :  { %7404 = vst.msk [vmem:[#allocation3 + $0x168] sm:$0xff] %vm7358_vm4, %v7339_v20  ;;  %v7338_v43 = vmax.f32 %v7274_v41, 0.0  ;;  %v7277_v26 = vadd.f32 %v12561_v14, %v7206_v1  ;;  %v7205_v7 = vadd.f32 %v7070_v33, %v6496_v15  ;;  %v9694_v20 = vpop.f32.mrf.mxu0  ;;  %v13140_v1 = vld [vmem:[#allocation24_spill] sm:$0xff] }
 0x3fa   :  { %v9780_v36 = vpop.f32.mrf.mxu1  ;;  %v6506_v33 = vadd.f32 %v6411_v21, %v13140_v1 }
 0x3fb   :  { %7403 = vst.msk [vmem:[#allocation3 + $0x160] sm:$0xff] %vm7358_vm4, %v7338_v43  ;;  %v7341_v50 = vmax.f32 %v7277_v26, 0.0  ;;  %v7276_v27 = vadd.f32 %v12561_v14, %v7205_v7  ;;  %v7208_v16 = vadd.f32 %v9780_v36, %v6499_v24  ;;  %v6509_v26 = vadd.f32 %v9691_v48, %v12533_v55  ;;  %v6431_v36 = vpop.f32.mrf.mxu0 }
 0x3fc   :  { %v7080_v4 = vpop.f32.mrf.mxu1 }
 0x3fd   :  { %7406 = vst.msk [vmem:[#allocation3 + $0x178] sm:$0xff] %vm7358_vm4, %v7341_v50  ;;  %v7340_v34 = vmax.f32 %v7276_v27, 0.0  ;;  %v7279_v39 = vadd.f32 %v12561_v14, %v7208_v16  ;;  %v7207_v6 = vadd.f32 %v7080_v4, %v6498_v42  ;;  %v13141_v42 = vld [vmem:[#allocation26_spill] sm:$0xff]  ;;  %v9697_v63 = vpop.f32.mrf.mxu0 }
 0x3fe   :  { %v9783_v31 = vpop.f32.mrf.mxu1  ;;  %v6508_v50 = vadd.f32 %v6421_v9, %v13141_v42 }
 0x3ff   :  { %7405 = vst.msk [vmem:[#allocation3 + $0x170] sm:$0xff] %vm7358_vm4, %v7340_v34  ;;  %v7343_v49 = vmax.f32 %v7279_v39, 0.0  ;;  %v7278_v54 = vadd.f32 %v12561_v14, %v7207_v6  ;;  %v7210_v19 = vadd.f32 %v9783_v31, %v6501_v56  ;;  %v13142_v34 = vld [vmem:[#allocation25_spill] sm:$0xff] }
 0x400   :  { %v7090_v23 = vpop.f32.mrf.mxu1  ;;  %v6511_v55 = vadd.f32 %v9694_v20, %v13142_v34 }
 0x401   :  { %7408 = vst.msk [vmem:[#allocation3 + $0x188] sm:$0xff] %vm7358_vm4, %v7343_v49  ;;  %v7342_v22 = vmax.f32 %v7278_v54, 0.0  ;;  %v7281_v18 = vadd.f32 %v12561_v14, %v7210_v19  ;;  %v7209_v47 = vadd.f32 %v7090_v23, %v6500_v51  ;;  %v6510_v51 = vadd.f32 %v6431_v36, %v13143_v3  ;;  %v6441_v23 = vpop.f32.mrf.mxu0 }
 0x402   :  { %v9786_v44 = vpop.f32.mrf.mxu1 }
 0x403   :  { %7407 = vst.msk [vmem:[#allocation3 + $0x180] sm:$0xff] %vm7358_vm4, %v7342_v22  ;;  %v7345_v57 = vmax.f32 %v7281_v18, 0.0  ;;  %v7280_v62 = vadd.f32 %v12561_v14, %v7209_v47  ;;  %v7212_v28 = vadd.f32 %v9786_v44, %v6503_v52  ;;  %v13144_v52 = vld [vmem:[#allocation29_spill] sm:$0xff] }
 0x404   :  { %v7100_v10 = vpop.f32.mrf.mxu1  ;;  %v6513_v22 = vadd.f32 %v9697_v63, %v13144_v52 }
 0x405   :  { %7410 = vst.msk [vmem:[#allocation3 + $0x198] sm:$0xff] %vm7358_vm4, %v7345_v57  ;;  %v7344_v13 = vmax.f32 %v7280_v62, 0.0  ;;  %v7283_v37 = vadd.f32 %v12561_v14, %v7212_v28  ;;  %v7211_v8 = vadd.f32 %v7100_v10, %v6502_v38  ;;  %v6512_v38 = vadd.f32 %v6441_v23, %v13145_v60 }
 0x406   :  { %v9789_v29 = vpop.f32.mrf.mxu1 }
 0x407   :  { %7409 = vst.msk [vmem:[#allocation3 + $0x190] sm:$0xff] %vm7358_vm4, %v7344_v13  ;;  %v7347_v0 = vmax.f32 %v7283_v37, 0.0  ;;  %v7282_v32 = vadd.f32 %v12561_v14, %v7211_v8  ;;  %v7214_v40 = vadd.f32 %v9789_v29, %v6505_v11 }
 0x408   :  { %v7110_v35 = vpop.f32.mrf.mxu1 }
 0x409   :  { %7412 = vst.msk [vmem:[#allocation3 + $0x1a8] sm:$0xff] %vm7358_vm4, %v7347_v0  ;;  %v7346_v46 = vmax.f32 %v7282_v32, 0.0  ;;  %v7285_v61 = vadd.f32 %v12561_v14, %v7214_v40  ;;  %v7213_v15 = vadd.f32 %v7110_v35, %v6504_v45 }
 0x40a   :  { %v9792_v41 = vpop.f32.mrf.mxu1 }
 0x40b   :  { %7411 = vst.msk [vmem:[#allocation3 + $0x1a0] sm:$0xff] %vm7358_vm4, %v7346_v46  ;;  %v7349_v2 = vmax.f32 %v7285_v61, 0.0  ;;  %v7284_v17 = vadd.f32 %v12561_v14, %v7213_v15  ;;  %v7216_v24 = vadd.f32 %v9792_v41, %v6507_v59 }
 0x40c   :  { %v7120_v43 = vpop.f32.mrf.mxu1 }
 0x40d   :  { %7414 = vst.msk [vmem:[#allocation3 + $0x1b8] sm:$0xff] %vm7358_vm4, %v7349_v2  ;;  %v7348_v30 = vmax.f32 %v7284_v17, 0.0  ;;  %v7287_v7 = vadd.f32 %v12561_v14, %v7216_v24  ;;  %v7215_v25 = vadd.f32 %v7120_v43, %v6506_v33 }
 0x40e   :  { %v9795_v58 = vpop.f32.mrf.mxu1 }
 0x40f   :  { %7413 = vst.msk [vmem:[#allocation3 + $0x1b0] sm:$0xff] %vm7358_vm4, %v7348_v30  ;;  %v7351_v27 = vmax.f32 %v7287_v7, 0.0  ;;  %v7286_v16 = vadd.f32 %v12561_v14, %v7215_v25  ;;  %v7218_v4 = vadd.f32 %v9795_v58, %v6509_v26 }
 0x410   :  { %v7130_v56 = vpop.f32.mrf.mxu1 }
 0x411   :  { %7416 = vst.msk [vmem:[#allocation3 + $0x1c8] sm:$0xff] %vm7358_vm4, %v7351_v27  ;;  %v7350_v39 = vmax.f32 %v7286_v16, 0.0  ;;  %v7289_v6 = vadd.f32 %v12561_v14, %v7218_v4  ;;  %v7217_v21 = vadd.f32 %v7130_v56, %v6508_v50 }
 0x412   :  { %v9798_v31 = vpop.f32.mrf.mxu1 }
 0x413   :  { %7415 = vst.msk [vmem:[#allocation3 + $0x1c0] sm:$0xff] %vm7358_vm4, %v7350_v39  ;;  %v7353_v49 = vmax.f32 %v7289_v6, 0.0  ;;  %v7288_v54 = vadd.f32 %v12561_v14, %v7217_v21  ;;  %v7220_v19 = vadd.f32 %v9798_v31, %v6511_v55 }
 0x414   :  { %v7140_v53 = vpop.f32.mrf.mxu1 }
 0x415   :  { %7418 = vst.msk [vmem:[#allocation3 + $0x1d8] sm:$0xff] %vm7358_vm4, %v7353_v49  ;;  %v7352_v18 = vmax.f32 %v7288_v54, 0.0  ;;  %v7291_v47 = vadd.f32 %v12561_v14, %v7220_v19  ;;  %v7219_v48 = vadd.f32 %v7140_v53, %v6510_v51 }
 0x416   :  { %v9801_v44 = vpop.f32.mrf.mxu1 }
 0x417   :  { %7417 = vst.msk [vmem:[#allocation3 + $0x1d0] sm:$0xff] %vm7358_vm4, %v7352_v18  ;;  %v7355_v57 = vmax.f32 %v7291_v47, 0.0  ;;  %v7290_v62 = vadd.f32 %v12561_v14, %v7219_v48  ;;  %v7222_v28 = vadd.f32 %v9801_v44, %v6513_v22 }
 0x418   :  { %v7150_v10 = vpop.f32.mrf.mxu1 }
 0x419   :  { %7420 = vst.msk [vmem:[#allocation3 + $0x1e8] sm:$0xff] %vm7358_vm4, %v7355_v57  ;;  %v7354_v12 = vmax.f32 %v7290_v62, 0.0  ;;  %v7293_v11 = vadd.f32 %v12561_v14, %v7222_v28  ;;  %v7221_v13 = vadd.f32 %v7150_v10, %v6512_v38 }
 0x41b   :  { %7419 = vst.msk [vmem:[#allocation3 + $0x1e0] sm:$0xff] %vm7358_vm4, %v7354_v12  ;;  %v7357_v37 = vmax.f32 %v7293_v11, 0.0  ;;  %v7292_v8 = vadd.f32 %v12561_v14, %v7221_v13 }
 0x41d   :  { %7422 = vst.msk [vmem:[#allocation3 + $0x1f8] sm:$0xff] %vm7358_vm4, %v7357_v37  ;;  %v7356_v9 = vmax.f32 %v7292_v8, 0.0 }
 0x41f   :  { %7421 = vst.msk [vmem:[#allocation3 + $0x1f0] sm:$0xff] %vm7358_vm4, %v7356_v9 }
 0x420   :  { %9817 = shalt.err (!%p9814_p4)
}
 0x421   :  { %s9830_s2 = smov 128   ;;  %s9831_s18 = smov 8  }
 0x422   :  { %7434 = dma.vmem_to_hbm [thread:$0]  %s7429_s17, 8192, %s12857_s5, [#allocation4], %s9830_s2, %s9830_s2, %s9831_s18  }
 0x423   :  { %9826 = dma.done.wait [#allocation4], 8192  }
 0x424   :  { %9827 = vsyncadd [#allocation4], 4294959104 }
 0x425   :  { %7438 = vsyncpa [#allocation4], 1 }

</bundles_post_ra>
